<compile_context>
chip_gen: v5e
topology: v5e:2x2
jax: 0.10.0
libtpu: 0.0.40
codegen_flags: <defaults>
</compile_context>

<pallas_src>
import jax
import jax.numpy as jnp
from jax.experimental import pallas as pl
from jax.experimental.pallas import tpu as pltpu


# ----------------------------- config (cf) ----------------------------------
class cf:
    num_nodes = 16
    seq_len = 8
    pred_len = 4
    embedding_dim = 8
    lstm_outdim = 32               # LSTM hidden size
    encoder_output_dim = 32
    feat_dim = 8                   # GCN input feature dim per node
    gcn_hidden = 16
    gcn_out = 24                   # gcn_out + embedding_dim == LSTM input dim
    lstm_indim = gcn_out + embedding_dim          # 32
    encoder_input = seq_len * lstm_outdim         # 256
    decoder_output = num_nodes * pred_len         # 64


# --------------------------- fused Pallas kernel ------------------------------
def stegcn_kernel(adjb_ref, feat_ref, emb_ref,
                  gw1_ref, gb1_ref, gw2_ref, gb2_ref,
                  wih1g_ref, wih1e_ref, whh1_ref, b1_ref,
                  w2_ref, b2_ref,
                  encw_ref, encb_ref,
                  decw_enc_ref, decw_emb_ref, decb_ref,
                  out_ref,
                  gates_scr, h2_scr):
    TN = feat_ref.shape[0]              # T * N = 128
    N = h2_scr.shape[0]                 # 16
    T = TN // N                         # 8
    H = whh1_ref.shape[0]               # 32
    GH = gw1_ref.shape[1]
    G = gw2_ref.shape[1]

    def mm(a, b):
        return jnp.dot(a, b, preferred_element_type=jnp.float32)

    # ---- phase 1: GCN + LSTM-1 input projection, batched over all T steps ----
    # adjb = kron(I_T, adj) (prepared in wrapper) applies adj block-wise per t.
    adjb = adjb_ref[...]
    xf = feat_ref[...]                                   # (T*N, F)
    ef = emb_ref[...]                                    # (T*N, E)

    gb1 = jnp.broadcast_to(gb1_ref[...], (TN, GH))
    gb2 = jnp.broadcast_to(gb2_ref[...], (TN, G))
    b1 = jnp.broadcast_to(b1_ref[...], (TN, 4 * H))

    h = jnp.maximum(mm(adjb, mm(xf, gw1_ref[...])) + gb1, 0.0)   # (T*N, GH)
    g = mm(adjb, mm(h, gw2_ref[...])) + gb2                      # (T*N, G)
    # concat-free [gcn_out | emb] @ wih1 (+ bias); i/f/o columns already 0.5-scaled
    gates_scr[...] = mm(g, wih1g_ref[...]) + mm(ef, wih1e_ref[...]) + b1

    # ---- phase 2: 2-layer LSTM recurrence (serial path kept minimal) ---------
    whh1 = whh1_ref[...]
    w2 = w2_ref[...]                                     # stacked [wih2; whh2]
    b2 = jnp.broadcast_to(b2_ref[...], (N, 4 * H))

    def gates_dense(pre):
        # i/f/o pre-activations were pre-scaled by 0.5 ->
        # sigmoid(x) == 0.5 * (tanh(x/2) + 1); one lane-dense tanh + VPU fixups.
        t = jnp.tanh(pre)                                # (N, 4H) single EUP pass
        i = 0.5 * (t[:, 0 * H:1 * H] + 1.0)
        f = 0.5 * (t[:, 1 * H:2 * H] + 1.0)
        g_ = t[:, 2 * H:3 * H]
        o = 0.5 * (t[:, 3 * H:4 * H] + 1.0)
        return i, f, g_, o

    zeros_nh = jnp.zeros((N, H), jnp.float32)
    h1, c1, h2, c2 = zeros_nh, zeros_nh, zeros_nh, zeros_nh

    for t in range(T):                                   # static unroll, T=8
        # layer 1: input projection precomputed -> only h1 @ whh1 on the path
        gx = gates_scr[t * N:(t + 1) * N, :]             # (N, 4H) from VMEM
        i1, f1, g1, o1 = gates_dense(gx + mm(h1, whh1))
        c1 = f1 * c1 + i1 * g1
        h1 = o1 * jnp.tanh(c1)
        # layer 2: single fused matmul against stacked [wih2; whh2]
        hcat = jnp.concatenate([h1, h2], axis=1)         # (N, 2H)
        i2, f2, g2, o2 = gates_dense(mm(hcat, w2) + b2)
        c2 = f2 * c2 + i2 * g2
        h2 = o2 * jnp.tanh(c2)
        # stash h2_t; encoder matmul happens once, after the loop
        h2_scr[:, t * H:(t + 1) * H] = h2

    # ---- phase 3: encoder (single matmul) + node pooling + decoder -----------
    enc_out = mm(h2_scr[...], encw_ref[...]) + encb_ref[...]       # (N, EO)
    pooled_enc = jnp.mean(enc_out, axis=0, keepdims=True)          # (1, EO)
    pooled_emb = jnp.mean(ef[(T - 1) * N:, :], axis=0, keepdims=True)  # (1, E)
    out_ref[...] = (mm(pooled_enc, decw_enc_ref[...])
                    + mm(pooled_emb, decw_emb_ref[...])
                    + decb_ref[...])                     # (1, N*pred_len)


# ------------------------------ STEGCN forward --------------------------------
def _gate_prescale(w, H):
    # scale i, f, o gate columns by 0.5 (gate order i, f, g, o) so that a single
    # lane-dense tanh in the kernel recovers all sigmoids as 0.5*(tanh+1).
    scale = jnp.concatenate([jnp.full((1, H), 0.5, jnp.float32),
                             jnp.full((1, H), 0.5, jnp.float32),
                             jnp.ones((1, H), jnp.float32),
                             jnp.full((1, H), 0.5, jnp.float32)], axis=1)
    return (w * scale).astype(jnp.float32)


def stegcn_forward(params, adj, features, embedding_inputs):
    p = params
    T, N, F = features.shape
    E = embedding_inputs.shape[-1]
    H = cf.lstm_outdim
    G = cf.gcn_out
    EO = cf.encoder_output_dim

    # gate-column prescale (review #3)
    wih1 = _gate_prescale(p["wih1"], H)
    whh1 = _gate_prescale(p["whh1"], H)
    b1 = _gate_prescale(p["b1"], H)
    w2_stack = _gate_prescale(jnp.concatenate([p["wih2"], p["whh2"]], axis=0), H)
    b2 = _gate_prescale(p["b2"], H)

    # concat-free weight splits: concat(a,b) @ W == a @ W[:G] + b @ W[G:]
    wih1_g, wih1_e = wih1[:G], wih1[G:]
    dec_w_enc, dec_w_emb = p["dec_w"][:EO], p["dec_w"][EO:]

    # batched phase-1 operands (review #1): block adjacency + flattened sequences
    adj_block = jnp.kron(jnp.eye(T, dtype=jnp.float32), adj)    # (T*N, T*N)
    feat2d = features.reshape(T * N, F)
    emb2d = embedding_inputs.reshape(T * N, E)

    args = (adj_block, feat2d, emb2d,
            p["gcn_w1"], p["gcn_b1"], p["gcn_w2"], p["gcn_b2"],
            wih1_g, wih1_e, whh1, b1,
            w2_stack, b2,
            p["enc_w"], p["enc_b"],
            dec_w_enc, dec_w_emb, p["dec_b"])

    def full_spec(a):
        return pl.BlockSpec(a.shape, lambda: (0,) * a.ndim)

    # No batch dimension -> single grid=() invocation on one TensorCore is the
    # right structure; everything (<0.3 MiB) stays VMEM-resident.
    out = pl.pallas_call(
        stegcn_kernel,
        out_shape=jax.ShapeDtypeStruct((1, cf.decoder_output), jnp.float32),
        in_specs=[full_spec(a) for a in args],
        out_specs=pl.BlockSpec((1, cf.decoder_output), lambda: (0, 0)),
        scratch_shapes=[pltpu.VMEM((T * N, 4 * H), jnp.float32),   # gates_x
                        pltpu.VMEM((N, T * H), jnp.float32)],      # stacked h2
    )(*args)
    return out.reshape(cf.pred_len, cf.num_nodes)


# ------------------------------ params / inputs -------------------------------
def init_params(key):
    ks = jax.random.split(key, 12)
    H, D, G = cf.lstm_outdim, cf.lstm_indim, cf.gcn_out
    n = lambda k, s, sc=0.1: (sc * jax.random.normal(k, s)).astype(jnp.float32)
    return {
        # GCN
        "gcn_w1": n(ks[0], (cf.feat_dim, cf.gcn_hidden)),
        "gcn_b1": n(ks[1], (1, cf.gcn_hidden)),
        "gcn_w2": n(ks[2], (cf.gcn_hidden, G)),
        "gcn_b2": n(ks[3], (1, G)),
        # LSTM layer 1 / 2 (gate order i, f, g, o; b = b_ih + b_hh)
        "wih1": n(ks[4], (D, 4 * H)),
        "whh1": n(ks[5], (H, 4 * H)),
        "b1":   n(ks[6], (1, 4 * H)),
        "wih2": n(ks[7], (H, 4 * H)),
        "whh2": n(ks[8], (H, 4 * H)),
        "b2":   n(ks[9], (1, 4 * H)),
        # encoder / decoder Linears
        "enc_w": n(ks[10], (cf.encoder_input, cf.encoder_output_dim)),
        "enc_b": jnp.zeros((1, cf.encoder_output_dim), jnp.float32),
        "dec_w": n(ks[11], (cf.encoder_output_dim + cf.embedding_dim,
                            cf.decoder_output)),
        "dec_b": jnp.zeros((1, cf.decoder_output), jnp.float32),
    }


if __name__ == "__main__":
    key = jax.random.PRNGKey(0)
    k_adj, k_feat, k_emb, k_par = jax.random.split(key, 4)

    # row-normalized random adjacency with self loops
    a = (jax.random.uniform(k_adj, (cf.num_nodes, cf.num_nodes)) > 0.5)
    a = a.astype(jnp.float32) + jnp.eye(cf.num_nodes, dtype=jnp.float32)
    adj = a / jnp.sum(a, axis=-1, keepdims=True)

    features = jax.random.normal(
        k_feat, (cf.seq_len, cf.num_nodes, cf.feat_dim), jnp.float32)
    embedding_inputs = jax.random.normal(
        k_emb, (cf.seq_len, cf.num_nodes, cf.embedding_dim), jnp.float32)

    params = init_params(k_par)

    fwd = jax.jit(stegcn_forward)
    out = fwd(params, adj, features, embedding_inputs)
    out = jax.block_until_ready(out)
    assert out.shape == (cf.pred_len, cf.num_nodes)
    assert jnp.all(jnp.isfinite(out))
    print("KERNEL_OK")
</pallas_src>

<mosaic_0001>
module attributes {stable_mosaic.version = 11 : i64} {
  func.func @stegcn_kernel(%arg0: memref<128x128xf32, #tpu.memory_space<vmem>>, %arg1: memref<128x8xf32, #tpu.memory_space<vmem>>, %arg2: memref<128x8xf32, #tpu.memory_space<vmem>>, %arg3: memref<8x16xf32, #tpu.memory_space<vmem>>, %arg4: memref<1x16xf32, #tpu.memory_space<vmem>>, %arg5: memref<16x24xf32, #tpu.memory_space<vmem>>, %arg6: memref<1x24xf32, #tpu.memory_space<vmem>>, %arg7: memref<24x128xf32, #tpu.memory_space<vmem>>, %arg8: memref<8x128xf32, #tpu.memory_space<vmem>>, %arg9: memref<32x128xf32, #tpu.memory_space<vmem>>, %arg10: memref<1x128xf32, #tpu.memory_space<vmem>>, %arg11: memref<64x128xf32, #tpu.memory_space<vmem>>, %arg12: memref<1x128xf32, #tpu.memory_space<vmem>>, %arg13: memref<256x32xf32, #tpu.memory_space<vmem>>, %arg14: memref<1x32xf32, #tpu.memory_space<vmem>>, %arg15: memref<32x64xf32, #tpu.memory_space<vmem>>, %arg16: memref<8x64xf32, #tpu.memory_space<vmem>>, %arg17: memref<1x64xf32, #tpu.memory_space<vmem>>, %arg18: memref<1x64xf32, #tpu.memory_space<vmem>>, %arg19: memref<128x128xf32, #tpu.memory_space<vmem>>, %arg20: memref<16x256xf32, #tpu.memory_space<vmem>>) attributes {dimension_semantics = [], scalar_prefetch = 0 : i64, scratch_operands = 2 : i64, tpu.core_type = #tpu.core_type<tc>} {
    %c0 = arith.constant 0 : index
    %c0_0 = arith.constant 0 : index
    %0 = vector.load %arg0[%c0, %c0_0] : memref<128x128xf32, #tpu.memory_space<vmem>>, vector<128x128xf32>
    %c0_1 = arith.constant 0 : index
    %c0_2 = arith.constant 0 : index
    %1 = vector.load %arg1[%c0_1, %c0_2] : memref<128x8xf32, #tpu.memory_space<vmem>>, vector<128x8xf32>
    %c0_3 = arith.constant 0 : index
    %c0_4 = arith.constant 0 : index
    %2 = vector.load %arg2[%c0_3, %c0_4] : memref<128x8xf32, #tpu.memory_space<vmem>>, vector<128x8xf32>
    %c0_5 = arith.constant 0 : index
    %c0_6 = arith.constant 0 : index
    %3 = vector.load %arg4[%c0_5, %c0_6] : memref<1x16xf32, #tpu.memory_space<vmem>>, vector<1x16xf32>
    %4 = vector.shape_cast %3 : vector<1x16xf32> to vector<1x16xf32>
    %5 = vector.broadcast %4 : vector<1x16xf32> to vector<128x16xf32>
    %c0_7 = arith.constant 0 : index
    %c0_8 = arith.constant 0 : index
    %6 = vector.load %arg6[%c0_7, %c0_8] : memref<1x24xf32, #tpu.memory_space<vmem>>, vector<1x24xf32>
    %7 = vector.shape_cast %6 : vector<1x24xf32> to vector<1x24xf32>
    %8 = vector.broadcast %7 : vector<1x24xf32> to vector<128x24xf32>
    %c0_9 = arith.constant 0 : index
    %c0_10 = arith.constant 0 : index
    %9 = vector.load %arg10[%c0_9, %c0_10] : memref<1x128xf32, #tpu.memory_space<vmem>>, vector<1x128xf32>
    %10 = vector.shape_cast %9 : vector<1x128xf32> to vector<1x128xf32>
    %11 = vector.broadcast %10 : vector<1x128xf32> to vector<128x128xf32>
    %c0_11 = arith.constant 0 : index
    %c0_12 = arith.constant 0 : index
    %12 = vector.load %arg3[%c0_11, %c0_12] : memref<8x16xf32, #tpu.memory_space<vmem>>, vector<8x16xf32>
    %cst = arith.constant dense<0.000000e+00> : vector<128x16xf32>
    %13 = tpu.matmul %1, %12, %cst {dimension_numbers = #tpu.dot_dimension_numbers<[1], [0], [0], [1], [0, 0, 1, 1], [], []>} : vector<128x8xf32>, vector<8x16xf32>, vector<128x16xf32> -> vector<128x16xf32>
    %cst_13 = arith.constant dense<0.000000e+00> : vector<128x16xf32>
    %14 = tpu.matmul %0, %13, %cst_13 {dimension_numbers = #tpu.dot_dimension_numbers<[1], [0], [0], [1], [0, 0, 1, 1], [], []>} : vector<128x128xf32>, vector<128x16xf32>, vector<128x16xf32> -> vector<128x16xf32>
    %15 = arith.addf %14, %5 : vector<128x16xf32>
    %cst_14 = arith.constant 0.000000e+00 : f32
    %16 = vector.broadcast %cst_14 : f32 to vector<128x16xf32>
    %17 = arith.maximumf %15, %16 : vector<128x16xf32>
    %c0_15 = arith.constant 0 : index
    %c0_16 = arith.constant 0 : index
    %18 = vector.load %arg5[%c0_15, %c0_16] : memref<16x24xf32, #tpu.memory_space<vmem>>, vector<16x24xf32>
    %cst_17 = arith.constant dense<0.000000e+00> : vector<128x24xf32>
    %19 = tpu.matmul %17, %18, %cst_17 {dimension_numbers = #tpu.dot_dimension_numbers<[1], [0], [0], [1], [0, 0, 1, 1], [], []>} : vector<128x16xf32>, vector<16x24xf32>, vector<128x24xf32> -> vector<128x24xf32>
    %cst_18 = arith.constant dense<0.000000e+00> : vector<128x24xf32>
    %20 = tpu.matmul %0, %19, %cst_18 {dimension_numbers = #tpu.dot_dimension_numbers<[1], [0], [0], [1], [0, 0, 1, 1], [], []>} : vector<128x128xf32>, vector<128x24xf32>, vector<128x24xf32> -> vector<128x24xf32>
    %21 = arith.addf %20, %8 : vector<128x24xf32>
    %c0_19 = arith.constant 0 : index
    %c0_20 = arith.constant 0 : index
    %22 = vector.load %arg7[%c0_19, %c0_20] : memref<24x128xf32, #tpu.memory_space<vmem>>, vector<24x128xf32>
    %cst_21 = arith.constant dense<0.000000e+00> : vector<128x128xf32>
    %23 = tpu.matmul %21, %22, %cst_21 {dimension_numbers = #tpu.dot_dimension_numbers<[1], [0], [0], [1], [0, 0, 1, 1], [], []>} : vector<128x24xf32>, vector<24x128xf32>, vector<128x128xf32> -> vector<128x128xf32>
    %c0_22 = arith.constant 0 : index
    %c0_23 = arith.constant 0 : index
    %24 = vector.load %arg8[%c0_22, %c0_23] : memref<8x128xf32, #tpu.memory_space<vmem>>, vector<8x128xf32>
    %cst_24 = arith.constant dense<0.000000e+00> : vector<128x128xf32>
    %25 = tpu.matmul %2, %24, %cst_24 {dimension_numbers = #tpu.dot_dimension_numbers<[1], [0], [0], [1], [0, 0, 1, 1], [], []>} : vector<128x8xf32>, vector<8x128xf32>, vector<128x128xf32> -> vector<128x128xf32>
    %26 = arith.addf %23, %25 : vector<128x128xf32>
    %27 = arith.addf %26, %11 : vector<128x128xf32>
    %c0_25 = arith.constant 0 : index
    %c0_26 = arith.constant 0 : index
    %28 = vector.load %arg19[%c0_25, %c0_26] : memref<128x128xf32, #tpu.memory_space<vmem>>, vector<128x128xf32>
    tpu.vector_store %arg19[%c0_25, %c0_26], %27 {strides = array<i32>} : memref<128x128xf32, #tpu.memory_space<vmem>>, vector<128x128xf32>,
    %c0_27 = arith.constant 0 : index
    %c0_28 = arith.constant 0 : index
    %29 = vector.load %arg9[%c0_27, %c0_28] : memref<32x128xf32, #tpu.memory_space<vmem>>, vector<32x128xf32>
    %c0_29 = arith.constant 0 : index
    %c0_30 = arith.constant 0 : index
    %30 = vector.load %arg11[%c0_29, %c0_30] : memref<64x128xf32, #tpu.memory_space<vmem>>, vector<64x128xf32>
    %c0_31 = arith.constant 0 : index
    %c0_32 = arith.constant 0 : index
    %31 = vector.load %arg12[%c0_31, %c0_32] : memref<1x128xf32, #tpu.memory_space<vmem>>, vector<1x128xf32>
    %32 = vector.shape_cast %31 : vector<1x128xf32> to vector<1x128xf32>
    %33 = vector.broadcast %32 : vector<1x128xf32> to vector<16x128xf32>
    %cst_33 = arith.constant 0.000000e+00 : f32
    %34 = vector.broadcast %cst_33 : f32 to vector<16x32xf32>
    %c0_34 = arith.constant 0 : index
    %c0_35 = arith.constant 0 : index
    %35 = vector.load %arg19[%c0_34, %c0_35] : memref<128x128xf32, #tpu.memory_space<vmem>>, vector<16x128xf32>
    %cst_36 = arith.constant dense<0.000000e+00> : vector<16x128xf32>
    %36 = tpu.matmul %34, %29, %cst_36 {dimension_numbers = #tpu.dot_dimension_numbers<[1], [0], [0], [1], [0, 0, 1, 1], [], []>} : vector<16x32xf32>, vector<32x128xf32>, vector<16x128xf32> -> vector<16x128xf32>
    %37 = arith.addf %35, %36 : vector<16x128xf32>
    %38 = math.tanh %37 : vector<16x128xf32>
    %39 = vector.extract_strided_slice %38 {offsets = [0, 0], sizes = [16, 32], strides = [1, 1]} : vector<16x128xf32> to vector<16x32xf32>
    %cst_37 = arith.constant 1.000000e+00 : f32
    %40 = vector.broadcast %cst_37 : f32 to vector<16x32xf32>
    %41 = arith.addf %39, %40 : vector<16x32xf32>
    %cst_38 = arith.constant 5.000000e-01 : f32
    %42 = vector.broadcast %cst_38 : f32 to vector<16x32xf32>
    %43 = arith.mulf %42, %41 : vector<16x32xf32>
    %44 = vector.extract_strided_slice %38 {offsets = [0, 32], sizes = [16, 32], strides = [1, 1]} : vector<16x128xf32> to vector<16x32xf32>
    %cst_39 = arith.constant 1.000000e+00 : f32
    %45 = vector.broadcast %cst_39 : f32 to vector<16x32xf32>
    %46 = arith.addf %44, %45 : vector<16x32xf32>
    %cst_40 = arith.constant 5.000000e-01 : f32
    %47 = vector.broadcast %cst_40 : f32 to vector<16x32xf32>
    %48 = arith.mulf %47, %46 : vector<16x32xf32>
    %49 = vector.extract_strided_slice %38 {offsets = [0, 64], sizes = [16, 32], strides = [1, 1]} : vector<16x128xf32> to vector<16x32xf32>
    %50 = vector.extract_strided_slice %38 {offsets = [0, 96], sizes = [16, 32], strides = [1, 1]} : vector<16x128xf32> to vector<16x32xf32>
    %cst_41 = arith.constant 1.000000e+00 : f32
    %51 = vector.broadcast %cst_41 : f32 to vector<16x32xf32>
    %52 = arith.addf %50, %51 : vector<16x32xf32>
    %cst_42 = arith.constant 5.000000e-01 : f32
    %53 = vector.broadcast %cst_42 : f32 to vector<16x32xf32>
    %54 = arith.mulf %53, %52 : vector<16x32xf32>
    %55 = arith.mulf %48, %34 : vector<16x32xf32>
    %56 = arith.mulf %43, %49 : vector<16x32xf32>
    %57 = arith.addf %55, %56 : vector<16x32xf32>
    %58 = math.tanh %57 : vector<16x32xf32>
    %59 = arith.mulf %54, %58 : vector<16x32xf32>
    %60 = tpu.concatenate %59, %34 in 1 : vector<16x32xf32>, vector<16x32xf32> -> vector<16x64xf32>
    %cst_43 = arith.constant dense<0.000000e+00> : vector<16x128xf32>
    %61 = tpu.matmul %60, %30, %cst_43 {dimension_numbers = #tpu.dot_dimension_numbers<[1], [0], [0], [1], [0, 0, 1, 1], [], []>} : vector<16x64xf32>, vector<64x128xf32>, vector<16x128xf32> -> vector<16x128xf32>
    %62 = arith.addf %61, %33 : vector<16x128xf32>
    %63 = math.tanh %62 : vector<16x128xf32>
    %64 = vector.extract_strided_slice %63 {offsets = [0, 0], sizes = [16, 32], strides = [1, 1]} : vector<16x128xf32> to vector<16x32xf32>
    %cst_44 = arith.constant 1.000000e+00 : f32
    %65 = vector.broadcast %cst_44 : f32 to vector<16x32xf32>
    %66 = arith.addf %64, %65 : vector<16x32xf32>
    %cst_45 = arith.constant 5.000000e-01 : f32
    %67 = vector.broadcast %cst_45 : f32 to vector<16x32xf32>
    %68 = arith.mulf %67, %66 : vector<16x32xf32>
    %69 = vector.extract_strided_slice %63 {offsets = [0, 32], sizes = [16, 32], strides = [1, 1]} : vector<16x128xf32> to vector<16x32xf32>
    %cst_46 = arith.constant 1.000000e+00 : f32
    %70 = vector.broadcast %cst_46 : f32 to vector<16x32xf32>
    %71 = arith.addf %69, %70 : vector<16x32xf32>
    %cst_47 = arith.constant 5.000000e-01 : f32
    %72 = vector.broadcast %cst_47 : f32 to vector<16x32xf32>
    %73 = arith.mulf %72, %71 : vector<16x32xf32>
    %74 = vector.extract_strided_slice %63 {offsets = [0, 64], sizes = [16, 32], strides = [1, 1]} : vector<16x128xf32> to vector<16x32xf32>
    %75 = vector.extract_strided_slice %63 {offsets = [0, 96], sizes = [16, 32], strides = [1, 1]} : vector<16x128xf32> to vector<16x32xf32>
    %cst_48 = arith.constant 1.000000e+00 : f32
    %76 = vector.broadcast %cst_48 : f32 to vector<16x32xf32>
    %77 = arith.addf %75, %76 : vector<16x32xf32>
    %cst_49 = arith.constant 5.000000e-01 : f32
    %78 = vector.broadcast %cst_49 : f32 to vector<16x32xf32>
    %79 = arith.mulf %78, %77 : vector<16x32xf32>
    %80 = arith.mulf %73, %34 : vector<16x32xf32>
    %81 = arith.mulf %68, %74 : vector<16x32xf32>
    %82 = arith.addf %80, %81 : vector<16x32xf32>
    %83 = math.tanh %82 : vector<16x32xf32>
    %84 = arith.mulf %79, %83 : vector<16x32xf32>
    %c0_50 = arith.constant 0 : index
    %c0_51 = arith.constant 0 : index
    %85 = vector.load %arg20[%c0_50, %c0_51] : memref<16x256xf32, #tpu.memory_space<vmem>>, vector<16x32xf32>
    tpu.vector_store %arg20[%c0_50, %c0_51], %84 {strides = array<i32>} : memref<16x256xf32, #tpu.memory_space<vmem>>, vector<16x32xf32>,
    %c16 = arith.constant 16 : index
    %c0_52 = arith.constant 0 : index
    %86 = vector.load %arg19[%c16, %c0_52] : memref<128x128xf32, #tpu.memory_space<vmem>>, vector<16x128xf32>
    %cst_53 = arith.constant dense<0.000000e+00> : vector<16x128xf32>
    %87 = tpu.matmul %59, %29, %cst_53 {dimension_numbers = #tpu.dot_dimension_numbers<[1], [0], [0], [1], [0, 0, 1, 1], [], []>} : vector<16x32xf32>, vector<32x128xf32>, vector<16x128xf32> -> vector<16x128xf32>
    %88 = arith.addf %86, %87 : vector<16x128xf32>
    %89 = math.tanh %88 : vector<16x128xf32>
    %90 = vector.extract_strided_slice %89 {offsets = [0, 0], sizes = [16, 32], strides = [1, 1]} : vector<16x128xf32> to vector<16x32xf32>
    %cst_54 = arith.constant 1.000000e+00 : f32
    %91 = vector.broadcast %cst_54 : f32 to vector<16x32xf32>
    %92 = arith.addf %90, %91 : vector<16x32xf32>
    %cst_55 = arith.constant 5.000000e-01 : f32
    %93 = vector.broadcast %cst_55 : f32 to vector<16x32xf32>
    %94 = arith.mulf %93, %92 : vector<16x32xf32>
    %95 = vector.extract_strided_slice %89 {offsets = [0, 32], sizes = [16, 32], strides = [1, 1]} : vector<16x128xf32> to vector<16x32xf32>
    %cst_56 = arith.constant 1.000000e+00 : f32
    %96 = vector.broadcast %cst_56 : f32 to vector<16x32xf32>
    %97 = arith.addf %95, %96 : vector<16x32xf32>
    %cst_57 = arith.constant 5.000000e-01 : f32
    %98 = vector.broadcast %cst_57 : f32 to vector<16x32xf32>
    %99 = arith.mulf %98, %97 : vector<16x32xf32>
    %100 = vector.extract_strided_slice %89 {offsets = [0, 64], sizes = [16, 32], strides = [1, 1]} : vector<16x128xf32> to vector<16x32xf32>
    %101 = vector.extract_strided_slice %89 {offsets = [0, 96], sizes = [16, 32], strides = [1, 1]} : vector<16x128xf32> to vector<16x32xf32>
    %cst_58 = arith.constant 1.000000e+00 : f32
    %102 = vector.broadcast %cst_58 : f32 to vector<16x32xf32>
    %103 = arith.addf %101, %102 : vector<16x32xf32>
    %cst_59 = arith.constant 5.000000e-01 : f32
    %104 = vector.broadcast %cst_59 : f32 to vector<16x32xf32>
    %105 = arith.mulf %104, %103 : vector<16x32xf32>
    %106 = arith.mulf %99, %57 : vector<16x32xf32>
    %107 = arith.mulf %94, %100 : vector<16x32xf32>
    %108 = arith.addf %106, %107 : vector<16x32xf32>
    %109 = math.tanh %108 : vector<16x32xf32>
    %110 = arith.mulf %105, %109 : vector<16x32xf32>
    %111 = tpu.concatenate %110, %84 in 1 : vector<16x32xf32>, vector<16x32xf32> -> vector<16x64xf32>
    %cst_60 = arith.constant dense<0.000000e+00> : vector<16x128xf32>
    %112 = tpu.matmul %111, %30, %cst_60 {dimension_numbers = #tpu.dot_dimension_numbers<[1], [0], [0], [1], [0, 0, 1, 1], [], []>} : vector<16x64xf32>, vector<64x128xf32>, vector<16x128xf32> -> vector<16x128xf32>
    %113 = arith.addf %112, %33 : vector<16x128xf32>
    %114 = math.tanh %113 : vector<16x128xf32>
    %115 = vector.extract_strided_slice %114 {offsets = [0, 0], sizes = [16, 32], strides = [1, 1]} : vector<16x128xf32> to vector<16x32xf32>
    %cst_61 = arith.constant 1.000000e+00 : f32
    %116 = vector.broadcast %cst_61 : f32 to vector<16x32xf32>
    %117 = arith.addf %115, %116 : vector<16x32xf32>
    %cst_62 = arith.constant 5.000000e-01 : f32
    %118 = vector.broadcast %cst_62 : f32 to vector<16x32xf32>
    %119 = arith.mulf %118, %117 : vector<16x32xf32>
    %120 = vector.extract_strided_slice %114 {offsets = [0, 32], sizes = [16, 32], strides = [1, 1]} : vector<16x128xf32> to vector<16x32xf32>
    %cst_63 = arith.constant 1.000000e+00 : f32
    %121 = vector.broadcast %cst_63 : f32 to vector<16x32xf32>
    %122 = arith.addf %120, %121 : vector<16x32xf32>
    %cst_64 = arith.constant 5.000000e-01 : f32
    %123 = vector.broadcast %cst_64 : f32 to vector<16x32xf32>
    %124 = arith.mulf %123, %122 : vector<16x32xf32>
    %125 = vector.extract_strided_slice %114 {offsets = [0, 64], sizes = [16, 32], strides = [1, 1]} : vector<16x128xf32> to vector<16x32xf32>
    %126 = vector.extract_strided_slice %114 {offsets = [0, 96], sizes = [16, 32], strides = [1, 1]} : vector<16x128xf32> to vector<16x32xf32>
    %cst_65 = arith.constant 1.000000e+00 : f32
    %127 = vector.broadcast %cst_65 : f32 to vector<16x32xf32>
    %128 = arith.addf %126, %127 : vector<16x32xf32>
    %cst_66 = arith.constant 5.000000e-01 : f32
    %129 = vector.broadcast %cst_66 : f32 to vector<16x32xf32>
    %130 = arith.mulf %129, %128 : vector<16x32xf32>
    %131 = arith.mulf %124, %82 : vector<16x32xf32>
    %132 = arith.mulf %119, %125 : vector<16x32xf32>
    %133 = arith.addf %131, %132 : vector<16x32xf32>
    %134 = math.tanh %133 : vector<16x32xf32>
    %135 = arith.mulf %130, %134 : vector<16x32xf32>
    %c0_67 = arith.constant 0 : index
    %c32 = arith.constant 32 : index
    %136 = vector.load %arg20[%c0_67, %c32] : memref<16x256xf32, #tpu.memory_space<vmem>>, vector<16x32xf32>
    tpu.vector_store %arg20[%c0_67, %c32], %135 {strides = array<i32>} : memref<16x256xf32, #tpu.memory_space<vmem>>, vector<16x32xf32>,
    %c32_68 = arith.constant 32 : index
    %c0_69 = arith.constant 0 : index
    %137 = vector.load %arg19[%c32_68, %c0_69] : memref<128x128xf32, #tpu.memory_space<vmem>>, vector<16x128xf32>
    %cst_70 = arith.constant dense<0.000000e+00> : vector<16x128xf32>
    %138 = tpu.matmul %110, %29, %cst_70 {dimension_numbers = #tpu.dot_dimension_numbers<[1], [0], [0], [1], [0, 0, 1, 1], [], []>} : vector<16x32xf32>, vector<32x128xf32>, vector<16x128xf32> -> vector<16x128xf32>
    %139 = arith.addf %137, %138 : vector<16x128xf32>
    %140 = math.tanh %139 : vector<16x128xf32>
    %141 = vector.extract_strided_slice %140 {offsets = [0, 0], sizes = [16, 32], strides = [1, 1]} : vector<16x128xf32> to vector<16x32xf32>
    %cst_71 = arith.constant 1.000000e+00 : f32
    %142 = vector.broadcast %cst_71 : f32 to vector<16x32xf32>
    %143 = arith.addf %141, %142 : vector<16x32xf32>
    %cst_72 = arith.constant 5.000000e-01 : f32
    %144 = vector.broadcast %cst_72 : f32 to vector<16x32xf32>
    %145 = arith.mulf %144, %143 : vector<16x32xf32>
    %146 = vector.extract_strided_slice %140 {offsets = [0, 32], sizes = [16, 32], strides = [1, 1]} : vector<16x128xf32> to vector<16x32xf32>
    %cst_73 = arith.constant 1.000000e+00 : f32
    %147 = vector.broadcast %cst_73 : f32 to vector<16x32xf32>
    %148 = arith.addf %146, %147 : vector<16x32xf32>
    %cst_74 = arith.constant 5.000000e-01 : f32
    %149 = vector.broadcast %cst_74 : f32 to vector<16x32xf32>
    %150 = arith.mulf %149, %148 : vector<16x32xf32>
    %151 = vector.extract_strided_slice %140 {offsets = [0, 64], sizes = [16, 32], strides = [1, 1]} : vector<16x128xf32> to vector<16x32xf32>
    %152 = vector.extract_strided_slice %140 {offsets = [0, 96], sizes = [16, 32], strides = [1, 1]} : vector<16x128xf32> to vector<16x32xf32>
    %cst_75 = arith.constant 1.000000e+00 : f32
    %153 = vector.broadcast %cst_75 : f32 to vector<16x32xf32>
    %154 = arith.addf %152, %153 : vector<16x32xf32>
    %cst_76 = arith.constant 5.000000e-01 : f32
    %155 = vector.broadcast %cst_76 : f32 to vector<16x32xf32>
    %156 = arith.mulf %155, %154 : vector<16x32xf32>
    %157 = arith.mulf %150, %108 : vector<16x32xf32>
    %158 = arith.mulf %145, %151 : vector<16x32xf32>
    %159 = arith.addf %157, %158 : vector<16x32xf32>
    %160 = math.tanh %159 : vector<16x32xf32>
    %161 = arith.mulf %156, %160 : vector<16x32xf32>
    %162 = tpu.concatenate %161, %135 in 1 : vector<16x32xf32>, vector<16x32xf32> -> vector<16x64xf32>
    %cst_77 = arith.constant dense<0.000000e+00> : vector<16x128xf32>
    %163 = tpu.matmul %162, %30, %cst_77 {dimension_numbers = #tpu.dot_dimension_numbers<[1], [0], [0], [1], [0, 0, 1, 1], [], []>} : vector<16x64xf32>, vector<64x128xf32>, vector<16x128xf32> -> vector<16x128xf32>
    %164 = arith.addf %163, %33 : vector<16x128xf32>
    %165 = math.tanh %164 : vector<16x128xf32>
    %166 = vector.extract_strided_slice %165 {offsets = [0, 0], sizes = [16, 32], strides = [1, 1]} : vector<16x128xf32> to vector<16x32xf32>
    %cst_78 = arith.constant 1.000000e+00 : f32
    %167 = vector.broadcast %cst_78 : f32 to vector<16x32xf32>
    %168 = arith.addf %166, %167 : vector<16x32xf32>
    %cst_79 = arith.constant 5.000000e-01 : f32
    %169 = vector.broadcast %cst_79 : f32 to vector<16x32xf32>
    %170 = arith.mulf %169, %168 : vector<16x32xf32>
    %171 = vector.extract_strided_slice %165 {offsets = [0, 32], sizes = [16, 32], strides = [1, 1]} : vector<16x128xf32> to vector<16x32xf32>
    %cst_80 = arith.constant 1.000000e+00 : f32
    %172 = vector.broadcast %cst_80 : f32 to vector<16x32xf32>
    %173 = arith.addf %171, %172 : vector<16x32xf32>
    %cst_81 = arith.constant 5.000000e-01 : f32
    %174 = vector.broadcast %cst_81 : f32 to vector<16x32xf32>
    %175 = arith.mulf %174, %173 : vector<16x32xf32>
    %176 = vector.extract_strided_slice %165 {offsets = [0, 64], sizes = [16, 32], strides = [1, 1]} : vector<16x128xf32> to vector<16x32xf32>
    %177 = vector.extract_strided_slice %165 {offsets = [0, 96], sizes = [16, 32], strides = [1, 1]} : vector<16x128xf32> to vector<16x32xf32>
    %cst_82 = arith.constant 1.000000e+00 : f32
    %178 = vector.broadcast %cst_82 : f32 to vector<16x32xf32>
    %179 = arith.addf %177, %178 : vector<16x32xf32>
    %cst_83 = arith.constant 5.000000e-01 : f32
    %180 = vector.broadcast %cst_83 : f32 to vector<16x32xf32>
    %181 = arith.mulf %180, %179 : vector<16x32xf32>
    %182 = arith.mulf %175, %133 : vector<16x32xf32>
    %183 = arith.mulf %170, %176 : vector<16x32xf32>
    %184 = arith.addf %182, %183 : vector<16x32xf32>
    %185 = math.tanh %184 : vector<16x32xf32>
    %186 = arith.mulf %181, %185 : vector<16x32xf32>
    %c0_84 = arith.constant 0 : index
    %c64 = arith.constant 64 : index
    %187 = vector.load %arg20[%c0_84, %c64] : memref<16x256xf32, #tpu.memory_space<vmem>>, vector<16x32xf32>
    tpu.vector_store %arg20[%c0_84, %c64], %186 {strides = array<i32>} : memref<16x256xf32, #tpu.memory_space<vmem>>, vector<16x32xf32>,
    %c48 = arith.constant 48 : index
    %c0_85 = arith.constant 0 : index
    %188 = vector.load %arg19[%c48, %c0_85] : memref<128x128xf32, #tpu.memory_space<vmem>>, vector<16x128xf32>
    %cst_86 = arith.constant dense<0.000000e+00> : vector<16x128xf32>
    %189 = tpu.matmul %161, %29, %cst_86 {dimension_numbers = #tpu.dot_dimension_numbers<[1], [0], [0], [1], [0, 0, 1, 1], [], []>} : vector<16x32xf32>, vector<32x128xf32>, vector<16x128xf32> -> vector<16x128xf32>
    %190 = arith.addf %188, %189 : vector<16x128xf32>
    %191 = math.tanh %190 : vector<16x128xf32>
    %192 = vector.extract_strided_slice %191 {offsets = [0, 0], sizes = [16, 32], strides = [1, 1]} : vector<16x128xf32> to vector<16x32xf32>
    %cst_87 = arith.constant 1.000000e+00 : f32
    %193 = vector.broadcast %cst_87 : f32 to vector<16x32xf32>
    %194 = arith.addf %192, %193 : vector<16x32xf32>
    %cst_88 = arith.constant 5.000000e-01 : f32
    %195 = vector.broadcast %cst_88 : f32 to vector<16x32xf32>
    %196 = arith.mulf %195, %194 : vector<16x32xf32>
    %197 = vector.extract_strided_slice %191 {offsets = [0, 32], sizes = [16, 32], strides = [1, 1]} : vector<16x128xf32> to vector<16x32xf32>
    %cst_89 = arith.constant 1.000000e+00 : f32
    %198 = vector.broadcast %cst_89 : f32 to vector<16x32xf32>
    %199 = arith.addf %197, %198 : vector<16x32xf32>
    %cst_90 = arith.constant 5.000000e-01 : f32
    %200 = vector.broadcast %cst_90 : f32 to vector<16x32xf32>
    %201 = arith.mulf %200, %199 : vector<16x32xf32>
    %202 = vector.extract_strided_slice %191 {offsets = [0, 64], sizes = [16, 32], strides = [1, 1]} : vector<16x128xf32> to vector<16x32xf32>
    %203 = vector.extract_strided_slice %191 {offsets = [0, 96], sizes = [16, 32], strides = [1, 1]} : vector<16x128xf32> to vector<16x32xf32>
    %cst_91 = arith.constant 1.000000e+00 : f32
    %204 = vector.broadcast %cst_91 : f32 to vector<16x32xf32>
    %205 = arith.addf %203, %204 : vector<16x32xf32>
    %cst_92 = arith.constant 5.000000e-01 : f32
    %206 = vector.broadcast %cst_92 : f32 to vector<16x32xf32>
    %207 = arith.mulf %206, %205 : vector<16x32xf32>
    %208 = arith.mulf %201, %159 : vector<16x32xf32>
    %209 = arith.mulf %196, %202 : vector<16x32xf32>
    %210 = arith.addf %208, %209 : vector<16x32xf32>
    %211 = math.tanh %210 : vector<16x32xf32>
    %212 = arith.mulf %207, %211 : vector<16x32xf32>
    %213 = tpu.concatenate %212, %186 in 1 : vector<16x32xf32>, vector<16x32xf32> -> vector<16x64xf32>
    %cst_93 = arith.constant dense<0.000000e+00> : vector<16x128xf32>
    %214 = tpu.matmul %213, %30, %cst_93 {dimension_numbers = #tpu.dot_dimension_numbers<[1], [0], [0], [1], [0, 0, 1, 1], [], []>} : vector<16x64xf32>, vector<64x128xf32>, vector<16x128xf32> -> vector<16x128xf32>
    %215 = arith.addf %214, %33 : vector<16x128xf32>
    %216 = math.tanh %215 : vector<16x128xf32>
    %217 = vector.extract_strided_slice %216 {offsets = [0, 0], sizes = [16, 32], strides = [1, 1]} : vector<16x128xf32> to vector<16x32xf32>
    %cst_94 = arith.constant 1.000000e+00 : f32
    %218 = vector.broadcast %cst_94 : f32 to vector<16x32xf32>
    %219 = arith.addf %217, %218 : vector<16x32xf32>
    %cst_95 = arith.constant 5.000000e-01 : f32
    %220 = vector.broadcast %cst_95 : f32 to vector<16x32xf32>
    %221 = arith.mulf %220, %219 : vector<16x32xf32>
    %222 = vector.extract_strided_slice %216 {offsets = [0, 32], sizes = [16, 32], strides = [1, 1]} : vector<16x128xf32> to vector<16x32xf32>
    %cst_96 = arith.constant 1.000000e+00 : f32
    %223 = vector.broadcast %cst_96 : f32 to vector<16x32xf32>
    %224 = arith.addf %222, %223 : vector<16x32xf32>
    %cst_97 = arith.constant 5.000000e-01 : f32
    %225 = vector.broadcast %cst_97 : f32 to vector<16x32xf32>
    %226 = arith.mulf %225, %224 : vector<16x32xf32>
    %227 = vector.extract_strided_slice %216 {offsets = [0, 64], sizes = [16, 32], strides = [1, 1]} : vector<16x128xf32> to vector<16x32xf32>
    %228 = vector.extract_strided_slice %216 {offsets = [0, 96], sizes = [16, 32], strides = [1, 1]} : vector<16x128xf32> to vector<16x32xf32>
    %cst_98 = arith.constant 1.000000e+00 : f32
    %229 = vector.broadcast %cst_98 : f32 to vector<16x32xf32>
    %230 = arith.addf %228, %229 : vector<16x32xf32>
    %cst_99 = arith.constant 5.000000e-01 : f32
    %231 = vector.broadcast %cst_99 : f32 to vector<16x32xf32>
    %232 = arith.mulf %231, %230 : vector<16x32xf32>
    %233 = arith.mulf %226, %184 : vector<16x32xf32>
    %234 = arith.mulf %221, %227 : vector<16x32xf32>
    %235 = arith.addf %233, %234 : vector<16x32xf32>
    %236 = math.tanh %235 : vector<16x32xf32>
    %237 = arith.mulf %232, %236 : vector<16x32xf32>
    %c0_100 = arith.constant 0 : index
    %c96 = arith.constant 96 : index
    %238 = vector.load %arg20[%c0_100, %c96] : memref<16x256xf32, #tpu.memory_space<vmem>>, vector<16x32xf32>
    tpu.vector_store %arg20[%c0_100, %c96], %237 {strides = array<i32>} : memref<16x256xf32, #tpu.memory_space<vmem>>, vector<16x32xf32>,
    %c64_101 = arith.constant 64 : index
    %c0_102 = arith.constant 0 : index
    %239 = vector.load %arg19[%c64_101, %c0_102] : memref<128x128xf32, #tpu.memory_space<vmem>>, vector<16x128xf32>
    %cst_103 = arith.constant dense<0.000000e+00> : vector<16x128xf32>
    %240 = tpu.matmul %212, %29, %cst_103 {dimension_numbers = #tpu.dot_dimension_numbers<[1], [0], [0], [1], [0, 0, 1, 1], [], []>} : vector<16x32xf32>, vector<32x128xf32>, vector<16x128xf32> -> vector<16x128xf32>
    %241 = arith.addf %239, %240 : vector<16x128xf32>
    %242 = math.tanh %241 : vector<16x128xf32>
    %243 = vector.extract_strided_slice %242 {offsets = [0, 0], sizes = [16, 32], strides = [1, 1]} : vector<16x128xf32> to vector<16x32xf32>
    %cst_104 = arith.constant 1.000000e+00 : f32
    %244 = vector.broadcast %cst_104 : f32 to vector<16x32xf32>
    %245 = arith.addf %243, %244 : vector<16x32xf32>
    %cst_105 = arith.constant 5.000000e-01 : f32
    %246 = vector.broadcast %cst_105 : f32 to vector<16x32xf32>
    %247 = arith.mulf %246, %245 : vector<16x32xf32>
    %248 = vector.extract_strided_slice %242 {offsets = [0, 32], sizes = [16, 32], strides = [1, 1]} : vector<16x128xf32> to vector<16x32xf32>
    %cst_106 = arith.constant 1.000000e+00 : f32
    %249 = vector.broadcast %cst_106 : f32 to vector<16x32xf32>
    %250 = arith.addf %248, %249 : vector<16x32xf32>
    %cst_107 = arith.constant 5.000000e-01 : f32
    %251 = vector.broadcast %cst_107 : f32 to vector<16x32xf32>
    %252 = arith.mulf %251, %250 : vector<16x32xf32>
    %253 = vector.extract_strided_slice %242 {offsets = [0, 64], sizes = [16, 32], strides = [1, 1]} : vector<16x128xf32> to vector<16x32xf32>
    %254 = vector.extract_strided_slice %242 {offsets = [0, 96], sizes = [16, 32], strides = [1, 1]} : vector<16x128xf32> to vector<16x32xf32>
    %cst_108 = arith.constant 1.000000e+00 : f32
    %255 = vector.broadcast %cst_108 : f32 to vector<16x32xf32>
    %256 = arith.addf %254, %255 : vector<16x32xf32>
    %cst_109 = arith.constant 5.000000e-01 : f32
    %257 = vector.broadcast %cst_109 : f32 to vector<16x32xf32>
    %258 = arith.mulf %257, %256 : vector<16x32xf32>
    %259 = arith.mulf %252, %210 : vector<16x32xf32>
    %260 = arith.mulf %247, %253 : vector<16x32xf32>
    %261 = arith.addf %259, %260 : vector<16x32xf32>
    %262 = math.tanh %261 : vector<16x32xf32>
    %263 = arith.mulf %258, %262 : vector<16x32xf32>
    %264 = tpu.concatenate %263, %237 in 1 : vector<16x32xf32>, vector<16x32xf32> -> vector<16x64xf32>
    %cst_110 = arith.constant dense<0.000000e+00> : vector<16x128xf32>
    %265 = tpu.matmul %264, %30, %cst_110 {dimension_numbers = #tpu.dot_dimension_numbers<[1], [0], [0], [1], [0, 0, 1, 1], [], []>} : vector<16x64xf32>, vector<64x128xf32>, vector<16x128xf32> -> vector<16x128xf32>
    %266 = arith.addf %265, %33 : vector<16x128xf32>
    %267 = math.tanh %266 : vector<16x128xf32>
    %268 = vector.extract_strided_slice %267 {offsets = [0, 0], sizes = [16, 32], strides = [1, 1]} : vector<16x128xf32> to vector<16x32xf32>
    %cst_111 = arith.constant 1.000000e+00 : f32
    %269 = vector.broadcast %cst_111 : f32 to vector<16x32xf32>
    %270 = arith.addf %268, %269 : vector<16x32xf32>
    %cst_112 = arith.constant 5.000000e-01 : f32
    %271 = vector.broadcast %cst_112 : f32 to vector<16x32xf32>
    %272 = arith.mulf %271, %270 : vector<16x32xf32>
    %273 = vector.extract_strided_slice %267 {offsets = [0, 32], sizes = [16, 32], strides = [1, 1]} : vector<16x128xf32> to vector<16x32xf32>
    %cst_113 = arith.constant 1.000000e+00 : f32
    %274 = vector.broadcast %cst_113 : f32 to vector<16x32xf32>
    %275 = arith.addf %273, %274 : vector<16x32xf32>
    %cst_114 = arith.constant 5.000000e-01 : f32
    %276 = vector.broadcast %cst_114 : f32 to vector<16x32xf32>
    %277 = arith.mulf %276, %275 : vector<16x32xf32>
    %278 = vector.extract_strided_slice %267 {offsets = [0, 64], sizes = [16, 32], strides = [1, 1]} : vector<16x128xf32> to vector<16x32xf32>
    %279 = vector.extract_strided_slice %267 {offsets = [0, 96], sizes = [16, 32], strides = [1, 1]} : vector<16x128xf32> to vector<16x32xf32>
    %cst_115 = arith.constant 1.000000e+00 : f32
    %280 = vector.broadcast %cst_115 : f32 to vector<16x32xf32>
    %281 = arith.addf %279, %280 : vector<16x32xf32>
    %cst_116 = arith.constant 5.000000e-01 : f32
    %282 = vector.broadcast %cst_116 : f32 to vector<16x32xf32>
    %283 = arith.mulf %282, %281 : vector<16x32xf32>
    %284 = arith.mulf %277, %235 : vector<16x32xf32>
    %285 = arith.mulf %272, %278 : vector<16x32xf32>
    %286 = arith.addf %284, %285 : vector<16x32xf32>
    %287 = math.tanh %286 : vector<16x32xf32>
    %288 = arith.mulf %283, %287 : vector<16x32xf32>
    %c0_117 = arith.constant 0 : index
    %c128 = arith.constant 128 : index
    %289 = vector.load %arg20[%c0_117, %c128] : memref<16x256xf32, #tpu.memory_space<vmem>>, vector<16x32xf32>
    tpu.vector_store %arg20[%c0_117, %c128], %288 {strides = array<i32>} : memref<16x256xf32, #tpu.memory_space<vmem>>, vector<16x32xf32>,
    %c80 = arith.constant 80 : index
    %c0_118 = arith.constant 0 : index
    %290 = vector.load %arg19[%c80, %c0_118] : memref<128x128xf32, #tpu.memory_space<vmem>>, vector<16x128xf32>
    %cst_119 = arith.constant dense<0.000000e+00> : vector<16x128xf32>
    %291 = tpu.matmul %263, %29, %cst_119 {dimension_numbers = #tpu.dot_dimension_numbers<[1], [0], [0], [1], [0, 0, 1, 1], [], []>} : vector<16x32xf32>, vector<32x128xf32>, vector<16x128xf32> -> vector<16x128xf32>
    %292 = arith.addf %290, %291 : vector<16x128xf32>
    %293 = math.tanh %292 : vector<16x128xf32>
    %294 = vector.extract_strided_slice %293 {offsets = [0, 0], sizes = [16, 32], strides = [1, 1]} : vector<16x128xf32> to vector<16x32xf32>
    %cst_120 = arith.constant 1.000000e+00 : f32
    %295 = vector.broadcast %cst_120 : f32 to vector<16x32xf32>
    %296 = arith.addf %294, %295 : vector<16x32xf32>
    %cst_121 = arith.constant 5.000000e-01 : f32
    %297 = vector.broadcast %cst_121 : f32 to vector<16x32xf32>
    %298 = arith.mulf %297, %296 : vector<16x32xf32>
    %299 = vector.extract_strided_slice %293 {offsets = [0, 32], sizes = [16, 32], strides = [1, 1]} : vector<16x128xf32> to vector<16x32xf32>
    %cst_122 = arith.constant 1.000000e+00 : f32
    %300 = vector.broadcast %cst_122 : f32 to vector<16x32xf32>
    %301 = arith.addf %299, %300 : vector<16x32xf32>
    %cst_123 = arith.constant 5.000000e-01 : f32
    %302 = vector.broadcast %cst_123 : f32 to vector<16x32xf32>
    %303 = arith.mulf %302, %301 : vector<16x32xf32>
    %304 = vector.extract_strided_slice %293 {offsets = [0, 64], sizes = [16, 32], strides = [1, 1]} : vector<16x128xf32> to vector<16x32xf32>
    %305 = vector.extract_strided_slice %293 {offsets = [0, 96], sizes = [16, 32], strides = [1, 1]} : vector<16x128xf32> to vector<16x32xf32>
    %cst_124 = arith.constant 1.000000e+00 : f32
    %306 = vector.broadcast %cst_124 : f32 to vector<16x32xf32>
    %307 = arith.addf %305, %306 : vector<16x32xf32>
    %cst_125 = arith.constant 5.000000e-01 : f32
    %308 = vector.broadcast %cst_125 : f32 to vector<16x32xf32>
    %309 = arith.mulf %308, %307 : vector<16x32xf32>
    %310 = arith.mulf %303, %261 : vector<16x32xf32>
    %311 = arith.mulf %298, %304 : vector<16x32xf32>
    %312 = arith.addf %310, %311 : vector<16x32xf32>
    %313 = math.tanh %312 : vector<16x32xf32>
    %314 = arith.mulf %309, %313 : vector<16x32xf32>
    %315 = tpu.concatenate %314, %288 in 1 : vector<16x32xf32>, vector<16x32xf32> -> vector<16x64xf32>
    %cst_126 = arith.constant dense<0.000000e+00> : vector<16x128xf32>
    %316 = tpu.matmul %315, %30, %cst_126 {dimension_numbers = #tpu.dot_dimension_numbers<[1], [0], [0], [1], [0, 0, 1, 1], [], []>} : vector<16x64xf32>, vector<64x128xf32>, vector<16x128xf32> -> vector<16x128xf32>
    %317 = arith.addf %316, %33 : vector<16x128xf32>
    %318 = math.tanh %317 : vector<16x128xf32>
    %319 = vector.extract_strided_slice %318 {offsets = [0, 0], sizes = [16, 32], strides = [1, 1]} : vector<16x128xf32> to vector<16x32xf32>
    %cst_127 = arith.constant 1.000000e+00 : f32
    %320 = vector.broadcast %cst_127 : f32 to vector<16x32xf32>
    %321 = arith.addf %319, %320 : vector<16x32xf32>
    %cst_128 = arith.constant 5.000000e-01 : f32
    %322 = vector.broadcast %cst_128 : f32 to vector<16x32xf32>
    %323 = arith.mulf %322, %321 : vector<16x32xf32>
    %324 = vector.extract_strided_slice %318 {offsets = [0, 32], sizes = [16, 32], strides = [1, 1]} : vector<16x128xf32> to vector<16x32xf32>
    %cst_129 = arith.constant 1.000000e+00 : f32
    %325 = vector.broadcast %cst_129 : f32 to vector<16x32xf32>
    %326 = arith.addf %324, %325 : vector<16x32xf32>
    %cst_130 = arith.constant 5.000000e-01 : f32
    %327 = vector.broadcast %cst_130 : f32 to vector<16x32xf32>
    %328 = arith.mulf %327, %326 : vector<16x32xf32>
    %329 = vector.extract_strided_slice %318 {offsets = [0, 64], sizes = [16, 32], strides = [1, 1]} : vector<16x128xf32> to vector<16x32xf32>
    %330 = vector.extract_strided_slice %318 {offsets = [0, 96], sizes = [16, 32], strides = [1, 1]} : vector<16x128xf32> to vector<16x32xf32>
    %cst_131 = arith.constant 1.000000e+00 : f32
    %331 = vector.broadcast %cst_131 : f32 to vector<16x32xf32>
    %332 = arith.addf %330, %331 : vector<16x32xf32>
    %cst_132 = arith.constant 5.000000e-01 : f32
    %333 = vector.broadcast %cst_132 : f32 to vector<16x32xf32>
    %334 = arith.mulf %333, %332 : vector<16x32xf32>
    %335 = arith.mulf %328, %286 : vector<16x32xf32>
    %336 = arith.mulf %323, %329 : vector<16x32xf32>
    %337 = arith.addf %335, %336 : vector<16x32xf32>
    %338 = math.tanh %337 : vector<16x32xf32>
    %339 = arith.mulf %334, %338 : vector<16x32xf32>
    %c0_133 = arith.constant 0 : index
    %c160 = arith.constant 160 : index
    %340 = vector.load %arg20[%c0_133, %c160] : memref<16x256xf32, #tpu.memory_space<vmem>>, vector<16x32xf32>
    tpu.vector_store %arg20[%c0_133, %c160], %339 {strides = array<i32>} : memref<16x256xf32, #tpu.memory_space<vmem>>, vector<16x32xf32>,
    %c96_134 = arith.constant 96 : index
    %c0_135 = arith.constant 0 : index
    %341 = vector.load %arg19[%c96_134, %c0_135] : memref<128x128xf32, #tpu.memory_space<vmem>>, vector<16x128xf32>
    %cst_136 = arith.constant dense<0.000000e+00> : vector<16x128xf32>
    %342 = tpu.matmul %314, %29, %cst_136 {dimension_numbers = #tpu.dot_dimension_numbers<[1], [0], [0], [1], [0, 0, 1, 1], [], []>} : vector<16x32xf32>, vector<32x128xf32>, vector<16x128xf32> -> vector<16x128xf32>
    %343 = arith.addf %341, %342 : vector<16x128xf32>
    %344 = math.tanh %343 : vector<16x128xf32>
    %345 = vector.extract_strided_slice %344 {offsets = [0, 0], sizes = [16, 32], strides = [1, 1]} : vector<16x128xf32> to vector<16x32xf32>
    %cst_137 = arith.constant 1.000000e+00 : f32
    %346 = vector.broadcast %cst_137 : f32 to vector<16x32xf32>
    %347 = arith.addf %345, %346 : vector<16x32xf32>
    %cst_138 = arith.constant 5.000000e-01 : f32
    %348 = vector.broadcast %cst_138 : f32 to vector<16x32xf32>
    %349 = arith.mulf %348, %347 : vector<16x32xf32>
    %350 = vector.extract_strided_slice %344 {offsets = [0, 32], sizes = [16, 32], strides = [1, 1]} : vector<16x128xf32> to vector<16x32xf32>
    %cst_139 = arith.constant 1.000000e+00 : f32
    %351 = vector.broadcast %cst_139 : f32 to vector<16x32xf32>
    %352 = arith.addf %350, %351 : vector<16x32xf32>
    %cst_140 = arith.constant 5.000000e-01 : f32
    %353 = vector.broadcast %cst_140 : f32 to vector<16x32xf32>
    %354 = arith.mulf %353, %352 : vector<16x32xf32>
    %355 = vector.extract_strided_slice %344 {offsets = [0, 64], sizes = [16, 32], strides = [1, 1]} : vector<16x128xf32> to vector<16x32xf32>
    %356 = vector.extract_strided_slice %344 {offsets = [0, 96], sizes = [16, 32], strides = [1, 1]} : vector<16x128xf32> to vector<16x32xf32>
    %cst_141 = arith.constant 1.000000e+00 : f32
    %357 = vector.broadcast %cst_141 : f32 to vector<16x32xf32>
    %358 = arith.addf %356, %357 : vector<16x32xf32>
    %cst_142 = arith.constant 5.000000e-01 : f32
    %359 = vector.broadcast %cst_142 : f32 to vector<16x32xf32>
    %360 = arith.mulf %359, %358 : vector<16x32xf32>
    %361 = arith.mulf %354, %312 : vector<16x32xf32>
    %362 = arith.mulf %349, %355 : vector<16x32xf32>
    %363 = arith.addf %361, %362 : vector<16x32xf32>
    %364 = math.tanh %363 : vector<16x32xf32>
    %365 = arith.mulf %360, %364 : vector<16x32xf32>
    %366 = tpu.concatenate %365, %339 in 1 : vector<16x32xf32>, vector<16x32xf32> -> vector<16x64xf32>
    %cst_143 = arith.constant dense<0.000000e+00> : vector<16x128xf32>
    %367 = tpu.matmul %366, %30, %cst_143 {dimension_numbers = #tpu.dot_dimension_numbers<[1], [0], [0], [1], [0, 0, 1, 1], [], []>} : vector<16x64xf32>, vector<64x128xf32>, vector<16x128xf32> -> vector<16x128xf32>
    %368 = arith.addf %367, %33 : vector<16x128xf32>
    %369 = math.tanh %368 : vector<16x128xf32>
    %370 = vector.extract_strided_slice %369 {offsets = [0, 0], sizes = [16, 32], strides = [1, 1]} : vector<16x128xf32> to vector<16x32xf32>
    %cst_144 = arith.constant 1.000000e+00 : f32
    %371 = vector.broadcast %cst_144 : f32 to vector<16x32xf32>
    %372 = arith.addf %370, %371 : vector<16x32xf32>
    %cst_145 = arith.constant 5.000000e-01 : f32
    %373 = vector.broadcast %cst_145 : f32 to vector<16x32xf32>
    %374 = arith.mulf %373, %372 : vector<16x32xf32>
    %375 = vector.extract_strided_slice %369 {offsets = [0, 32], sizes = [16, 32], strides = [1, 1]} : vector<16x128xf32> to vector<16x32xf32>
    %cst_146 = arith.constant 1.000000e+00 : f32
    %376 = vector.broadcast %cst_146 : f32 to vector<16x32xf32>
    %377 = arith.addf %375, %376 : vector<16x32xf32>
    %cst_147 = arith.constant 5.000000e-01 : f32
    %378 = vector.broadcast %cst_147 : f32 to vector<16x32xf32>
    %379 = arith.mulf %378, %377 : vector<16x32xf32>
    %380 = vector.extract_strided_slice %369 {offsets = [0, 64], sizes = [16, 32], strides = [1, 1]} : vector<16x128xf32> to vector<16x32xf32>
    %381 = vector.extract_strided_slice %369 {offsets = [0, 96], sizes = [16, 32], strides = [1, 1]} : vector<16x128xf32> to vector<16x32xf32>
    %cst_148 = arith.constant 1.000000e+00 : f32
    %382 = vector.broadcast %cst_148 : f32 to vector<16x32xf32>
    %383 = arith.addf %381, %382 : vector<16x32xf32>
    %cst_149 = arith.constant 5.000000e-01 : f32
    %384 = vector.broadcast %cst_149 : f32 to vector<16x32xf32>
    %385 = arith.mulf %384, %383 : vector<16x32xf32>
    %386 = arith.mulf %379, %337 : vector<16x32xf32>
    %387 = arith.mulf %374, %380 : vector<16x32xf32>
    %388 = arith.addf %386, %387 : vector<16x32xf32>
    %389 = math.tanh %388 : vector<16x32xf32>
    %390 = arith.mulf %385, %389 : vector<16x32xf32>
    %c0_150 = arith.constant 0 : index
    %c192 = arith.constant 192 : index
    %391 = vector.load %arg20[%c0_150, %c192] : memref<16x256xf32, #tpu.memory_space<vmem>>, vector<16x32xf32>
    tpu.vector_store %arg20[%c0_150, %c192], %390 {strides = array<i32>} : memref<16x256xf32, #tpu.memory_space<vmem>>, vector<16x32xf32>,
    %c112 = arith.constant 112 : index
    %c0_151 = arith.constant 0 : index
    %392 = vector.load %arg19[%c112, %c0_151] : memref<128x128xf32, #tpu.memory_space<vmem>>, vector<16x128xf32>
    %cst_152 = arith.constant dense<0.000000e+00> : vector<16x128xf32>
    %393 = tpu.matmul %365, %29, %cst_152 {dimension_numbers = #tpu.dot_dimension_numbers<[1], [0], [0], [1], [0, 0, 1, 1], [], []>} : vector<16x32xf32>, vector<32x128xf32>, vector<16x128xf32> -> vector<16x128xf32>
    %394 = arith.addf %392, %393 : vector<16x128xf32>
    %395 = math.tanh %394 : vector<16x128xf32>
    %396 = vector.extract_strided_slice %395 {offsets = [0, 0], sizes = [16, 32], strides = [1, 1]} : vector<16x128xf32> to vector<16x32xf32>
    %cst_153 = arith.constant 1.000000e+00 : f32
    %397 = vector.broadcast %cst_153 : f32 to vector<16x32xf32>
    %398 = arith.addf %396, %397 : vector<16x32xf32>
    %cst_154 = arith.constant 5.000000e-01 : f32
    %399 = vector.broadcast %cst_154 : f32 to vector<16x32xf32>
    %400 = arith.mulf %399, %398 : vector<16x32xf32>
    %401 = vector.extract_strided_slice %395 {offsets = [0, 32], sizes = [16, 32], strides = [1, 1]} : vector<16x128xf32> to vector<16x32xf32>
    %cst_155 = arith.constant 1.000000e+00 : f32
    %402 = vector.broadcast %cst_155 : f32 to vector<16x32xf32>
    %403 = arith.addf %401, %402 : vector<16x32xf32>
    %cst_156 = arith.constant 5.000000e-01 : f32
    %404 = vector.broadcast %cst_156 : f32 to vector<16x32xf32>
    %405 = arith.mulf %404, %403 : vector<16x32xf32>
    %406 = vector.extract_strided_slice %395 {offsets = [0, 64], sizes = [16, 32], strides = [1, 1]} : vector<16x128xf32> to vector<16x32xf32>
    %407 = vector.extract_strided_slice %395 {offsets = [0, 96], sizes = [16, 32], strides = [1, 1]} : vector<16x128xf32> to vector<16x32xf32>
    %cst_157 = arith.constant 1.000000e+00 : f32
    %408 = vector.broadcast %cst_157 : f32 to vector<16x32xf32>
    %409 = arith.addf %407, %408 : vector<16x32xf32>
    %cst_158 = arith.constant 5.000000e-01 : f32
    %410 = vector.broadcast %cst_158 : f32 to vector<16x32xf32>
    %411 = arith.mulf %410, %409 : vector<16x32xf32>
    %412 = arith.mulf %405, %363 : vector<16x32xf32>
    %413 = arith.mulf %400, %406 : vector<16x32xf32>
    %414 = arith.addf %412, %413 : vector<16x32xf32>
    %415 = math.tanh %414 : vector<16x32xf32>
    %416 = arith.mulf %411, %415 : vector<16x32xf32>
    %417 = tpu.concatenate %416, %390 in 1 : vector<16x32xf32>, vector<16x32xf32> -> vector<16x64xf32>
    %cst_159 = arith.constant dense<0.000000e+00> : vector<16x128xf32>
    %418 = tpu.matmul %417, %30, %cst_159 {dimension_numbers = #tpu.dot_dimension_numbers<[1], [0], [0], [1], [0, 0, 1, 1], [], []>} : vector<16x64xf32>, vector<64x128xf32>, vector<16x128xf32> -> vector<16x128xf32>
    %419 = arith.addf %418, %33 : vector<16x128xf32>
    %420 = math.tanh %419 : vector<16x128xf32>
    %421 = vector.extract_strided_slice %420 {offsets = [0, 0], sizes = [16, 32], strides = [1, 1]} : vector<16x128xf32> to vector<16x32xf32>
    %cst_160 = arith.constant 1.000000e+00 : f32
    %422 = vector.broadcast %cst_160 : f32 to vector<16x32xf32>
    %423 = arith.addf %421, %422 : vector<16x32xf32>
    %cst_161 = arith.constant 5.000000e-01 : f32
    %424 = vector.broadcast %cst_161 : f32 to vector<16x32xf32>
    %425 = arith.mulf %424, %423 : vector<16x32xf32>
    %426 = vector.extract_strided_slice %420 {offsets = [0, 32], sizes = [16, 32], strides = [1, 1]} : vector<16x128xf32> to vector<16x32xf32>
    %cst_162 = arith.constant 1.000000e+00 : f32
    %427 = vector.broadcast %cst_162 : f32 to vector<16x32xf32>
    %428 = arith.addf %426, %427 : vector<16x32xf32>
    %cst_163 = arith.constant 5.000000e-01 : f32
    %429 = vector.broadcast %cst_163 : f32 to vector<16x32xf32>
    %430 = arith.mulf %429, %428 : vector<16x32xf32>
    %431 = vector.extract_strided_slice %420 {offsets = [0, 64], sizes = [16, 32], strides = [1, 1]} : vector<16x128xf32> to vector<16x32xf32>
    %432 = vector.extract_strided_slice %420 {offsets = [0, 96], sizes = [16, 32], strides = [1, 1]} : vector<16x128xf32> to vector<16x32xf32>
    %cst_164 = arith.constant 1.000000e+00 : f32
    %433 = vector.broadcast %cst_164 : f32 to vector<16x32xf32>
    %434 = arith.addf %432, %433 : vector<16x32xf32>
    %cst_165 = arith.constant 5.000000e-01 : f32
    %435 = vector.broadcast %cst_165 : f32 to vector<16x32xf32>
    %436 = arith.mulf %435, %434 : vector<16x32xf32>
    %437 = arith.mulf %430, %388 : vector<16x32xf32>
    %438 = arith.mulf %425, %431 : vector<16x32xf32>
    %439 = arith.addf %437, %438 : vector<16x32xf32>
    %440 = math.tanh %439 : vector<16x32xf32>
    %441 = arith.mulf %436, %440 : vector<16x32xf32>
    %c0_166 = arith.constant 0 : index
    %c224 = arith.constant 224 : index
    %442 = vector.load %arg20[%c0_166, %c224] : memref<16x256xf32, #tpu.memory_space<vmem>>, vector<16x32xf32>
    tpu.vector_store %arg20[%c0_166, %c224], %441 {strides = array<i32>} : memref<16x256xf32, #tpu.memory_space<vmem>>, vector<16x32xf32>,
    %c0_167 = arith.constant 0 : index
    %c0_168 = arith.constant 0 : index
    %443 = vector.load %arg20[%c0_167, %c0_168] : memref<16x256xf32, #tpu.memory_space<vmem>>, vector<16x256xf32>
    %c0_169 = arith.constant 0 : index
    %c0_170 = arith.constant 0 : index
    %444 = vector.load %arg13[%c0_169, %c0_170] : memref<256x32xf32, #tpu.memory_space<vmem>>, vector<256x32xf32>
    %cst_171 = arith.constant dense<0.000000e+00> : vector<16x32xf32>
    %445 = tpu.matmul %443, %444, %cst_171 {dimension_numbers = #tpu.dot_dimension_numbers<[1], [0], [0], [1], [0, 0, 1, 1], [], []>} : vector<16x256xf32>, vector<256x32xf32>, vector<16x32xf32> -> vector<16x32xf32>
    %c0_172 = arith.constant 0 : index
    %c0_173 = arith.constant 0 : index
    %446 = vector.load %arg14[%c0_172, %c0_173] : memref<1x32xf32, #tpu.memory_space<vmem>>, vector<1x32xf32>
    %447 = vector.broadcast %446 : vector<1x32xf32> to vector<16x32xf32>
    %448 = arith.addf %445, %447 : vector<16x32xf32>
    %cst_174 = arith.constant dense<0.000000e+00> : vector<32xf32>
    %449 = vector.multi_reduction <add>, %448, %cst_174 [0] : vector<16x32xf32> to vector<32xf32>
    %450 = vector.shape_cast %449 : vector<32xf32> to vector<1x32xf32>
    %cst_175 = arith.constant 1.600000e+01 : f32
    %451 = vector.broadcast %cst_175 : f32 to vector<1x32xf32>
    %452 = arith.divf %450, %451 : vector<1x32xf32>
    %453 = vector.extract_strided_slice %2 {offsets = [112, 0], sizes = [16, 8], strides = [1, 1]} : vector<128x8xf32> to vector<16x8xf32>
    %cst_176 = arith.constant dense<0.000000e+00> : vector<8xf32>
    %454 = vector.multi_reduction <add>, %453, %cst_176 [0] : vector<16x8xf32> to vector<8xf32>
    %455 = vector.shape_cast %454 : vector<8xf32> to vector<1x8xf32>
    %cst_177 = arith.constant 1.600000e+01 : f32
    %456 = vector.broadcast %cst_177 : f32 to vector<1x8xf32>
    %457 = arith.divf %455, %456 : vector<1x8xf32>
    %c0_178 = arith.constant 0 : index
    %c0_179 = arith.constant 0 : index
    %458 = vector.load %arg15[%c0_178, %c0_179] : memref<32x64xf32, #tpu.memory_space<vmem>>, vector<32x64xf32>
    %cst_180 = arith.constant dense<0.000000e+00> : vector<1x64xf32>
    %459 = tpu.matmul %452, %458, %cst_180 {dimension_numbers = #tpu.dot_dimension_numbers<[1], [0], [0], [1], [0, 0, 1, 1], [], []>} : vector<1x32xf32>, vector<32x64xf32>, vector<1x64xf32> -> vector<1x64xf32>
    %c0_181 = arith.constant 0 : index
    %c0_182 = arith.constant 0 : index
    %460 = vector.load %arg16[%c0_181, %c0_182] : memref<8x64xf32, #tpu.memory_space<vmem>>, vector<8x64xf32>
    %cst_183 = arith.constant dense<0.000000e+00> : vector<1x64xf32>
    %461 = tpu.matmul %457, %460, %cst_183 {dimension_numbers = #tpu.dot_dimension_numbers<[1], [0], [0], [1], [0, 0, 1, 1], [], []>} : vector<1x8xf32>, vector<8x64xf32>, vector<1x64xf32> -> vector<1x64xf32>
    %462 = arith.addf %459, %461 : vector<1x64xf32>
    %c0_184 = arith.constant 0 : index
    %c0_185 = arith.constant 0 : index
    %463 = vector.load %arg17[%c0_184, %c0_185] : memref<1x64xf32, #tpu.memory_space<vmem>>, vector<1x64xf32>
    %464 = arith.addf %462, %463 : vector<1x64xf32>
    %c0_186 = arith.constant 0 : index
    %c0_187 = arith.constant 0 : index
    %465 = vector.load %arg18[%c0_186, %c0_187] : memref<1x64xf32, #tpu.memory_space<vmem>>, vector<1x64xf32>
    tpu.vector_store %arg18[%c0_186, %c0_187], %464 {strides = array<i32>} : memref<1x64xf32, #tpu.memory_space<vmem>>, vector<1x64xf32>,
    return
  }
}

</mosaic_0001>

<bundles_post_ra>
// kernel: stegcn_forward.1
= control target key start
LH: loop header
LB: loop body
LE: loop exit
PB: predicated region body
PF: predicated region fallthrough
CT: control target
= control target key end

     0   :  { %vm120_vm0 = vcmask 64512   ;;  %vm317_vm1 = vcmask 130048   ;;  %vm613_vm2 = vcmask 195584   ;;  %vm777_vm3 = vcmask 261120   ;;  %s3689_s3 = inlined_call_operand.vmem [shape: f32[8,16], index: 3, kind: input, shape index: {}]   ;;  %s3690_s1 = inlined_call_operand.vmem [shape: f32[128,8], index: 1, kind: input, shape index: {}]   ;;  %s3691_s4 = inlined_call_operand.vmem [shape: f32[1,16], index: 4, kind: input, shape index: {}]   ;;  %s3692_s0 = inlined_call_operand.vmem [shape: f32[128,128], index: 0, kind: input, shape index: {}]   ;;  %s3693_s5 = inlined_call_operand.vmem [shape: f32[16,24], index: 5, kind: input, shape index: {}]   ;;  %s3694_s6 = inlined_call_operand.vmem [shape: f32[1,24], index: 6, kind: input, shape index: {}]   ;;  %s3695_s9 = inlined_call_operand.vmem [shape: f32[32,128], index: 9, kind: input, shape index: {}]   ;;  %s3696_s7 = inlined_call_operand.vmem [shape: f32[24,128], index: 7, kind: input, shape index: {}]   ;;  %s3697_s8 = inlined_call_operand.vmem [shape: f32[8,128], index: 8, kind: input, shape index: {}]   ;;  %s3698_s2 = inlined_call_operand.vmem [shape: f32[128,8], index: 2, kind: input, shape index: {}]   ;;  %s3699_s10 = inlined_call_operand.vmem [shape: f32[1,128], index: 10, kind: input, shape index: {}]   ;;  %s3700_s11 = inlined_call_operand.vmem [shape: f32[64,128], index: 11, kind: input, shape index: {}]   ;;  %s3701_s12 = inlined_call_operand.vmem [shape: f32[1,128], index: 12, kind: input, shape index: {}]   ;;  %s3702_s13 = inlined_call_operand.vmem [shape: f32[256,32], index: 13, kind: input, shape index: {}]   ;;  %s3703_s14 = inlined_call_operand.vmem [shape: f32[1,32], index: 14, kind: input, shape index: {}]   ;;  %s3704_s15 = inlined_call_operand.vmem [shape: f32[32,64], index: 15, kind: input, shape index: {}]   ;;  %s3705_s16 = inlined_call_operand.vmem [shape: f32[8,64], index: 16, kind: input, shape index: {}]   ;;  %s3706_s17 = inlined_call_operand.vmem [shape: f32[1,64], index: 17, kind: input, shape index: {}]   ;;  %s3707_s18 = inlined_call_operand.vmem [shape: f32[1,64], index: 18, kind: output, shape index: {}]  }
   0x1   :  { %3709 = sst [smem:[#allocation4_spill]] %s3689_s3  ;;  %v2698_v33 = vld [vmem:[%s3692_s0] sm:$0xff]  ;;  %v2703_v34 = vld [vmem:[%s3692_s0 + $0x8] sm:$0xff]  ;;  %v2710_v35 = vld [vmem:[%s3692_s0 + $0x10] sm:$0xff]  ;;  %s2530_s3 = smov 32   ;;  %vm856_vm4 = vcmask 523264  }
   0x2   :  { %3710 = sst [smem:[#allocation5_spill]] %s3690_s1  ;;  %v2716_v36 = vld [vmem:[%s3692_s0 + $0x18] sm:$0xff]  ;;  %v2722_v37 = vld [vmem:[%s3692_s0 + $0x20] sm:$0xff]  ;;  %v2728_v38 = vld [vmem:[%s3692_s0 + $0x28] sm:$0xff]  ;;  %vm1100_vm5 = vcmask 523520   ;;  %vm1261_vm6 = vcmask 785920  }
   0x3   :  { %3711 = sst [smem:[#allocation6_spill]] %s3691_s4  ;;  %v2734_v39 = vld [vmem:[%s3692_s0 + $0x30] sm:$0xff]  ;;  %v2740_v40 = vld [vmem:[%s3692_s0 + $0x38] sm:$0xff]  ;;  %v2746_v41 = vld [vmem:[%s3692_s0 + $0x40] sm:$0xff]  ;;  %vm1420_vm7 = vcmask 1048320   ;;  %vm2241_vm9 = vcmask 516096  }
   0x4   :  { %s3712_s29 = sld [smem:[#allocation4_spill]]  ;;  %v2752_v42 = vld [vmem:[%s3692_s0 + $0x48] sm:$0xff]  ;;  %v2758_v43 = vld [vmem:[%s3692_s0 + $0x50] sm:$0xff]  ;;  %v2764_v44 = vld [vmem:[%s3692_s0 + $0x58] sm:$0xff] }
   0x5   :  { %s3713_s19 = sld [smem:[#allocation5_spill]]  ;;  %v2770_v45 = vld [vmem:[%s3692_s0 + $0x60] sm:$0xff]  ;;  %v2776_v46 = vld [vmem:[%s3692_s0 + $0x68] sm:$0xff]  ;;  %v2788_v49 = vld [vmem:[%s3692_s0 + $0x70] sm:$0xff] }
   0x6   :  { %v316_v47 = vld [vmem:[%s3693_s5 + $0x8] sm:$0xff]  ;;  %v315_v48 = vld [vmem:[%s3693_s5] sm:$0xff]  ;;  %v2794_v50 = vld [vmem:[%s3692_s0 + $0x78] sm:$0xff]  ;;  %s3714_s27 = sld [smem:[#allocation6_spill]] }
   0x7   :  { %380 = vmatpush.msra.mxu2 %v316_v47 }
   0x9   :  { %381 = vmatpush.msra.mxu2 %v315_v48 }
   0xa   :  { %v119_v0 = vld [vmem:[%s3712_s29] sm:$0xff] }
   0xb   :  { %v75_v1 = vld [vmem:[%s3713_s19] sm:$0xff]  ;;  %184 = vmatpush.msra.mxu0 %v119_v0  ;;  %v76_v2 = vld [vmem:[%s3713_s19 + $0x8] sm:$0xff]  ;;  %v77_v3 = vld [vmem:[%s3713_s19 + $0x10] sm:$0xff] }
   0xc   :  { %2247 = vmatmul.msk.f32.vlgmr.msra.gmra.mxu0 %vm120_vm0, %v75_v1  ;;  %v78_v4 = vld [vmem:[%s3713_s19 + $0x18] sm:$0xff]  ;;  %v79_v5 = vld [vmem:[%s3713_s19 + $0x20] sm:$0xff]  ;;  %v80_v6 = vld [vmem:[%s3713_s19 + $0x28] sm:$0xff] }
   0xd   :  { %v81_v7 = vld [vmem:[%s3713_s19 + $0x30] sm:$0xff]  ;;  %v82_v8 = vld [vmem:[%s3713_s19 + $0x38] sm:$0xff]  ;;  %v83_v9 = vld [vmem:[%s3713_s19 + $0x40] sm:$0xff] }
   0xe   :  { %v84_v10 = vld [vmem:[%s3713_s19 + $0x48] sm:$0xff]  ;;  %v85_v11 = vld [vmem:[%s3713_s19 + $0x50] sm:$0xff]  ;;  %v86_v12 = vld [vmem:[%s3713_s19 + $0x58] sm:$0xff] }
   0xf   :  { %v87_v13 = vld [vmem:[%s3713_s19 + $0x60] sm:$0xff]  ;;  %v88_v14 = vld [vmem:[%s3713_s19 + $0x68] sm:$0xff]  ;;  %v89_v15 = vld [vmem:[%s3713_s19 + $0x70] sm:$0xff] }
  0x10   :  { %v90_v16 = vld [vmem:[%s3713_s19 + $0x78] sm:$0xff]  ;;  %v2800_v51 = vld [vmem:[%s3714_s27] ss:$0 sm:$0xff] }
  0x14   :  { %2248 = vmatmul.msk.f32.gmra.mxu0 %vm120_vm0, %v76_v2 }
  0x1c   :  { %2249 = vmatmul.msk.f32.gmra.mxu0 %vm120_vm0, %v77_v3 }
  0x24   :  { %2250 = vmatmul.msk.f32.gmra.mxu0 %vm120_vm0, %v78_v4 }
  0x2c   :  { %2251 = vmatmul.msk.f32.gmra.mxu0 %vm120_vm0, %v79_v5 }
  0x34   :  { %2252 = vmatmul.msk.f32.gmra.mxu0 %vm120_vm0, %v80_v6 }
  0x3c   :  { %2253 = vmatmul.msk.f32.gmra.mxu0 %vm120_vm0, %v81_v7 }
  0x44   :  { %2254 = vmatmul.msk.f32.gmra.mxu0 %vm120_vm0, %v82_v8 }
  0x4c   :  { %2255 = vmatmul.msk.f32.gmra.mxu0 %vm120_vm0, %v83_v9 }
  0x54   :  { %2256 = vmatmul.msk.f32.gmra.mxu0 %vm120_vm0, %v84_v10 }
  0x5c   :  { %2257 = vmatmul.msk.f32.gmra.mxu0 %vm120_vm0, %v85_v11 }
  0x64   :  { %2258 = vmatmul.msk.f32.gmra.mxu0 %vm120_vm0, %v86_v12 }
  0x6c   :  { %2259 = vmatmul.msk.f32.gmra.mxu0 %vm120_vm0, %v87_v13 }
  0x74   :  { %2260 = vmatmul.msk.f32.gmra.mxu0 %vm120_vm0, %v88_v14 }
  0x7c   :  { %2261 = vmatmul.msk.f32.gmra.mxu0 %vm120_vm0, %v89_v15 }
  0x84   :  { %2262 = vmatmul.msk.f32.gmra.mxu0 %vm120_vm0, %v90_v16 }
  0x89   :  { %v186_v17 = vpop.f32.mrf.mxu0 }
  0x91   :  { %v189_v18 = vpop.f32.mrf.mxu0 }
  0x99   :  { %v192_v19 = vpop.f32.mrf.mxu0 }
  0xa1   :  { %v195_v20 = vpop.f32.mrf.mxu0 }
  0xa9   :  { %v198_v21 = vpop.f32.mrf.mxu0 }
  0xb1   :  { %v201_v22 = vpop.f32.mrf.mxu0 }
  0xb9   :  { %v204_v23 = vpop.f32.mrf.mxu0 }
  0xc1   :  { %v207_v24 = vpop.f32.mrf.mxu0 }
  0xc9   :  { %v210_v25 = vpop.f32.mrf.mxu0 }
  0xd1   :  { %v213_v26 = vpop.f32.mrf.mxu0 }
  0xd9   :  { %v216_v27 = vpop.f32.mrf.mxu0 }
  0xe1   :  { %v219_v28 = vpop.f32.mrf.mxu0 }
  0xe9   :  { %v222_v29 = vpop.f32.mrf.mxu0 }
  0xf1   :  { %v225_v30 = vpop.f32.mrf.mxu0 }
  0xf9   :  { %v228_v31 = vpop.f32.mrf.mxu0 }
 0x101   :  { %v231_v32 = vpop.f32.mrf.mxu0 }
 0x102   :  { %234 = vmatpush.msrb.mxu0 %v231_v32  ;;  %2343 = vmatpush.msra.mxu1 %v231_v32 }
 0x104   :  { %235 = vmatpush.msrb.mxu0 %v228_v31  ;;  %2344 = vmatpush.msra.mxu1 %v228_v31 }
 0x106   :  { %236 = vmatpush.msrb.mxu0 %v225_v30  ;;  %2345 = vmatpush.msra.mxu1 %v225_v30 }
 0x108   :  { %237 = vmatpush.msrb.mxu0 %v222_v29  ;;  %2346 = vmatpush.msra.mxu1 %v222_v29 }
 0x10a   :  { %238 = vmatpush.msrb.mxu0 %v219_v28  ;;  %2347 = vmatpush.msra.mxu1 %v219_v28 }
 0x10c   :  { %239 = vmatpush.msrb.mxu0 %v216_v27  ;;  %2348 = vmatpush.msra.mxu1 %v216_v27 }
 0x10e   :  { %240 = vmatpush.msrb.mxu0 %v213_v26  ;;  %2349 = vmatpush.msra.mxu1 %v213_v26 }
 0x110   :  { %241 = vmatpush.msrb.mxu0 %v210_v25  ;;  %2350 = vmatpush.msra.mxu1 %v210_v25 }
 0x112   :  { %242 = vmatpush.msrb.mxu0 %v207_v24  ;;  %2351 = vmatpush.msra.mxu1 %v207_v24 }
 0x114   :  { %243 = vmatpush.msrb.mxu0 %v204_v23  ;;  %2352 = vmatpush.msra.mxu1 %v204_v23 }
 0x116   :  { %244 = vmatpush.msrb.mxu0 %v201_v22  ;;  %2353 = vmatpush.msra.mxu1 %v201_v22 }
 0x118   :  { %245 = vmatpush.msrb.mxu0 %v198_v21  ;;  %2354 = vmatpush.msra.mxu1 %v198_v21 }
 0x11a   :  { %246 = vmatpush.msrb.mxu0 %v195_v20  ;;  %2355 = vmatpush.msra.mxu1 %v195_v20 }
 0x11c   :  { %247 = vmatpush.msrb.mxu0 %v192_v19  ;;  %2356 = vmatpush.msra.mxu1 %v192_v19 }
 0x11e   :  { %248 = vmatpush.msrb.mxu0 %v189_v18  ;;  %2357 = vmatpush.msra.mxu1 %v189_v18 }
 0x120   :  { %249 = vmatpush.msrb.mxu0 %v186_v17  ;;  %2358 = vmatpush.msra.mxu1 %v186_v17 }
 0x121   :  { %250 = vmatmul.f32.vlgmr.msrb.gmra.mxu0 %v2698_v33  ;;  %253 = vmatmul.f32.vlgmr.msra.gmra.mxu1 %v2703_v34 }
 0x129   :  { %256 = vmatmul.f32.gmra.mxu1 %v2710_v35 }
 0x131   :  { %259 = vmatmul.f32.gmra.mxu1 %v2716_v36 }
 0x139   :  { %262 = vmatmul.f32.gmra.mxu1 %v2722_v37 }
 0x141   :  { %265 = vmatmul.f32.gmra.mxu1 %v2728_v38 }
 0x149   :  { %268 = vmatmul.f32.gmra.mxu1 %v2734_v39 }
 0x151   :  { %271 = vmatmul.f32.gmra.mxu1 %v2740_v40 }
 0x159   :  { %274 = vmatmul.f32.gmra.mxu1 %v2746_v41 }
 0x161   :  { %277 = vmatmul.f32.gmra.mxu1 %v2752_v42 }
 0x169   :  { %280 = vmatmul.f32.gmra.mxu1 %v2758_v43 }
 0x171   :  { %283 = vmatmul.f32.gmra.mxu1 %v2764_v44 }
 0x179   :  { %286 = vmatmul.f32.gmra.mxu1 %v2770_v45 }
 0x181   :  { %289 = vmatmul.f32.gmra.mxu1 %v2776_v46 }
 0x189   :  { %292 = vmatmul.f32.gmra.mxu1 %v2788_v49 }
 0x191   :  { %295 = vmatmul.f32.gmra.mxu1 %v2794_v50 }
 0x19e   :  { %v251_v52 = vpop.f32.mrf.mxu0  ;;  %v254_v53 = vpop.f32.mrf.mxu1 }
 0x19f   :  { %v252_v54 = vadd.f32 %v2800_v51, %v251_v52  ;;  %v255_v56 = vadd.f32 %v2800_v51, %v254_v53 }
 0x1a1   :  { %v299_v55 = vmax.f32 %v252_v54, 0.0  ;;  %v300_v58 = vmax.f32 %v255_v56, 0.0 }
 0x1a3   :  { %2263 = vmatmul.msk.f32.vlgmr.msra.gmra.mxu2 %vm317_vm1, %v299_v55 }
 0x1a6   :  { %v257_v57 = vpop.f32.mrf.mxu1 }
 0x1a7   :  { %v258_v59 = vadd.f32 %v2800_v51, %v257_v57 }
 0x1a9   :  { %v301_v61 = vmax.f32 %v258_v59, 0.0 }
 0x1ab   :  { %2264 = vmatmul.msk.f32.gmra.mxu2 %vm317_vm1, %v300_v58 }
 0x1ae   :  { %v260_v60 = vpop.f32.mrf.mxu1 }
 0x1af   :  { %v261_v62 = vadd.f32 %v2800_v51, %v260_v60 }
 0x1b1   :  { %v302_v0 = vmax.f32 %v261_v62, 0.0 }
 0x1b3   :  { %2265 = vmatmul.msk.f32.gmra.mxu2 %vm317_vm1, %v301_v61 }
 0x1b6   :  { %v263_v63 = vpop.f32.mrf.mxu1 }
 0x1b7   :  { %v264_v1 = vadd.f32 %v2800_v51, %v263_v63 }
 0x1b9   :  { %v303_v3 = vmax.f32 %v264_v1, 0.0 }
 0x1bb   :  { %2266 = vmatmul.msk.f32.gmra.mxu2 %vm317_vm1, %v302_v0 }
 0x1be   :  { %v266_v2 = vpop.f32.mrf.mxu1 }
 0x1bf   :  { %v267_v4 = vadd.f32 %v2800_v51, %v266_v2 }
 0x1c1   :  { %v304_v6 = vmax.f32 %v267_v4, 0.0 }
 0x1c3   :  { %2267 = vmatmul.msk.f32.gmra.mxu2 %vm317_vm1, %v303_v3 }
 0x1c6   :  { %v269_v5 = vpop.f32.mrf.mxu1 }
 0x1c7   :  { %v270_v7 = vadd.f32 %v2800_v51, %v269_v5  ;;  %v498_v5 = vld [vmem:[%s3696_s7 + $0x10] sm:$0xff] }
 0x1c9   :  { %v305_v9 = vmax.f32 %v270_v7, 0.0 }
 0x1cb   :  { %2268 = vmatmul.msk.f32.gmra.mxu2 %vm317_vm1, %v304_v6 }
 0x1ce   :  { %v272_v8 = vpop.f32.mrf.mxu1 }
 0x1cf   :  { %v273_v10 = vadd.f32 %v2800_v51, %v272_v8 }
 0x1d1   :  { %v306_v12 = vmax.f32 %v273_v10, 0.0 }
 0x1d3   :  { %2269 = vmatmul.msk.f32.gmra.mxu2 %vm317_vm1, %v305_v9 }
 0x1d6   :  { %v275_v11 = vpop.f32.mrf.mxu1 }
 0x1d7   :  { %v276_v13 = vadd.f32 %v2800_v51, %v275_v11 }
 0x1d9   :  { %v307_v15 = vmax.f32 %v276_v13, 0.0 }
 0x1db   :  { %2270 = vmatmul.msk.f32.gmra.mxu2 %vm317_vm1, %v306_v12 }
 0x1de   :  { %v278_v14 = vpop.f32.mrf.mxu1 }
 0x1df   :  { %v279_v16 = vadd.f32 %v2800_v51, %v278_v14 }
 0x1e1   :  { %v308_v18 = vmax.f32 %v279_v16, 0.0 }
 0x1e3   :  { %2271 = vmatmul.msk.f32.gmra.mxu2 %vm317_vm1, %v307_v15 }
 0x1e6   :  { %v281_v17 = vpop.f32.mrf.mxu1 }
 0x1e7   :  { %v282_v19 = vadd.f32 %v2800_v51, %v281_v17 }
 0x1e9   :  { %v309_v21 = vmax.f32 %v282_v19, 0.0 }
 0x1eb   :  { %2272 = vmatmul.msk.f32.gmra.mxu2 %vm317_vm1, %v308_v18 }
 0x1ee   :  { %v284_v20 = vpop.f32.mrf.mxu1 }
 0x1ef   :  { %v285_v22 = vadd.f32 %v2800_v51, %v284_v20 }
 0x1f1   :  { %v310_v24 = vmax.f32 %v285_v22, 0.0 }
 0x1f3   :  { %2273 = vmatmul.msk.f32.gmra.mxu2 %vm317_vm1, %v309_v21 }
 0x1f6   :  { %v287_v23 = vpop.f32.mrf.mxu1 }
 0x1f7   :  { %v288_v25 = vadd.f32 %v2800_v51, %v287_v23 }
 0x1f9   :  { %v311_v27 = vmax.f32 %v288_v25, 0.0 }
 0x1fb   :  { %2274 = vmatmul.msk.f32.gmra.mxu2 %vm317_vm1, %v310_v24 }
 0x1fe   :  { %v290_v26 = vpop.f32.mrf.mxu1 }
 0x1ff   :  { %v291_v28 = vadd.f32 %v2800_v51, %v290_v26 }
 0x201   :  { %v312_v30 = vmax.f32 %v291_v28, 0.0 }
 0x203   :  { %2275 = vmatmul.msk.f32.gmra.mxu2 %vm317_vm1, %v311_v27 }
 0x206   :  { %v293_v29 = vpop.f32.mrf.mxu1 }
 0x207   :  { %v294_v31 = vadd.f32 %v2800_v51, %v293_v29 }
 0x209   :  { %v313_v32 = vmax.f32 %v294_v31, 0.0 }
 0x20b   :  { %2276 = vmatmul.msk.f32.gmra.mxu2 %vm317_vm1, %v312_v30 }
 0x20e   :  { %v296_v47 = vpop.f32.mrf.mxu1 }
 0x20f   :  { %v297_v48 = vadd.f32 %v2800_v51, %v296_v47  ;;  %v2837_v51 = vld [vmem:[%s3695_s9 + $0x18] sm:$0xff] }
 0x210   :  { %793 = vmatpush.msrb.mxu1 %v2837_v51 }
 0x211   :  { %v314_v52 = vmax.f32 %v297_v48, 0.0 }
 0x213   :  { %2277 = vmatmul.msk.f32.gmra.mxu2 %vm317_vm1, %v313_v32 }
 0x21b   :  { %2278 = vmatmul.msk.f32.gmra.mxu2 %vm317_vm1, %v314_v52  ;;  %v2937_v52 = vld [vmem:[%s3700_s11 + $0x38] sm:$0xff] }
 0x226   :  { %v383_v53 = vpop.f32.mrf.mxu2 }
 0x22e   :  { %v386_v54 = vpop.f32.mrf.mxu2 }
 0x236   :  { %v389_v55 = vpop.f32.mrf.mxu2 }
 0x23e   :  { %v392_v56 = vpop.f32.mrf.mxu2 }
 0x246   :  { %v395_v57 = vpop.f32.mrf.mxu2 }
 0x24e   :  { %v398_v58 = vpop.f32.mrf.mxu2 }
 0x256   :  { %v401_v59 = vpop.f32.mrf.mxu2 }
 0x25e   :  { %v404_v60 = vpop.f32.mrf.mxu2 }
 0x266   :  { %v407_v61 = vpop.f32.mrf.mxu2 }
 0x26e   :  { %v410_v62 = vpop.f32.mrf.mxu2 }
 0x276   :  { %v413_v63 = vpop.f32.mrf.mxu2 }
 0x27e   :  { %v416_v0 = vpop.f32.mrf.mxu2 }
 0x286   :  { %v419_v1 = vpop.f32.mrf.mxu2 }
 0x28e   :  { %v422_v2 = vpop.f32.mrf.mxu2 }
 0x296   :  { %v425_v3 = vpop.f32.mrf.mxu2 }
 0x29e   :  { %v428_v4 = vpop.f32.mrf.mxu2 }
 0x29f   :  { %431 = vmatpush.msrb.mxu2 %v428_v4  ;;  %2359 = vmatpush.msra.mxu3 %v428_v4  ;;  %v2996_v4 = vld [vmem:[%s3700_s11] sm:$0xff] }
 0x2a1   :  { %432 = vmatpush.msrb.mxu2 %v425_v3  ;;  %2360 = vmatpush.msra.mxu3 %v425_v3 }
 0x2a3   :  { %433 = vmatpush.msrb.mxu2 %v422_v2  ;;  %2361 = vmatpush.msra.mxu3 %v422_v2 }
 0x2a5   :  { %434 = vmatpush.msrb.mxu2 %v419_v1  ;;  %2362 = vmatpush.msra.mxu3 %v419_v1 }
 0x2a7   :  { %435 = vmatpush.msrb.mxu2 %v416_v0  ;;  %2363 = vmatpush.msra.mxu3 %v416_v0 }
 0x2a9   :  { %436 = vmatpush.msrb.mxu2 %v413_v63  ;;  %2364 = vmatpush.msra.mxu3 %v413_v63  ;;  %v2983_v63 = vld [vmem:[%s3700_s11 + $0x8] sm:$0xff] }
 0x2ab   :  { %437 = vmatpush.msrb.mxu2 %v410_v62  ;;  %2365 = vmatpush.msra.mxu3 %v410_v62 }
 0x2ad   :  { %438 = vmatpush.msrb.mxu2 %v407_v61  ;;  %2366 = vmatpush.msra.mxu3 %v407_v61  ;;  %v2975_v61 = vld [vmem:[%s3700_s11 + $0x10] sm:$0xff] }
 0x2af   :  { %439 = vmatpush.msrb.mxu2 %v404_v60  ;;  %2367 = vmatpush.msra.mxu3 %v404_v60 }
 0x2b1   :  { %440 = vmatpush.msrb.mxu2 %v401_v59  ;;  %2368 = vmatpush.msra.mxu3 %v401_v59  ;;  %v2968_v59 = vld [vmem:[%s3700_s11 + $0x18] sm:$0xff] }
 0x2b3   :  { %441 = vmatpush.msrb.mxu2 %v398_v58  ;;  %2369 = vmatpush.msra.mxu3 %v398_v58  ;;  %v2961_v58 = vld [vmem:[%s3700_s11 + $0x20] sm:$0xff] }
 0x2b5   :  { %442 = vmatpush.msrb.mxu2 %v395_v57  ;;  %2370 = vmatpush.msra.mxu3 %v395_v57  ;;  %v2953_v57 = vld [vmem:[%s3700_s11 + $0x28] sm:$0xff] }
 0x2b7   :  { %443 = vmatpush.msrb.mxu2 %v392_v56  ;;  %2371 = vmatpush.msra.mxu3 %v392_v56  ;;  %v93_v56 = vld [vmem:[%s3698_s2 + $0x10] sm:$0xff] }
 0x2b9   :  { %444 = vmatpush.msrb.mxu2 %v389_v55  ;;  %2372 = vmatpush.msra.mxu3 %v389_v55 }
 0x2bb   :  { %445 = vmatpush.msrb.mxu2 %v386_v54  ;;  %2373 = vmatpush.msra.mxu3 %v386_v54  ;;  %v2942_v54 = vld [vmem:[%s3700_s11 + $0x30] sm:$0xff] }
 0x2bd   :  { %446 = vmatpush.msrb.mxu2 %v383_v53  ;;  %2374 = vmatpush.msra.mxu3 %v383_v53 }
 0x2be   :  { %447 = vmatmul.f32.vlgmr.msrb.gmra.mxu2 %v2698_v33  ;;  %450 = vmatmul.f32.vlgmr.msra.gmra.mxu3 %v2703_v34  ;;  %v497_v33 = vld [vmem:[%s3696_s7 + $0x8] sm:$0xff]  ;;  %v496_v34 = vld [vmem:[%s3696_s7] sm:$0xff] }
 0x2bf   :  { %675 = vmatpush.msra.mxu2 %v498_v5  ;;  %871 = vmatpush.msrb.mxu3 %v2937_v52  ;;  %v94_v5 = vld [vmem:[%s3698_s2 + $0x18] sm:$0xff] }
 0x2c1   :  { %676 = vmatpush.msra.mxu2 %v497_v33  ;;  %872 = vmatpush.msrb.mxu3 %v2942_v54 }
 0x2c3   :  { %677 = vmatpush.msra.mxu2 %v496_v34  ;;  %873 = vmatpush.msrb.mxu3 %v2953_v57 }
 0x2c5   :  { %2018 = vmatpush.msrb.mxu2 %v2937_v52  ;;  %874 = vmatpush.msrb.mxu3 %v2961_v58 }
 0x2c6   :  { %453 = vmatmul.f32.gmra.mxu3 %v2710_v35  ;;  %v499_v35 = vld [vmem:[%s3697_s8] sm:$0xff] }
 0x2c7   :  { %563 = vmatpush.msra.mxu0 %v499_v35  ;;  %2019 = vmatpush.msrb.mxu2 %v2942_v54 }
 0x2c8   :  { %875 = vmatpush.msrb.mxu3 %v2968_v59 }
 0x2c9   :  { %1935 = vmatpush.msrb.mxu0 %v2837_v51  ;;  %2020 = vmatpush.msrb.mxu2 %v2953_v57 }
 0x2ca   :  { %876 = vmatpush.msrb.mxu3 %v2975_v61 }
 0x2cb   :  { %2021 = vmatpush.msrb.mxu2 %v2961_v58 }
 0x2cc   :  { %877 = vmatpush.msrb.mxu3 %v2983_v63 }
 0x2cd   :  { %2022 = vmatpush.msrb.mxu2 %v2968_v59 }
 0x2ce   :  { %456 = vmatmul.f32.gmra.mxu3 %v2716_v36  ;;  %v2869_v36 = vld [vmem:[%s3695_s9 + $0x10] sm:$0xff] }
 0x2cf   :  { %794 = vmatpush.msrb.mxu1 %v2869_v36  ;;  %1936 = vmatpush.msrb.mxu0 %v2869_v36 }
 0x2d0   :  { %2023 = vmatpush.msrb.mxu2 %v2975_v61  ;;  %878 = vmatpush.msrb.mxu3 %v2996_v4 }
 0x2d2   :  { %2024 = vmatpush.msrb.mxu2 %v2983_v63  ;;  %1037 = vmatpush.msra.mxu3 %v2937_v52 }
 0x2d4   :  { %2025 = vmatpush.msrb.mxu2 %v2996_v4  ;;  %1038 = vmatpush.msra.mxu3 %v2942_v54 }
 0x2d6   :  { %459 = vmatmul.f32.gmra.mxu3 %v2722_v37  ;;  %v91_v37 = vld [vmem:[%s3698_s2] sm:$0xff] }
 0x2d7   :  { %2279 = vmatmul.msk.f32.vlgmr.msra.gmra.mxu0 %vm120_vm0, %v91_v37  ;;  %1039 = vmatpush.msra.mxu3 %v2953_v57 }
 0x2d9   :  { %1040 = vmatpush.msra.mxu3 %v2961_v58 }
 0x2db   :  { %1041 = vmatpush.msra.mxu3 %v2968_v59 }
 0x2dd   :  { %1042 = vmatpush.msra.mxu3 %v2975_v61 }
 0x2de   :  { %462 = vmatmul.f32.gmra.mxu3 %v2728_v38  ;;  %v2878_v38 = vld [vmem:[%s3695_s9 + $0x8] sm:$0xff] }
 0x2df   :  { %795 = vmatpush.msrb.mxu1 %v2878_v38  ;;  %1937 = vmatpush.msrb.mxu0 %v2878_v38 }
 0x2e0   :  { %1043 = vmatpush.msra.mxu3 %v2983_v63 }
 0x2e2   :  { %1044 = vmatpush.msra.mxu3 %v2996_v4 }
 0x2e6   :  { %465 = vmatmul.f32.gmra.mxu3 %v2734_v39  ;;  %v2889_v39 = vld [vmem:[%s3695_s9] sm:$0xff] }
 0x2e7   :  { %796 = vmatpush.msrb.mxu1 %v2889_v39  ;;  %1938 = vmatpush.msrb.mxu0 %v2889_v39 }
 0x2e9   :  { %954 = vmatpush.msra.mxu1 %v2837_v51 }
 0x2eb   :  { %955 = vmatpush.msra.mxu1 %v2869_v36 }
 0x2ed   :  { %956 = vmatpush.msra.mxu1 %v2878_v38 }
 0x2ee   :  { %468 = vmatmul.f32.gmra.mxu3 %v2740_v40  ;;  %v92_v40 = vld [vmem:[%s3698_s2 + $0x8] sm:$0xff] }
 0x2ef   :  { %2280 = vmatmul.msk.f32.gmra.mxu0 %vm120_vm0, %v92_v40  ;;  %957 = vmatpush.msra.mxu1 %v2889_v39 }
 0x2f6   :  { %471 = vmatmul.f32.gmra.mxu3 %v2746_v41  ;;  %v2528_v41 = vmov 0.0  }
 0x2f7   :  { %797 = vmatmul.f32.vlgmr.msrb.gmra.mxu1 %v2528_v41  ;;  %2281 = vmatmul.msk.f32.gmra.mxu0 %vm120_vm0, %v93_v56 }
 0x2f8   :  { %1121 = vmatpush.msrb.mxu1 %v2837_v51 }
 0x2fa   :  { %1122 = vmatpush.msrb.mxu1 %v2869_v36 }
 0x2fc   :  { %1123 = vmatpush.msrb.mxu1 %v2878_v38 }
 0x2fe   :  { %474 = vmatmul.f32.gmra.mxu3 %v2752_v42  ;;  %1124 = vmatpush.msrb.mxu1 %v2889_v39  ;;  %v2909_v42 = vld [vmem:[%s3694_s6] ss:$0 sm:$0xff]  ;;  %s2529_s6 = smov 64  }
 0x2ff   :  { %800 = vmatmul.f32.gmra.mxu1 %v2528_v41  ;;  %2282 = vmatmul.msk.f32.gmra.mxu0 %vm120_vm0, %v94_v5 }
 0x306   :  { %477 = vmatmul.f32.gmra.mxu3 %v2758_v43 }
 0x30e   :  { %480 = vmatmul.f32.gmra.mxu3 %v2764_v44 }
 0x316   :  { %483 = vmatmul.f32.gmra.mxu3 %v2770_v45 }
 0x31e   :  { %486 = vmatmul.f32.gmra.mxu3 %v2776_v46 }
 0x326   :  { %489 = vmatmul.f32.gmra.mxu3 %v2788_v49 }
 0x32e   :  { %492 = vmatmul.f32.gmra.mxu3 %v2794_v50  ;;  %v2918_v50 = vld [vmem:[%s3699_s10] ss:$0 sm:$0xff] }
 0x341   :  { %v448_v43 = vpop.f32.mrf.mxu2  ;;  %v451_v45 = vpop.f32.mrf.mxu3 }
 0x342   :  { %v449_v44 = vadd.f32 %v2909_v42, %v448_v43  ;;  %v452_v46 = vadd.f32 %v2909_v42, %v451_v45 }
 0x344   :  { %2295 = vmatmul.msk.f32.vlgmr.msra.gmra.mxu2 %vm613_vm2, %v449_v44 }
 0x349   :  { %v454_v53 = vpop.f32.mrf.mxu3 }
 0x34a   :  { %v455_v55 = vadd.f32 %v2909_v42, %v454_v53  ;;  %v106_v53 = vld [vmem:[%s3698_s2 + $0x78] sm:$0xff] }
 0x34c   :  { %2296 = vmatmul.msk.f32.gmra.mxu2 %vm613_vm2, %v452_v46 }
 0x351   :  { %v457_v60 = vpop.f32.mrf.mxu3 }
 0x352   :  { %v458_v62 = vadd.f32 %v2909_v42, %v457_v60 }
 0x354   :  { %v565_v49 = vpop.f32.mrf.mxu0  ;;  %2297 = vmatmul.msk.f32.gmra.mxu2 %vm613_vm2, %v455_v55 }
 0x359   :  { %v460_v33 = vpop.f32.mrf.mxu3 }
 0x35a   :  { %v461_v34 = vadd.f32 %v2909_v42, %v460_v33 }
 0x35c   :  { %2298 = vmatmul.msk.f32.gmra.mxu2 %vm613_vm2, %v458_v62 }
 0x361   :  { %v463_v35 = vpop.f32.mrf.mxu3 }
 0x362   :  { %v464_v37 = vadd.f32 %v2909_v42, %v463_v35  ;;  %v3110_v35 = vld [vmem:[%s3701_s12] ss:$0 sm:$0xff] }
 0x364   :  { %2299 = vmatmul.msk.f32.gmra.mxu2 %vm613_vm2, %v461_v34 }
 0x369   :  { %v466_v40 = vpop.f32.mrf.mxu3 }
 0x36a   :  { %v467_v41 = vadd.f32 %v2909_v42, %v466_v40 }
 0x36c   :  { %v568_v11 = vpop.f32.mrf.mxu0  ;;  %2300 = vmatmul.msk.f32.gmra.mxu2 %vm613_vm2, %v464_v37 }
 0x371   :  { %v469_v45 = vpop.f32.mrf.mxu3 }
 0x372   :  { %v470_v46 = vadd.f32 %v2909_v42, %v469_v45 }
 0x374   :  { %v798_v7 = vpop.f32.mrf.mxu1  ;;  %2301 = vmatmul.msk.f32.gmra.mxu2 %vm613_vm2, %v467_v41  ;;  %v571_v55 = vpop.f32.mrf.mxu0 }
 0x37c   :  { %v801_v14 = vpop.f32.mrf.mxu1  ;;  %2302 = vmatmul.msk.f32.gmra.mxu2 %vm613_vm2, %v470_v46  ;;  %v574_v33 = vpop.f32.mrf.mxu0 }
 0x3c7   :  { %v679_v6 = vpop.f32.mrf.mxu2 }
 0x3c8   :  { %v680_v8 = vadd.f32 %v679_v6, %v565_v49 }
 0x3ca   :  { %v727_v9 = vadd.f32 %v2918_v50, %v680_v8 }
 0x3cc   :  { %v804_v10 = vadd.f32 %v798_v7, %v727_v9  ;;  %v472_v7 = vpop.f32.mrf.mxu3  ;;  %v95_v9 = vld [vmem:[%s3698_s2 + $0x20] sm:$0xff] }
 0x3cd   :  { %v473_v8 = vadd.f32 %v2909_v42, %v472_v7  ;;  %2283 = vmatmul.msk.f32.gmra.mxu0 %vm120_vm0, %v95_v9 }
 0x3ce   :  { %2385 = vtanh.f32 %v804_v10 }
 0x3cf   :  { %v682_v12 = vpop.f32.mrf.mxu2  ;;  %2303 = vmatmul.msk.f32.gmra.mxu2 %vm613_vm2, %v473_v8 }
 0x3d0   :  { %v683_v13 = vadd.f32 %v682_v12, %v568_v11  ;;  %v96_v12 = vld [vmem:[%s3698_s2 + $0x28] sm:$0xff] }
 0x3d2   :  { %v728_v15 = vadd.f32 %v2918_v50, %v683_v13 }
 0x3d4   :  { %v2386_v16 = vpop.eup %2385  ;;  %v805_v17 = vadd.f32 %v801_v14, %v728_v15  ;;  %v475_v10 = vpop.f32.mrf.mxu3  ;;  %v97_v15 = vld [vmem:[%s3698_s2 + $0x30] sm:$0xff] }
 0x3d5   :  { %816 = vrot.lane.b32.xlu0 %v2386_v16, %s2529_s6  ;;  %v808_v19 = vadd.f32 1.0, %v2386_v16  ;;  %v476_v11 = vadd.f32 %v2909_v42, %v475_v10  ;;  %2284 = vmatmul.msk.f32.gmra.mxu0 %vm120_vm0, %v96_v12 }
 0x3d6   :  { %2387 = vtanh.f32 %v805_v17 }
 0x3d7   :  { %v810_v20 = vmul.f32 0.5, %v808_v19  ;;  %2304 = vmatmul.msk.f32.gmra.mxu2 %vm613_vm2, %v476_v11  ;;  %v685_v56 = vpop.f32.mrf.mxu2 }
 0x3d8   :  { %v686_v60 = vadd.f32 %v685_v56, %v571_v55 }
 0x3d9   :  { %v812_v27 = vmul.f32 0.0, %v810_v20 }
 0x3dc   :  { %v2388_v18 = vpop.eup %2387  ;;  %v478_v13 = vpop.f32.mrf.mxu3 }
 0x3dd   :  { %818 = vrot.lane.b32.xlu0 %v2388_v18, %s2529_s6  ;;  %v809_v23 = vadd.f32 1.0, %v2388_v18  ;;  %v479_v14 = vadd.f32 %v2909_v42, %v478_v13  ;;  %2285 = vmatmul.msk.f32.gmra.mxu0 %vm120_vm0, %v97_v15  ;;  %v98_v18 = vld [vmem:[%s3698_s2 + $0x38] sm:$0xff] }
 0x3df   :  { %v811_v24 = vmul.f32 0.5, %v809_v23  ;;  %2305 = vmatmul.msk.f32.gmra.mxu2 %vm613_vm2, %v479_v14  ;;  %v688_v34 = vpop.f32.mrf.mxu2 }
 0x3e0   :  { %v689_v37 = vadd.f32 %v688_v34, %v574_v33 }
 0x3e1   :  { %v813_v30 = vmul.f32 0.0, %v811_v24 }
 0x3e4   :  { %v481_v16 = vpop.f32.mrf.mxu3 }
 0x3e5   :  { %v482_v17 = vadd.f32 %v2909_v42, %v481_v16  ;;  %2286 = vmatmul.msk.f32.gmra.mxu0 %vm120_vm0, %v98_v18 }
 0x3e7   :  { %2306 = vmatmul.msk.f32.gmra.mxu2 %vm613_vm2, %v482_v17 }
 0x3ec   :  { %v484_v19 = vpop.f32.mrf.mxu3 }
 0x447   :  { %v817_v21 = vpop.permute.xlu0 %816 }
 0x448   :  { %v822_v22 = vmul.f32 %v817_v21, %v810_v20  ;;  %v99_v21 = vld [vmem:[%s3698_s2 + $0x40] sm:$0xff] }
 0x449   :  { %2287 = vmatmul.msk.f32.gmra.mxu0 %vm120_vm0, %v99_v21 }
 0x44a   :  { %826 = vrot.lane.b32.xlu1 %v822_v22, %s2530_s3  ;;  %v487_v22 = vpop.f32.mrf.mxu3 }
 0x44b   :  { %v488_v23 = vadd.f32 %v2909_v42, %v487_v22 }
 0x44f   :  { %v819_v25 = vpop.permute.xlu0 %818 }
 0x450   :  { %v823_v26 = vmul.f32 %v819_v25, %v811_v24 }
 0x452   :  { %828 = vrot.lane.b32.xlu1 %v823_v26, %s2530_s3  ;;  %v490_v25 = vpop.f32.mrf.mxu3 }
 0x453   :  { %v491_v26 = vadd.f32 %v2909_v42, %v490_v25 }
 0x4bc   :  { %v827_v28 = vpop.permute.xlu1 %826 }
 0x4bd   :  { %v2926_v29 = vadd.f32 %v827_v28, %v812_v27  ;;  %v101_v27 = vld [vmem:[%s3698_s2 + $0x50] sm:$0xff]  ;;  %v493_v28 = vpop.f32.mrf.mxu3 }
 0x4bf   :  { %2389 = vtanh.f32 %v2926_v29 }
 0x4c4   :  { %v829_v31 = vpop.permute.xlu1 %828 }
 0x4c5   :  { %v2390_v32 = vpop.eup %2389  ;;  %v2929_v47 = vadd.f32 %v829_v31, %v813_v30  ;;  %v494_v30 = vadd.f32 %v2909_v42, %v493_v28  ;;  %v102_v31 = vld [vmem:[%s3698_s2 + $0x58] sm:$0xff] }
 0x4c6   :  { %838 = vrot.lane.b32.xlu2 %v2390_v32, %s2529_s6  ;;  %v103_v32 = vld [vmem:[%s3698_s2 + $0x60] sm:$0xff] }
 0x4c7   :  { %2391 = vtanh.f32 %v2929_v47 }
 0x4cd   :  { %v2392_v48 = vpop.eup %2391 }
 0x4ce   :  { %840 = vrot.lane.b32.xlu2 %v2392_v48, %s2529_s6  ;;  %v104_v48 = vld [vmem:[%s3698_s2 + $0x68] sm:$0xff] }
 0x520   :  { %v839_v0 = vpop.permute.xlu2 %838 }
 0x521   :  { %v844_v1 = vmul.f32 %v839_v0, %v810_v20  ;;  %v485_v20 = vadd.f32 %v2909_v42, %v484_v19  ;;  %v105_v42 = vld [vmem:[%s3698_s2 + $0x70] sm:$0xff]  ;;  %v2179_v0 = vsel %vm120_vm0, %v106_v53, 0.0 }
 0x522   :  { %v2178_v62 = vsel %vm120_vm0, %v105_v42, 0.0 }
 0x523   :  { %848 = vrot.lane.b32.xlu0 %v844_v1, %s2530_s3  ;;  %2307 = vmatmul.msk.f32.gmra.mxu2 %vm613_vm2, %v485_v20  ;;  %v3104_v1 = vadd.f32 %v2179_v0, %v2178_v62 }
 0x528   :  { %v841_v2 = vpop.permute.xlu2 %840 }
 0x529   :  { %v845_v3 = vmul.f32 %v841_v2, %v811_v24  ;;  %v100_v24 = vld [vmem:[%s3698_s2 + $0x48] sm:$0xff]  ;;  %v729_v2 = vadd.f32 %v2918_v50, %v686_v60 }
 0x52a   :  { %2288 = vmatmul.msk.f32.gmra.mxu0 %vm120_vm0, %v100_v24 }
 0x52b   :  { %850 = vrot.lane.b32.xlu1 %v845_v3, %s2530_s3  ;;  %2308 = vmatmul.msk.f32.gmra.mxu2 %vm613_vm2, %v488_v23 }
 0x532   :  { %2289 = vmatmul.msk.f32.gmra.mxu0 %vm120_vm0, %v101_v27 }
 0x533   :  { %2309 = vmatmul.msk.f32.gmra.mxu2 %vm613_vm2, %v491_v26 }
 0x53a   :  { %2290 = vmatmul.msk.f32.gmra.mxu0 %vm120_vm0, %v102_v31 }
 0x53b   :  { %2310 = vmatmul.msk.f32.gmra.mxu2 %vm613_vm2, %v494_v30 }
 0x542   :  { %2291 = vmatmul.msk.f32.gmra.mxu0 %vm120_vm0, %v103_v32 }
 0x54a   :  { %2292 = vmatmul.msk.f32.gmra.mxu0 %vm120_vm0, %v104_v48 }
 0x552   :  { %2293 = vmatmul.msk.f32.gmra.mxu0 %vm120_vm0, %v105_v42 }
 0x55a   :  { %2294 = vmatmul.msk.f32.gmra.mxu0 %vm120_vm0, %v106_v53 }
 0x595   :  { %v849_v43 = vpop.permute.xlu0 %848 }
 0x596   :  { %v854_v44 = vsel %vm777_vm3, %v849_v43, 0.0  ;;  %2313 = vmatmul.msk.f32.vlgmr.msra.gmra.mxu1 %vm777_vm3, %v849_v43 }
 0x597   :  { %2311 = vmatmul.msk.f32.vlgmr.msrb.gmra.mxu3 %vm856_vm4, %v854_v44  ;;  %1282 = vmatpush.msra.mxu1 %v2837_v51  ;;  %v730_v44 = vadd.f32 %v2918_v50, %v689_v37 }
 0x598   :  { %1198 = vmatpush.msrb.mxu3 %v2937_v52 }
 0x599   :  { %1283 = vmatpush.msra.mxu1 %v2869_v36 }
 0x59a   :  { %1199 = vmatpush.msrb.mxu3 %v2942_v54 }
 0x59b   :  { %1284 = vmatpush.msra.mxu1 %v2878_v38 }
 0x59c   :  { %1200 = vmatpush.msrb.mxu3 %v2953_v57 }
 0x59d   :  { %v851_v49 = vpop.permute.xlu1 %850  ;;  %1285 = vmatpush.msra.mxu1 %v2889_v39 }
 0x59e   :  { %2314 = vmatmul.msk.f32.gmra.mxu1 %vm777_vm3, %v851_v49  ;;  %v855_v6 = vsel %vm777_vm3, %v851_v49, 0.0  ;;  %1201 = vmatpush.msrb.mxu3 %v2961_v58 }
 0x59f   :  { %2312 = vmatmul.msk.f32.gmra.mxu3 %vm856_vm4, %v855_v6 }
 0x5a0   :  { %1202 = vmatpush.msrb.mxu3 %v2968_v59 }
 0x5a2   :  { %1203 = vmatpush.msrb.mxu3 %v2975_v61 }
 0x5a4   :  { %1204 = vmatpush.msrb.mxu3 %v2983_v63 }
 0x5a6   :  { %1205 = vmatpush.msrb.mxu3 %v2996_v4 }
 0x613   :  { %v959_v3 = vpop.f32.mrf.mxu1 }
 0x614   :  { %v965_v5 = vadd.f32 %v959_v3, %v729_v2 }
 0x616   :  { %2393 = vtanh.f32 %v965_v5 }
 0x61a   :  { %v880_v40 = vpop.f32.mrf.mxu3 }
 0x61b   :  { %v881_v41 = vadd.f32 %v3110_v35, %v880_v40  ;;  %v962_v45 = vpop.f32.mrf.mxu1 }
 0x61c   :  { %v2394_v43 = vpop.eup %2393  ;;  %v966_v46 = vadd.f32 %v962_v45, %v730_v44 }
 0x61d   :  { %2395 = vtanh.f32 %v881_v41  ;;  %977 = vrot.lane.b32.xlu0 %v2394_v43, %s2529_s6  ;;  %v969_v18 = vadd.f32 1.0, %v2394_v43 }
 0x61e   :  { %2397 = vtanh.f32 %v966_v46 }
 0x61f   :  { %v971_v19 = vmul.f32 0.5, %v969_v18 }
 0x621   :  { %v973_v56 = vmul.f32 %v971_v19, %v2926_v29 }
 0x622   :  { %v883_v49 = vpop.f32.mrf.mxu3 }
 0x623   :  { %v2396_v6 = vpop.eup %2395  ;;  %v884_v7 = vadd.f32 %v3110_v35, %v883_v49 }
 0x624   :  { %896 = vrot.lane.b32.xlu2 %v2396_v6, %s2529_s6  ;;  %v2398_v8 = vpop.eup %2397  ;;  %v888_v10 = vadd.f32 1.0, %v2396_v6 }
 0x625   :  { %2399 = vtanh.f32 %v884_v7  ;;  %v970_v14 = vadd.f32 1.0, %v2398_v8  ;;  %v577_v7 = vpop.f32.mrf.mxu0 }
 0x626   :  { %v890_v11 = vmul.f32 0.5, %v888_v10 }
 0x627   :  { %v972_v15 = vmul.f32 0.5, %v970_v14 }
 0x628   :  { %v892_v26 = vmul.f32 0.0, %v890_v11 }
 0x629   :  { %v974_v30 = vmul.f32 %v972_v15, %v2929_v47 }
 0x62b   :  { %v2400_v9 = vpop.eup %2399 }
 0x62c   :  { %979 = vrot.lane.b32.xlu2 %v2398_v8, %s2529_s6  ;;  %898 = vrot.lane.b32.xlu1 %v2400_v9, %s2529_s6  ;;  %v889_v22 = vadd.f32 1.0, %v2400_v9  ;;  %v691_v8 = vpop.f32.mrf.mxu2 }
 0x62d   :  { %v692_v9 = vadd.f32 %v691_v8, %v577_v7  ;;  %v580_v14 = vpop.f32.mrf.mxu0 }
 0x62e   :  { %v891_v23 = vmul.f32 0.5, %v889_v22 }
 0x62f   :  { %v731_v10 = vadd.f32 %v2918_v50, %v692_v9 }
 0x630   :  { %v893_v31 = vmul.f32 0.0, %v891_v23 }
 0x67e   :  { %v897_v12 = vpop.permute.xlu2 %896 }
 0x67f   :  { %v902_v13 = vmul.f32 %v897_v12, %v890_v11 }
 0x681   :  { %906 = vrot.lane.b32.xlu0 %v902_v13, %s2530_s3 }
 0x686   :  { %v980_v16 = vpop.permute.xlu2 %979 }
 0x687   :  { %v984_v17 = vmul.f32 %v980_v16, %v972_v15 }
 0x689   :  { %989 = vrot.lane.b32.xlu0 %v984_v17, %s2530_s3 }
 0x68f   :  { %v978_v20 = vpop.permute.xlu0 %977 }
 0x690   :  { %v983_v21 = vmul.f32 %v978_v20, %v971_v19 }
 0x692   :  { %987 = vrot.lane.b32.xlu1 %v983_v21, %s2530_s3 }
 0x69e   :  { %v899_v24 = vpop.permute.xlu1 %898 }
 0x69f   :  { %v903_v25 = vmul.f32 %v899_v24, %v891_v23 }
 0x6a1   :  { %908 = vrot.lane.b32.xlu2 %v903_v25, %s2530_s3 }
 0x6f3   :  { %v907_v27 = vpop.permute.xlu0 %906 }
 0x6f4   :  { %v3123_v28 = vadd.f32 %v907_v27, %v892_v26 }
 0x6f6   :  { %2401 = vtanh.f32 %v3123_v28 }
 0x6fb   :  { %v990_v32 = vpop.permute.xlu0 %989  ;;  %v909_v48 = vpop.permute.xlu2 %908 }
 0x6fc   :  { %v2402_v42 = vpop.eup %2401  ;;  %v3127_v53 = vadd.f32 %v990_v32, %v974_v30  ;;  %v3129_v55 = vadd.f32 %v909_v48, %v893_v31 }
 0x6fd   :  { %918 = vrot.lane.b32.xlu1 %v2402_v42, %s2529_s6 }
 0x6fe   :  { %2403 = vtanh.f32 %v3127_v53 }
 0x6ff   :  { %2405 = vtanh.f32 %v3129_v55 }
 0x704   :  { %v2404_v60 = vpop.eup %2403  ;;  %v988_v62 = vpop.permute.xlu1 %987 }
 0x705   :  { %v2406_v0 = vpop.eup %2405  ;;  %v3135_v47 = vadd.f32 %v988_v62, %v973_v56  ;;  %1001 = vrot.lane.b32.xlu1 %v2404_v60, %s2529_s6 }
 0x706   :  { %920 = vrot.lane.b32.xlu0 %v2406_v0, %s2529_s6 }
 0x707   :  { %2407 = vtanh.f32 %v3135_v47 }
 0x70d   :  { %v2408_v2 = vpop.eup %2407 }
 0x70e   :  { %999 = vrot.lane.b32.xlu2 %v2408_v2, %s2529_s6 }
 0x768   :  { %v1000_v3 = vpop.permute.xlu2 %999 }
 0x769   :  { %v1005_v5 = vmul.f32 %v1000_v3, %v971_v19 }
 0x76b   :  { %1009 = vrot.lane.b32.xlu2 %v1005_v5, %s2530_s3 }
 0x76f   :  { %v919_v33 = vpop.permute.xlu1 %918 }
 0x770   :  { %v3142_v29 = vmul.f32 %v919_v33, %v890_v11 }
 0x772   :  { %1015 = vrot.lane.b32.xlu0 %v3142_v29, %s2529_s6 }
 0x777   :  { %v1002_v34 = vpop.permute.xlu1 %1001 }
 0x778   :  { %v1006_v37 = vmul.f32 %v1002_v34, %v972_v15  ;;  %v921_v40 = vpop.permute.xlu0 %920  ;;  %v694_v15 = vpop.f32.mrf.mxu2 }
 0x779   :  { %v3146_v41 = vmul.f32 %v921_v40, %v891_v23  ;;  %v695_v16 = vadd.f32 %v694_v15, %v580_v14 }
 0x77a   :  { %1011 = vrot.lane.b32.xlu1 %v1006_v37, %s2530_s3 }
 0x77b   :  { %1017 = vrot.lane.b32.xlu2 %v3146_v41, %s2529_s6  ;;  %v732_v20 = vadd.f32 %v2918_v50, %v695_v16 }
 0x7c5   :  { %v1010_v43 = vpop.permute.xlu2 %1009 }
 0x7c6   :  { %2317 = vmatmul.msk.f32.vlgmr.msrb.gmra.mxu1 %vm777_vm3, %v1010_v43 }
 0x7c7   :  { %1441 = vmatpush.msrb.mxu1 %v2837_v51 }
 0x7c9   :  { %1442 = vmatpush.msrb.mxu1 %v2869_v36 }
 0x7cb   :  { %1443 = vmatpush.msrb.mxu1 %v2878_v38 }
 0x7cd   :  { %1444 = vmatpush.msrb.mxu1 %v2889_v39 }
 0x7d5   :  { %v1018_v46 = vpop.permute.xlu2 %1017 }
 0x7e4   :  { %v1016_v44 = vpop.permute.xlu0 %1015 }
 0x7e5   :  { %v1021_v45 = vsel %vm777_vm3, %v1010_v43, %v1016_v44 }
 0x7e6   :  { %2315 = vmatmul.msk.f32.vlgmr.msra.gmra.mxu3 %vm856_vm4, %v1021_v45 }
 0x7e7   :  { %1365 = vmatpush.msra.mxu3 %v2937_v52 }
 0x7e9   :  { %1366 = vmatpush.msra.mxu3 %v2942_v54 }
 0x7eb   :  { %1367 = vmatpush.msra.mxu3 %v2953_v57 }
 0x7ec   :  { %v1012_v49 = vpop.permute.xlu1 %1011 }
 0x7ed   :  { %2318 = vmatmul.msk.f32.gmra.mxu1 %vm777_vm3, %v1012_v49  ;;  %v1022_v6 = vsel %vm777_vm3, %v1012_v49, %v1018_v46  ;;  %1368 = vmatpush.msra.mxu3 %v2961_v58 }
 0x7ee   :  { %2316 = vmatmul.msk.f32.gmra.mxu3 %vm856_vm4, %v1022_v6 }
 0x7ef   :  { %1369 = vmatpush.msra.mxu3 %v2968_v59 }
 0x7f1   :  { %1370 = vmatpush.msra.mxu3 %v2975_v61 }
 0x7f3   :  { %1371 = vmatpush.msra.mxu3 %v2983_v63 }
 0x7f5   :  { %1372 = vmatpush.msra.mxu3 %v2996_v4 }
 0x843   :  { %v1126_v11 = vpop.f32.mrf.mxu1 }
 0x844   :  { %v1132_v12 = vadd.f32 %v1126_v11, %v731_v10 }
 0x846   :  { %2409 = vtanh.f32 %v1132_v12 }
 0x84c   :  { %v2410_v13 = vpop.eup %2409 }
 0x84d   :  { %1144 = vrot.lane.b32.xlu1 %v2410_v13, %s2529_s6  ;;  %v1136_v27 = vadd.f32 1.0, %v2410_v13 }
 0x84f   :  { %v1138_v30 = vmul.f32 0.5, %v1136_v27 }
 0x851   :  { %v1140_v40 = vmul.f32 %v1138_v30, %v3135_v47 }
 0x869   :  { %v1046_v17 = vpop.f32.mrf.mxu3 }
 0x86a   :  { %v1047_v18 = vadd.f32 %v3110_v35, %v1046_v17  ;;  %v1129_v19 = vpop.f32.mrf.mxu1 }
 0x86b   :  { %v1133_v21 = vadd.f32 %v1129_v19, %v732_v20 }
 0x86c   :  { %2411 = vtanh.f32 %v1047_v18 }
 0x86d   :  { %2413 = vtanh.f32 %v1133_v21 }
 0x871   :  { %v1049_v22 = vpop.f32.mrf.mxu3 }
 0x872   :  { %v2412_v23 = vpop.eup %2411  ;;  %v1050_v24 = vadd.f32 %v3110_v35, %v1049_v22 }
 0x873   :  { %1062 = vrot.lane.b32.xlu0 %v2412_v23, %s2529_s6  ;;  %v2414_v25 = vpop.eup %2413  ;;  %v1054_v62 = vadd.f32 1.0, %v2412_v23  ;;  %v583_v23 = vpop.f32.mrf.mxu0 }
 0x874   :  { %2415 = vtanh.f32 %v1050_v24  ;;  %v1137_v5 = vadd.f32 1.0, %v2414_v25  ;;  %v697_v24 = vpop.f32.mrf.mxu2 }
 0x875   :  { %v1056_v0 = vmul.f32 0.5, %v1054_v62 }
 0x876   :  { %v1139_v33 = vmul.f32 0.5, %v1137_v5 }
 0x877   :  { %v1058_v47 = vmul.f32 %v1056_v0, %v3123_v28 }
 0x878   :  { %v1141_v10 = vmul.f32 %v1139_v33, %v3127_v53 }
 0x87a   :  { %v2416_v26 = vpop.eup %2415 }
 0x87b   :  { %1146 = vrot.lane.b32.xlu0 %v2414_v25, %s2529_s6  ;;  %1064 = vrot.lane.b32.xlu2 %v2416_v26, %s2529_s6  ;;  %v1055_v48 = vadd.f32 1.0, %v2416_v26  ;;  %v698_v25 = vadd.f32 %v697_v24, %v583_v23 }
 0x87d   :  { %v1057_v42 = vmul.f32 0.5, %v1055_v48  ;;  %v733_v26 = vadd.f32 %v2918_v50, %v698_v25  ;;  %v700_v48 = vpop.f32.mrf.mxu2 }
 0x87f   :  { %v1059_v46 = vmul.f32 %v1057_v42, %v3129_v55 }
 0x8bf   :  { %v1145_v31 = vpop.permute.xlu1 %1144 }
 0x8c0   :  { %v1150_v32 = vmul.f32 %v1145_v31, %v1138_v30 }
 0x8c2   :  { %1154 = vrot.lane.b32.xlu2 %v1150_v32, %s2530_s3  ;;  %v586_v32 = vpop.f32.mrf.mxu0 }
 0x8d5   :  { %v1065_v56 = vpop.permute.xlu2 %1064 }
 0x8d6   :  { %v1069_v60 = vmul.f32 %v1065_v56, %v1057_v42 }
 0x8d8   :  { %1074 = vrot.lane.b32.xlu0 %v1069_v60, %s2530_s3 }
 0x8e5   :  { %v1063_v2 = vpop.permute.xlu0 %1062 }
 0x8e6   :  { %v1068_v3 = vmul.f32 %v1063_v2, %v1056_v0 }
 0x8e8   :  { %1072 = vrot.lane.b32.xlu1 %v1068_v3, %s2530_s3 }
 0x8ed   :  { %v1147_v34 = vpop.permute.xlu0 %1146 }
 0x8ee   :  { %v1151_v37 = vmul.f32 %v1147_v34, %v1139_v33 }
 0x8f0   :  { %1156 = vrot.lane.b32.xlu1 %v1151_v37, %s2530_s3 }
 0x91c   :  { %v1155_v43 = vpop.permute.xlu2 %1154 }
 0x91d   :  { %v3182_v44 = vadd.f32 %v1155_v43, %v1140_v40 }
 0x91f   :  { %2417 = vtanh.f32 %v3182_v44 }
 0x925   :  { %v2418_v45 = vpop.eup %2417 }
 0x926   :  { %1166 = vrot.lane.b32.xlu0 %v2418_v45, %s2529_s6 }
 0x94a   :  { %v1075_v49 = vpop.permute.xlu0 %1074 }
 0x94b   :  { %v3187_v6 = vadd.f32 %v1075_v49, %v1059_v46 }
 0x94d   :  { %2419 = vtanh.f32 %v3187_v6 }
 0x953   :  { %v2420_v7 = vpop.eup %2419 }
 0x954   :  { %1086 = vrot.lane.b32.xlu1 %v2420_v7, %s2529_s6 }
 0x95a   :  { %v1073_v8 = vpop.permute.xlu1 %1072 }
 0x95b   :  { %v3192_v9 = vadd.f32 %v1073_v8, %v1058_v47 }
 0x95d   :  { %2421 = vtanh.f32 %v3192_v9 }
 0x962   :  { %v1157_v11 = vpop.permute.xlu1 %1156 }
 0x963   :  { %v2422_v12 = vpop.eup %2421  ;;  %v3196_v55 = vadd.f32 %v1157_v11, %v1141_v10 }
 0x964   :  { %1084 = vrot.lane.b32.xlu2 %v2422_v12, %s2529_s6 }
 0x965   :  { %2423 = vtanh.f32 %v3196_v55 }
 0x96b   :  { %v2424_v13 = vpop.eup %2423 }
 0x96c   :  { %1168 = vrot.lane.b32.xlu2 %v2424_v13, %s2529_s6 }
 0x998   :  { %v1167_v14 = vpop.permute.xlu0 %1166 }
 0x999   :  { %v1172_v28 = vmul.f32 %v1167_v14, %v1138_v30 }
 0x99b   :  { %1176 = vrot.lane.b32.xlu1 %v1172_v28, %s2530_s3 }
 0x9be   :  { %v1085_v15 = vpop.permute.xlu2 %1084 }
 0x9bf   :  { %v1090_v16 = vmul.f32 %v1085_v15, %v1056_v0 }
 0x9c1   :  { %1094 = vrot.lane.b32.xlu0 %v1090_v16, %s2529_s6 }
 0x9c6   :  { %v1169_v53 = vpop.permute.xlu2 %1168  ;;  %v1087_v17 = vpop.permute.xlu1 %1086 }
 0x9c7   :  { %v1173_v18 = vmul.f32 %v1169_v53, %v1139_v33  ;;  %v1091_v19 = vmul.f32 %v1087_v17, %v1057_v42  ;;  %v701_v42 = vadd.f32 %v700_v48, %v586_v32 }
 0x9c9   :  { %1178 = vrot.lane.b32.xlu0 %v1173_v18, %s2530_s3  ;;  %1096 = vrot.lane.b32.xlu2 %v1091_v19, %s2529_s6  ;;  %v734_v0 = vadd.f32 %v2918_v50, %v701_v42 }
 0xa0d   :  { %v1177_v20 = vpop.permute.xlu1 %1176 }
 0xa0e   :  { %2321 = vmatmul.msk.f32.vlgmr.msra.gmra.mxu1 %vm777_vm3, %v1177_v20 }
 0xa0f   :  { %1609 = vmatpush.msra.mxu1 %v2837_v51 }
 0xa11   :  { %1610 = vmatpush.msra.mxu1 %v2869_v36 }
 0xa13   :  { %1611 = vmatpush.msra.mxu1 %v2878_v38 }
 0xa15   :  { %1612 = vmatpush.msra.mxu1 %v2889_v39 }
 0xa23   :  { %v3218_v51 = vpop.permute.xlu2 %1096 }
 0xa33   :  { %v3210_v21 = vpop.permute.xlu0 %1094 }
 0xa34   :  { %v1182_v22 = vsel %vm777_vm3, %v1177_v20, %v3210_v21 }
 0xa35   :  { %2319 = vmatmul.msk.f32.vlgmr.msrb.gmra.mxu3 %vm856_vm4, %v1182_v22 }
 0xa36   :  { %1526 = vmatpush.msrb.mxu3 %v2937_v52 }
 0xa38   :  { %1527 = vmatpush.msrb.mxu3 %v2942_v54 }
 0xa3a   :  { %1528 = vmatpush.msrb.mxu3 %v2953_v57 }
 0xa3b   :  { %v1179_v36 = vpop.permute.xlu0 %1178 }
 0xa3c   :  { %2322 = vmatmul.msk.f32.gmra.mxu1 %vm777_vm3, %v1179_v36  ;;  %v1183_v38 = vsel %vm777_vm3, %v1179_v36, %v3218_v51  ;;  %1529 = vmatpush.msrb.mxu3 %v2961_v58 }
 0xa3d   :  { %2320 = vmatmul.msk.f32.gmra.mxu3 %vm856_vm4, %v1183_v38 }
 0xa3e   :  { %1530 = vmatpush.msrb.mxu3 %v2968_v59 }
 0xa40   :  { %1531 = vmatpush.msrb.mxu3 %v2975_v61 }
 0xa42   :  { %1532 = vmatpush.msrb.mxu3 %v2983_v63 }
 0xa44   :  { %1533 = vmatpush.msrb.mxu3 %v2996_v4 }
 0xa8b   :  { %v1287_v27 = vpop.f32.mrf.mxu1 }
 0xa8c   :  { %v1293_v30 = vadd.f32 %v1287_v27, %v733_v26 }
 0xa8e   :  { %2425 = vtanh.f32 %v1293_v30 }
 0xa94   :  { %v2426_v31 = vpop.eup %2425 }
 0xa95   :  { %1305 = vrot.lane.b32.xlu2 %v2426_v31, %s2529_s6  ;;  %v1297_v40 = vadd.f32 1.0, %v2426_v31 }
 0xa97   :  { %v1299_v43 = vmul.f32 0.5, %v1297_v40 }
 0xa99   :  { %v1301_v53 = vmul.f32 %v1299_v43, %v3182_v44 }
 0xab8   :  { %v1207_v56 = vpop.f32.mrf.mxu3 }
 0xab9   :  { %v1208_v60 = vadd.f32 %v3110_v35, %v1207_v56  ;;  %v1290_v62 = vpop.f32.mrf.mxu1 }
 0xaba   :  { %v1294_v2 = vadd.f32 %v1290_v62, %v734_v0  ;;  %v2515_v0 = vld [vmem:[%s3695_s9 + $0x18] sm:$0xff] }
 0xabb   :  { %2427 = vtanh.f32 %v1208_v60 }
 0xabc   :  { %2429 = vtanh.f32 %v1294_v2  ;;  %v2516_v2 = vld [vmem:[%s3695_s9 + $0x10] sm:$0xff] }
 0xac0   :  { %v1210_v3 = vpop.f32.mrf.mxu3 }
 0xac1   :  { %v2428_v5 = vpop.eup %2427  ;;  %v1211_v33 = vadd.f32 %v3110_v35, %v1210_v3  ;;  %v2517_v3 = vld [vmem:[%s3695_s9 + $0x8] sm:$0xff] }
 0xac2   :  { %1223 = vrot.lane.b32.xlu1 %v2428_v5, %s2529_s6  ;;  %v2430_v34 = vpop.eup %2429  ;;  %v1215_v49 = vadd.f32 1.0, %v2428_v5 }
 0xac3   :  { %2431 = vtanh.f32 %v1211_v33  ;;  %v1298_v11 = vadd.f32 1.0, %v2430_v34 }
 0xac4   :  { %v1217_v7 = vmul.f32 0.5, %v1215_v49 }
 0xac5   :  { %v1300_v13 = vmul.f32 0.5, %v1298_v11 }
 0xac6   :  { %v1219_v20 = vmul.f32 %v1217_v7, %v3192_v9 }
 0xac7   :  { %v1302_v38 = vmul.f32 %v1300_v13, %v3196_v55 }
 0xac9   :  { %v2432_v37 = vpop.eup %2431 }
 0xaca   :  { %1225 = vrot.lane.b32.xlu0 %v2432_v37, %s2529_s6  ;;  %1307 = vrot.lane.b32.xlu1 %v2430_v34, %s2529_s6  ;;  %v1216_v10 = vadd.f32 1.0, %v2432_v37 }
 0xacc   :  { %v1218_v12 = vmul.f32 0.5, %v1216_v10 }
 0xace   :  { %v1220_v9 = vmul.f32 %v1218_v12, %v3187_v6 }
 0xaef   :  { %v1306_v45 = vpop.permute.xlu2 %1305 }
 0xaf0   :  { %v1311_v46 = vmul.f32 %v1306_v45, %v1299_v43 }
 0xaf2   :  { %1315 = vrot.lane.b32.xlu0 %v1311_v46, %s2530_s3 }
 0xb34   :  { %v1224_v47 = vpop.permute.xlu1 %1223 }
 0xb35   :  { %v1229_v8 = vmul.f32 %v1224_v47, %v1217_v7 }
 0xb37   :  { %1233 = vrot.lane.b32.xlu2 %v1229_v8, %s2530_s3 }
 0xb3c   :  { %v1226_v14 = vpop.permute.xlu0 %1225  ;;  %v1308_v28 = vpop.permute.xlu1 %1307 }
 0xb3d   :  { %v1230_v15 = vmul.f32 %v1226_v14, %v1218_v12  ;;  %v1312_v16 = vmul.f32 %v1308_v28, %v1300_v13 }
 0xb3f   :  { %1235 = vrot.lane.b32.xlu1 %v1230_v15, %s2530_s3  ;;  %1317 = vrot.lane.b32.xlu2 %v1312_v16, %s2530_s3 }
 0xb64   :  { %v1316_v17 = vpop.permute.xlu0 %1315 }
 0xb65   :  { %v3242_v18 = vadd.f32 %v1316_v17, %v1301_v53 }
 0xb67   :  { %2433 = vtanh.f32 %v3242_v18 }
 0xb6d   :  { %v2434_v19 = vpop.eup %2433 }
 0xb6e   :  { %1327 = vrot.lane.b32.xlu1 %v2434_v19, %s2529_s6 }
 0xb91   :  { %v1234_v22 = vpop.permute.xlu2 %1233 }
 0xb92   :  { %v3247_v36 = vadd.f32 %v1234_v22, %v1219_v20 }
 0xb94   :  { %2435 = vtanh.f32 %v3247_v36 }
 0xb99   :  { %v1318_v23 = vpop.permute.xlu2 %1317 }
 0xb9a   :  { %v2436_v24 = vpop.eup %2435  ;;  %v3251_v44 = vadd.f32 %v1318_v23, %v1302_v38 }
 0xb9b   :  { %1245 = vrot.lane.b32.xlu0 %v2436_v24, %s2529_s6 }
 0xb9c   :  { %2437 = vtanh.f32 %v3251_v44 }
 0xba2   :  { %v2438_v25 = vpop.eup %2437 }
 0xba3   :  { %1329 = vrot.lane.b32.xlu0 %v2438_v25, %s2529_s6 }
 0xbb1   :  { %v1236_v26 = vpop.permute.xlu1 %1235 }
 0xbb2   :  { %v3257_v27 = vadd.f32 %v1236_v26, %v1220_v9 }
 0xbb4   :  { %2439 = vtanh.f32 %v3257_v27 }
 0xbba   :  { %v2440_v30 = vpop.eup %2439 }
 0xbbb   :  { %1247 = vrot.lane.b32.xlu2 %v2440_v30, %s2529_s6 }
 0xbe0   :  { %v1328_v55 = vpop.permute.xlu1 %1327 }
 0xbe1   :  { %v1333_v31 = vmul.f32 %v1328_v55, %v1299_v43 }
 0xbe3   :  { %1337 = vrot.lane.b32.xlu1 %v1333_v31, %s2530_s3 }
 0xc0d   :  { %v1246_v32 = vpop.permute.xlu0 %1245 }
 0xc0e   :  { %v3262_v48 = vmul.f32 %v1246_v32, %v1217_v7 }
 0xc10   :  { %1343 = vrot.lane.b32.xlu2 %v3262_v48, %s2529_s6 }
 0xc15   :  { %v1248_v42 = vpop.permute.xlu2 %1247  ;;  %v1330_v6 = vpop.permute.xlu0 %1329 }
 0xc16   :  { %v3266_v56 = vmul.f32 %v1248_v42, %v1218_v12  ;;  %v1334_v60 = vmul.f32 %v1330_v6, %v1300_v13 }
 0xc18   :  { %1345 = vrot.lane.b32.xlu1 %v3266_v56, %s2529_s6  ;;  %1339 = vrot.lane.b32.xlu0 %v1334_v60, %s2530_s3 }
 0xc55   :  { %v1338_v62 = vpop.permute.xlu1 %1337 }
 0xc56   :  { %2325 = vmatmul.msk.f32.vlgmr.msrb.gmra.mxu1 %vm777_vm3, %v1338_v62 }
 0xc57   :  { %1775 = vmatpush.msrb.mxu1 %v2515_v0 }
 0xc59   :  { %1776 = vmatpush.msrb.mxu1 %v2516_v2 }
 0xc5b   :  { %1777 = vmatpush.msrb.mxu1 %v2517_v3 }
 0xc5d   :  { %1778 = vmatpush.msrb.mxu1 %v2889_v39 }
 0xc6a   :  { %v1344_v5 = vpop.permute.xlu2 %1343 }
 0xc6b   :  { %v1349_v33 = vsel %vm777_vm3, %v1338_v62, %v1344_v5 }
 0xc6c   :  { %2323 = vmatmul.msk.f32.vlgmr.msra.gmra.mxu3 %vm856_vm4, %v1349_v33 }
 0xc6d   :  { %1692 = vmatpush.msra.mxu3 %v2937_v52 }
 0xc6f   :  { %1693 = vmatpush.msra.mxu3 %v2942_v54  ;;  %v589_v54 = vpop.f32.mrf.mxu0 }
 0xc71   :  { %1694 = vmatpush.msra.mxu3 %v2953_v57  ;;  %v703_v57 = vpop.f32.mrf.mxu2 }
 0xc72   :  { %v704_v37 = vadd.f32 %v703_v57, %v589_v54 }
 0xc73   :  { %1695 = vmatpush.msra.mxu3 %v2961_v58 }
 0xc74   :  { %v735_v58 = vadd.f32 %v2918_v50, %v704_v37  ;;  %v3302_v50 = vld [vmem:[%s3699_s10] ss:$0 sm:$0xff] }
 0xc75   :  { %1696 = vmatpush.msra.mxu3 %v2968_v59 }
 0xc77   :  { %1697 = vmatpush.msra.mxu3 %v2975_v61  ;;  %v592_v45 = vpop.f32.mrf.mxu0 }
 0xc79   :  { %1698 = vmatpush.msra.mxu3 %v2983_v63  ;;  %v706_v46 = vpop.f32.mrf.mxu2 }
 0xc7a   :  { %v707_v49 = vadd.f32 %v706_v46, %v592_v45  ;;  %v2521_v45 = vld [vmem:[%s3700_s11 + $0x28] sm:$0xff]  ;;  %v2522_v46 = vld [vmem:[%s3700_s11 + $0x20] sm:$0xff] }
 0xc7b   :  { %1699 = vmatpush.msra.mxu3 %v2996_v4 }
 0xc7c   :  { %v736_v7 = vadd.f32 %v3302_v50, %v707_v49  ;;  %v2523_v49 = vld [vmem:[%s3700_s11 + $0x18] sm:$0xff] }
 0xc8a   :  { %v1346_v39 = vpop.permute.xlu1 %1345  ;;  %v1340_v34 = vpop.permute.xlu0 %1339 }
 0xc8b   :  { %2326 = vmatmul.msk.f32.gmra.mxu1 %vm777_vm3, %v1340_v34  ;;  %v1350_v52 = vsel %vm777_vm3, %v1340_v34, %v1346_v39 }
 0xc8c   :  { %2324 = vmatmul.msk.f32.gmra.mxu3 %vm856_vm4, %v1350_v52 }
 0xcd3   :  { %v1446_v59 = vpop.f32.mrf.mxu1 }
 0xcd4   :  { %v1452_v40 = vadd.f32 %v1446_v59, %v735_v58 }
 0xcd6   :  { %2441 = vtanh.f32 %v1452_v40 }
 0xcdc   :  { %v2442_v61 = vpop.eup %2441 }
 0xcdd   :  { %1464 = vrot.lane.b32.xlu0 %v2442_v61, %s2529_s6  ;;  %v1456_v14 = vadd.f32 1.0, %v2442_v61 }
 0xcdf   :  { %v1458_v28 = vmul.f32 0.5, %v1456_v14  ;;  %v709_v14 = vpop.f32.mrf.mxu2 }
 0xce1   :  { %v1460_v55 = vmul.f32 %v1458_v28, %v3242_v18 }
 0xcef   :  { %v1374_v63 = vpop.f32.mrf.mxu3 }
 0xcf0   :  { %v1375_v4 = vadd.f32 %v3110_v35, %v1374_v63 }
 0xcf2   :  { %2443 = vtanh.f32 %v1375_v4  ;;  %v2519_v4 = vld [vmem:[%s3700_s11 + $0x38] sm:$0xff] }
 0xcf8   :  { %v2444_v43 = vpop.eup %2443 }
 0xcf9   :  { %1390 = vrot.lane.b32.xlu2 %v2444_v43, %s2529_s6  ;;  %v1382_v15 = vadd.f32 1.0, %v2444_v43  ;;  %v2520_v43 = vld [vmem:[%s3700_s11 + $0x30] sm:$0xff] }
 0xcfb   :  { %v1384_v17 = vmul.f32 0.5, %v1382_v15 }
 0xcfd   :  { %v1386_v42 = vmul.f32 %v1384_v17, %v3247_v36 }
 0xd08   :  { %v1449_v47 = vpop.f32.mrf.mxu1 }
 0xd09   :  { %v1453_v8 = vadd.f32 %v1449_v47, %v736_v7  ;;  %v2524_v7 = vld [vmem:[%s3700_s11 + $0x10] sm:$0xff]  ;;  %v2525_v47 = vld [vmem:[%s3700_s11 + $0x8] sm:$0xff] }
 0xd0b   :  { %2445 = vtanh.f32 %v1453_v8  ;;  %v2526_v8 = vld [vmem:[%s3700_s11] sm:$0xff] }
 0xd0f   :  { %v1377_v10 = vpop.f32.mrf.mxu3 }
 0xd10   :  { %v1378_v11 = vadd.f32 %v3110_v35, %v1377_v10 }
 0xd11   :  { %v2446_v12 = vpop.eup %2445 }
 0xd12   :  { %2447 = vtanh.f32 %v1378_v11  ;;  %1466 = vrot.lane.b32.xlu2 %v2446_v12, %s2529_s6  ;;  %v1457_v22 = vadd.f32 1.0, %v2446_v12 }
 0xd14   :  { %v1459_v38 = vmul.f32 0.5, %v1457_v22 }
 0xd16   :  { %v1461_v18 = vmul.f32 %v1459_v38, %v3251_v44 }
 0xd18   :  { %v2448_v13 = vpop.eup %2447 }
 0xd19   :  { %1392 = vrot.lane.b32.xlu1 %v2448_v13, %s2529_s6  ;;  %v1383_v25 = vadd.f32 1.0, %v2448_v13  ;;  %v595_v13 = vpop.f32.mrf.mxu0 }
 0xd1b   :  { %v1385_v9 = vmul.f32 0.5, %v1383_v25 }
 0xd1d   :  { %v1387_v36 = vmul.f32 %v1385_v9, %v3257_v27 }
 0xd4f   :  { %v1465_v16 = vpop.permute.xlu0 %1464 }
 0xd50   :  { %v1470_v53 = vmul.f32 %v1465_v16, %v1458_v28 }
 0xd52   :  { %1474 = vrot.lane.b32.xlu1 %v1470_v53, %s2530_s3 }
 0xd53   :  { %v1391_v19 = vpop.permute.xlu2 %1390 }
 0xd54   :  { %v1396_v20 = vmul.f32 %v1391_v19, %v1384_v17 }
 0xd56   :  { %1400 = vrot.lane.b32.xlu0 %v1396_v20, %s2530_s3 }
 0xd6c   :  { %v1467_v23 = vpop.permute.xlu2 %1466 }
 0xd6d   :  { %v1471_v24 = vmul.f32 %v1467_v23, %v1459_v38  ;;  %v712_v23 = vpop.f32.mrf.mxu2 }
 0xd6f   :  { %1476 = vrot.lane.b32.xlu0 %v1471_v24, %s2530_s3 }
 0xd8b   :  { %v1393_v26 = vpop.permute.xlu1 %1392 }
 0xd8c   :  { %v1397_v30 = vmul.f32 %v1393_v26, %v1385_v9 }
 0xd8e   :  { %1402 = vrot.lane.b32.xlu2 %v1397_v30, %s2530_s3 }
 0xdc4   :  { %v1475_v31 = vpop.permute.xlu1 %1474 }
 0xdc5   :  { %v3313_v32 = vadd.f32 %v1475_v31, %v1460_v55 }
 0xdc7   :  { %2449 = vtanh.f32 %v3313_v32 }
 0xdc8   :  { %v1401_v6 = vpop.permute.xlu0 %1400 }
 0xdc9   :  { %v3317_v60 = vadd.f32 %v1401_v6, %v1386_v42 }
 0xdcb   :  { %2451 = vtanh.f32 %v3317_v60 }
 0xdcd   :  { %v2450_v62 = vpop.eup %2449 }
 0xdce   :  { %1486 = vrot.lane.b32.xlu2 %v2450_v62, %s2529_s6 }
 0xdd1   :  { %v2452_v0 = vpop.eup %2451 }
 0xdd2   :  { %1412 = vrot.lane.b32.xlu1 %v2452_v0, %s2529_s6 }
 0xde1   :  { %v1477_v2 = vpop.permute.xlu0 %1476 }
 0xde2   :  { %v3323_v3 = vadd.f32 %v1477_v2, %v1461_v18 }
 0xde4   :  { %2453 = vtanh.f32 %v3323_v3 }
 0xde8   :  { %v1403_v5 = vpop.permute.xlu2 %1402 }
 0xde9   :  { %v3327_v33 = vadd.f32 %v1403_v5, %v1387_v36 }
 0xdea   :  { %v2454_v39 = vpop.eup %2453 }
 0xdeb   :  { %2455 = vtanh.f32 %v3327_v33  ;;  %1488 = vrot.lane.b32.xlu1 %v2454_v39, %s2529_s6 }
 0xdf1   :  { %v2456_v34 = vpop.eup %2455 }
 0xdf2   :  { %1414 = vrot.lane.b32.xlu0 %v2456_v34, %s2529_s6 }
 0xe28   :  { %v1487_v52 = vpop.permute.xlu2 %1486 }
 0xe29   :  { %v1492_v44 = vmul.f32 %v1487_v52, %v1458_v28  ;;  %v710_v28 = vadd.f32 %v709_v14, %v595_v13 }
 0xe2b   :  { %1496 = vrot.lane.b32.xlu2 %v1492_v44, %s2530_s3  ;;  %v737_v15 = vadd.f32 %v3302_v50, %v710_v28 }
 0xe44   :  { %v1413_v54 = vpop.permute.xlu1 %1412 }
 0xe45   :  { %v3333_v57 = vmul.f32 %v1413_v54, %v1384_v17 }
 0xe47   :  { %1504 = vrot.lane.b32.xlu0 %v3333_v57, %s2529_s6 }
 0xe5d   :  { %v1489_v27 = vpop.permute.xlu1 %1488 }
 0xe5e   :  { %v1493_v37 = vmul.f32 %v1489_v27, %v1459_v38  ;;  %v598_v38 = vpop.f32.mrf.mxu0 }
 0xe5f   :  { %v713_v24 = vadd.f32 %v712_v23, %v598_v38 }
 0xe60   :  { %1498 = vrot.lane.b32.xlu1 %v1493_v37, %s2530_s3 }
 0xe61   :  { %v738_v25 = vadd.f32 %v3302_v50, %v713_v24 }
 0xe64   :  { %v1415_v58 = vpop.permute.xlu0 %1414 }
 0xe65   :  { %v3338_v59 = vmul.f32 %v1415_v58, %v1385_v9 }
 0xe66   :  { %v601_v24 = vpop.f32.mrf.mxu0 }
 0xe67   :  { %1506 = vrot.lane.b32.xlu2 %v3338_v59, %s2529_s6 }
 0xe85   :  { %v1497_v40 = vpop.permute.xlu2 %1496 }
 0xe86   :  { %2329 = vmatmul.msk.f32.vlgmr.msra.gmra.mxu1 %vm777_vm3, %v1497_v40 }
 0xeb9   :  { %v1505_v61 = vpop.permute.xlu0 %1504 }
 0xeba   :  { %v1510_v63 = vsel %vm777_vm3, %v1497_v40, %v1505_v61 }
 0xebb   :  { %2327 = vmatmul.msk.f32.vlgmr.msrb.gmra.mxu3 %vm856_vm4, %v1510_v63 }
 0xebc   :  { %1852 = vmatpush.msrb.mxu3 %v2519_v4 }
 0xebe   :  { %1853 = vmatpush.msrb.mxu3 %v2520_v43 }
 0xec0   :  { %1854 = vmatpush.msrb.mxu3 %v2521_v45 }
 0xec1   :  { %v1507_v10 = vpop.permute.xlu2 %1506 }
 0xec2   :  { %1855 = vmatpush.msrb.mxu3 %v2522_v46 }
 0xec4   :  { %1856 = vmatpush.msrb.mxu3 %v2523_v49 }
 0xec6   :  { %1857 = vmatpush.msrb.mxu3 %v2524_v7 }
 0xec8   :  { %1858 = vmatpush.msrb.mxu3 %v2525_v47 }
 0xeca   :  { %1859 = vmatpush.msrb.mxu3 %v2526_v8 }
 0xed2   :  { %v1499_v11 = vpop.permute.xlu1 %1498 }
 0xed3   :  { %v1511_v12 = vsel %vm777_vm3, %v1499_v11, %v1507_v10  ;;  %2330 = vmatmul.msk.f32.gmra.mxu1 %vm777_vm3, %v1499_v11 }
 0xed4   :  { %2328 = vmatmul.msk.f32.gmra.mxu3 %vm856_vm4, %v1511_v12 }
 0xf03   :  { %v1614_v16 = vpop.f32.mrf.mxu1 }
 0xf04   :  { %v1620_v53 = vadd.f32 %v1614_v16, %v737_v15 }
 0xf06   :  { %2457 = vtanh.f32 %v1620_v53 }
 0xf0c   :  { %v2458_v17 = vpop.eup %2457 }
 0xf0d   :  { %1632 = vrot.lane.b32.xlu1 %v2458_v17, %s2529_s6  ;;  %v1624_v6 = vadd.f32 1.0, %v2458_v17 }
 0xf0f   :  { %v1626_v62 = vmul.f32 0.5, %v1624_v6 }
 0xf11   :  { %v1628_v40 = vmul.f32 %v1626_v62, %v3313_v32 }
 0xf3e   :  { %v1535_v19 = vpop.f32.mrf.mxu3 }
 0xf3f   :  { %v1536_v20 = vadd.f32 %v3110_v35, %v1535_v19 }
 0xf41   :  { %2459 = vtanh.f32 %v1536_v20 }
 0xf47   :  { %v2460_v22 = vpop.eup %2459 }
 0xf48   :  { %1551 = vrot.lane.b32.xlu0 %v2460_v22, %s2529_s6  ;;  %v1543_v2 = vadd.f32 1.0, %v2460_v22 }
 0xf4a   :  { %v1545_v5 = vmul.f32 0.5, %v1543_v2 }
 0xf4c   :  { %v1547_v43 = vmul.f32 %v1545_v5, %v3317_v60 }
 0xf50   :  { %v1617_v9 = vpop.f32.mrf.mxu1 }
 0xf51   :  { %v1621_v26 = vadd.f32 %v1617_v9, %v738_v25  ;;  %v715_v25 = vpop.f32.mrf.mxu2 }
 0xf52   :  { %v716_v9 = vadd.f32 %v715_v25, %v601_v24 }
 0xf53   :  { %2461 = vtanh.f32 %v1621_v26 }
 0xf54   :  { %v739_v26 = vadd.f32 %v3302_v50, %v716_v9 }
 0xf57   :  { %v1538_v30 = vpop.f32.mrf.mxu3 }
 0xf58   :  { %v1539_v55 = vadd.f32 %v3110_v35, %v1538_v30 }
 0xf59   :  { %v2462_v31 = vpop.eup %2461  ;;  %v718_v6 = vpop.f32.mrf.mxu2 }
 0xf5a   :  { %2463 = vtanh.f32 %v1539_v55  ;;  %1634 = vrot.lane.b32.xlu0 %v2462_v31, %s2529_s6  ;;  %v1625_v54 = vadd.f32 1.0, %v2462_v31 }
 0xf5c   :  { %v1627_v27 = vmul.f32 0.5, %v1625_v54 }
 0xf5e   :  { %v1629_v60 = vmul.f32 %v1627_v27, %v3323_v3 }
 0xf60   :  { %v2464_v42 = vpop.eup %2463 }
 0xf61   :  { %1553 = vrot.lane.b32.xlu2 %v2464_v42, %s2529_s6  ;;  %v1544_v36 = vadd.f32 1.0, %v2464_v42  ;;  %v604_v42 = vpop.f32.mrf.mxu0 }
 0xf63   :  { %v1546_v34 = vmul.f32 0.5, %v1544_v36 }
 0xf65   :  { %v1548_v46 = vmul.f32 %v1546_v34, %v3327_v33 }
 0xf7f   :  { %v1633_v0 = vpop.permute.xlu1 %1632 }
 0xf80   :  { %v1638_v18 = vmul.f32 %v1633_v0, %v1626_v62  ;;  %v719_v0 = vadd.f32 %v718_v6, %v604_v42 }
 0xf82   :  { %1642 = vrot.lane.b32.xlu2 %v1638_v18, %s2530_s3  ;;  %v3425_v18 = vld [vmem:[%s3701_s12] ss:$0 sm:$0xff]  ;;  %s2531_s12 = smov 96  }
 0xfba   :  { %v1552_v39 = vpop.permute.xlu0 %1551 }
 0xfbb   :  { %v1557_v52 = vmul.f32 %v1552_v39, %v1545_v5  ;;  %v1554_v35 = vpop.permute.xlu2 %1553 }
 0xfbc   :  { %v1558_v44 = vmul.f32 %v1554_v35, %v1546_v34 }
 0xfbd   :  { %1561 = vrot.lane.b32.xlu1 %v1557_v52, %s2530_s3 }
 0xfbe   :  { %1563 = vrot.lane.b32.xlu0 %v1558_v44, %s2530_s3 }
 0xfcc   :  { %v1635_v37 = vpop.permute.xlu0 %1634 }
 0xfcd   :  { %v1639_v58 = vmul.f32 %v1635_v37, %v1627_v27 }
 0xfcf   :  { %1644 = vrot.lane.b32.xlu1 %v1639_v58, %s2530_s3 }
 0xfdc   :  { %v1643_v61 = vpop.permute.xlu2 %1642 }
 0xfdd   :  { %v3385_v63 = vadd.f32 %v1643_v61, %v1628_v40 }
 0xfdf   :  { %2465 = vtanh.f32 %v3385_v63 }
 0xfe5   :  { %v2466_v4 = vpop.eup %2465 }
 0xfe6   :  { %1654 = vrot.lane.b32.xlu0 %v2466_v4, %s2529_s6 }
0x102f   :  { %v1562_v45 = vpop.permute.xlu1 %1561 }
0x1030   :  { %v3391_v49 = vadd.f32 %v1562_v45, %v1547_v43  ;;  %v1564_v7 = vpop.permute.xlu0 %1563 }
0x1031   :  { %v3393_v47 = vadd.f32 %v1564_v7, %v1548_v46 }
0x1032   :  { %2467 = vtanh.f32 %v3391_v49 }
0x1033   :  { %2469 = vtanh.f32 %v3393_v47 }
0x1038   :  { %v2468_v32 = vpop.eup %2467 }
0x1039   :  { %v2470_v8 = vpop.eup %2469  ;;  %1573 = vrot.lane.b32.xlu2 %v2468_v32, %s2529_s6 }
0x103a   :  { %1575 = vrot.lane.b32.xlu1 %v2470_v8, %s2529_s6 }
0x1041   :  { %v1645_v10 = vpop.permute.xlu1 %1644 }
0x1042   :  { %v3400_v11 = vadd.f32 %v1645_v10, %v1629_v60 }
0x1044   :  { %2471 = vtanh.f32 %v3400_v11 }
0x104a   :  { %v2472_v33 = vpop.eup %2471 }
0x104b   :  { %1656 = vrot.lane.b32.xlu2 %v2472_v33, %s2529_s6 }
0x1058   :  { %v1655_v12 = vpop.permute.xlu0 %1654 }
0x1059   :  { %v1660_v13 = vmul.f32 %v1655_v12, %v1626_v62 }
0x105b   :  { %1664 = vrot.lane.b32.xlu0 %v1660_v13, %s2530_s3 }
0x1093   :  { %v1574_v14 = vpop.permute.xlu2 %1573 }
0x1094   :  { %v3405_v28 = vmul.f32 %v1574_v14, %v1545_v5  ;;  %v740_v5 = vadd.f32 %v3302_v50, %v719_v0 }
0x1096   :  { %1670 = vrot.lane.b32.xlu1 %v3405_v28, %s2529_s6 }
0x10a5   :  { %v1657_v15 = vpop.permute.xlu2 %1656 }
0x10a6   :  { %v1661_v3 = vmul.f32 %v1657_v15, %v1627_v27 }
0x10a8   :  { %1666 = vrot.lane.b32.xlu2 %v1661_v3, %s2530_s3 }
0x10ac   :  { %v1576_v16 = vpop.permute.xlu1 %1575 }
0x10ad   :  { %v3410_v53 = vmul.f32 %v1576_v16, %v1546_v34 }
0x10af   :  { %1672 = vrot.lane.b32.xlu0 %v3410_v53, %s2529_s6 }
0x10cd   :  { %v1665_v17 = vpop.permute.xlu0 %1664 }
0x10ce   :  { %2333 = vmatmul.msk.f32.vlgmr.msrb.gmra.mxu1 %vm777_vm3, %v1665_v17 }
0x1102   :  { %v1667_v19 = vpop.permute.xlu2 %1666 }
0x1103   :  { %2334 = vmatmul.msk.f32.gmra.mxu1 %vm777_vm3, %v1667_v19 }
0x1108   :  { %v1671_v20 = vpop.permute.xlu1 %1670 }
0x1109   :  { %v1676_v22 = vsel %vm777_vm3, %v1665_v17, %v1671_v20 }
0x110a   :  { %2331 = vmatmul.msk.f32.vlgmr.msra.gmra.mxu3 %vm856_vm4, %v1676_v22 }
0x1121   :  { %v1673_v38 = vpop.permute.xlu0 %1672 }
0x1122   :  { %v1677_v23 = vsel %vm777_vm3, %v1667_v19, %v1673_v38 }
0x1123   :  { %2332 = vmatmul.msk.f32.gmra.mxu3 %vm856_vm4, %v1677_v23 }
0x114b   :  { %v1780_v30 = vpop.f32.mrf.mxu1 }
0x114c   :  { %v1786_v55 = vadd.f32 %v1780_v30, %v739_v26 }
0x114e   :  { %2473 = vtanh.f32 %v1786_v55 }
0x1154   :  { %v2474_v31 = vpop.eup %2473 }
0x1155   :  { %1798 = vrot.lane.b32.xlu2 %v2474_v31, %s2529_s6  ;;  %v1790_v27 = vadd.f32 1.0, %v2474_v31 }
0x1157   :  { %v1792_v58 = vmul.f32 0.5, %v1790_v27 }
0x1159   :  { %v1794_v13 = vmul.f32 %v1792_v58, %v3385_v63 }
0x1180   :  { %v1783_v36 = vpop.f32.mrf.mxu1 }
0x1181   :  { %v1787_v39 = vadd.f32 %v1783_v36, %v740_v5  ;;  %v607_v5 = vpop.f32.mrf.mxu0 }
0x118d   :  { %v1701_v62 = vpop.f32.mrf.mxu3 }
0x118e   :  { %v1702_v2 = vadd.f32 %v3425_v18, %v1701_v62 }
0x1190   :  { %2475 = vtanh.f32 %v1702_v2 }
0x1191   :  { %2477 = vtanh.f32 %v1787_v39 }
0x1196   :  { %v2476_v34 = vpop.eup %2475 }
0x1197   :  { %1717 = vrot.lane.b32.xlu1 %v2476_v34, %s2529_s6  ;;  %v2478_v52 = vpop.eup %2477  ;;  %v1709_v61 = vadd.f32 1.0, %v2476_v34 }
0x1198   :  { %v1791_v46 = vadd.f32 1.0, %v2478_v52 }
0x1199   :  { %v1711_v4 = vmul.f32 0.5, %v1709_v61 }
0x119a   :  { %v1793_v7 = vmul.f32 0.5, %v1791_v46 }
0x119b   :  { %v1713_v16 = vmul.f32 %v1711_v4, %v3391_v49 }
0x119c   :  { %v1795_v20 = vmul.f32 %v1793_v7, %v3400_v11 }
0x119f   :  { %1800 = vrot.lane.b32.xlu1 %v2478_v52, %s2529_s6  ;;  %v721_v52 = vpop.f32.mrf.mxu2 }
0x11a6   :  { %v1704_v35 = vpop.f32.mrf.mxu3 }
0x11a7   :  { %v1705_v44 = vadd.f32 %v3425_v18, %v1704_v35  ;;  %v610_v35 = vpop.f32.mrf.mxu0 }
0x11a9   :  { %2479 = vtanh.f32 %v1705_v44  ;;  %v722_v44 = vadd.f32 %v721_v52, %v607_v5 }
0x11af   :  { %v2480_v54 = vpop.eup %2479  ;;  %v1799_v37 = vpop.permute.xlu2 %1798 }
0x11b0   :  { %1719 = vrot.lane.b32.xlu0 %v2480_v54, %s2529_s6  ;;  %v1804_v40 = vmul.f32 %v1799_v37, %v1792_v58  ;;  %v1710_v60 = vadd.f32 1.0, %v2480_v54  ;;  %v741_v54 = vadd.f32 %v3302_v50, %v722_v44 }
0x11b2   :  { %v1712_v10 = vmul.f32 0.5, %v1710_v60 }
0x11b4   :  { %v1714_v49 = vmul.f32 %v1712_v10, %v3393_v47 }
0x11b8   :  { %1808 = vrot.lane.b32.xlu0 %v1804_v40, %s2530_s3  ;;  %v724_v40 = vpop.f32.mrf.mxu2 }
0x1209   :  { %v1718_v43 = vpop.permute.xlu1 %1717 }
0x120a   :  { %v1723_v45 = vmul.f32 %v1718_v43, %v1711_v4 }
0x120c   :  { %1727 = vrot.lane.b32.xlu2 %v1723_v45, %s2530_s3 }
0x1211   :  { %v1801_v32 = vpop.permute.xlu1 %1800 }
0x1212   :  { %v1805_v8 = vmul.f32 %v1801_v32, %v1793_v7 }
0x1214   :  { %1810 = vrot.lane.b32.xlu2 %v1805_v8, %s2530_s3 }
0x1222   :  { %v1720_v33 = vpop.permute.xlu0 %1719 }
0x1223   :  { %v1724_v12 = vmul.f32 %v1720_v33, %v1712_v10 }
0x1225   :  { %1729 = vrot.lane.b32.xlu1 %v1724_v12, %s2530_s3 }
0x122a   :  { %v1809_v14 = vpop.permute.xlu0 %1808 }
0x122b   :  { %v3438_v15 = vadd.f32 %v1809_v14, %v1794_v13 }
0x122d   :  { %2481 = vtanh.f32 %v3438_v15 }
0x1233   :  { %v2482_v3 = vpop.eup %2481 }
0x1234   :  { %1820 = vrot.lane.b32.xlu1 %v2482_v3, %s2529_s6 }
0x1266   :  { %v1728_v17 = vpop.permute.xlu2 %1727 }
0x1267   :  { %v3443_v19 = vadd.f32 %v1728_v17, %v1713_v16 }
0x1269   :  { %2483 = vtanh.f32 %v3443_v19 }
0x126e   :  { %v1811_v22 = vpop.permute.xlu2 %1810 }
0x126f   :  { %v2484_v38 = vpop.eup %2483  ;;  %v3447_v63 = vadd.f32 %v1811_v22, %v1795_v20 }
0x1270   :  { %1739 = vrot.lane.b32.xlu0 %v2484_v38, %s2529_s6 }
0x1271   :  { %2485 = vtanh.f32 %v3447_v63 }
0x1277   :  { %v2486_v23 = vpop.eup %2485 }
0x1278   :  { %1822 = vrot.lane.b32.xlu0 %v2486_v23, %s2529_s6 }
0x1297   :  { %v1730_v24 = vpop.permute.xlu1 %1729 }
0x1298   :  { %v3453_v25 = vadd.f32 %v1730_v24, %v1714_v49 }
0x129a   :  { %2487 = vtanh.f32 %v3453_v25 }
0x12a0   :  { %v2488_v9 = vpop.eup %2487 }
0x12a1   :  { %1741 = vrot.lane.b32.xlu2 %v2488_v9, %s2529_s6 }
0x12a6   :  { %v1821_v11 = vpop.permute.xlu1 %1820 }
0x12a7   :  { %v1826_v26 = vmul.f32 %v1821_v11, %v1792_v58 }
0x12a9   :  { %1830 = vrot.lane.b32.xlu2 %v1826_v26, %s2530_s3 }
0x12e2   :  { %v1740_v30 = vpop.permute.xlu0 %1739 }
0x12e3   :  { %v1745_v55 = vmul.f32 %v1740_v30, %v1711_v4  ;;  %v725_v4 = vadd.f32 %v724_v40, %v610_v35 }
0x12e5   :  { %1749 = vrot.lane.b32.xlu1 %v1745_v55, %s2529_s6  ;;  %v742_v46 = vadd.f32 %v3302_v50, %v725_v4 }
0x12ea   :  { %v1823_v31 = vpop.permute.xlu0 %1822 }
0x12eb   :  { %v1827_v42 = vmul.f32 %v1823_v31, %v1793_v7 }
0x12ed   :  { %1832 = vrot.lane.b32.xlu1 %v1827_v42, %s2530_s3 }
0x12fb   :  { %v1742_v47 = vpop.permute.xlu2 %1741 }
0x12fc   :  { %v1746_v6 = vmul.f32 %v1742_v47, %v1712_v10 }
0x12fe   :  { %1751 = vrot.lane.b32.xlu0 %v1746_v6, %s2529_s6 }
0x1303   :  { %v1831_v62 = vpop.permute.xlu2 %1830 }
0x1304   :  { %2337 = vmatmul.msk.f32.vlgmr.msrb.gmra.mxu0 %vm777_vm3, %v1831_v62 }
0x1357   :  { %v3462_v0 = vpop.permute.xlu1 %1749 }
0x1358   :  { %v1836_v2 = vsel %vm777_vm3, %v1831_v62, %v3462_v0 }
0x1359   :  { %2335 = vmatmul.msk.f32.vlgmr.msrb.gmra.mxu3 %vm856_vm4, %v1836_v2 }
0x135f   :  { %v1833_v36 = vpop.permute.xlu1 %1832 }
0x1360   :  { %2338 = vmatmul.msk.f32.gmra.mxu0 %vm777_vm3, %v1833_v36 }
0x1370   :  { %v3468_v39 = vpop.permute.xlu0 %1751 }
0x1371   :  { %v1837_v34 = vsel %vm777_vm3, %v1833_v36, %v3468_v39 }
0x1372   :  { %2336 = vmatmul.msk.f32.gmra.mxu3 %vm856_vm4, %v1837_v34 }
0x1381   :  { %v1940_v27 = vpop.f32.mrf.mxu0 }
0x1382   :  { %v1946_v37 = vadd.f32 %v1940_v27, %v741_v54 }
0x1384   :  { %2489 = vtanh.f32 %v1946_v37 }
0x138a   :  { %v2490_v58 = vpop.eup %2489 }
0x138b   :  { %1958 = vrot.lane.b32.xlu0 %v2490_v58, %s2529_s6  ;;  %v1950_v12 = vadd.f32 1.0, %v2490_v58 }
0x138d   :  { %v1952_v14 = vmul.f32 0.5, %v1950_v12 }
0x138f   :  { %v1954_v30 = vmul.f32 %v1952_v14, %v3438_v15 }
0x13dc   :  { %v1861_v61 = vpop.f32.mrf.mxu3 }
0x13dd   :  { %v1862_v43 = vadd.f32 %v3425_v18, %v1861_v61  ;;  %v1943_v45 = vpop.f32.mrf.mxu0 }
0x13de   :  { %v1947_v7 = vadd.f32 %v1943_v45, %v742_v46 }
0x13df   :  { %2491 = vtanh.f32 %v1862_v43 }
0x13e0   :  { %2493 = vtanh.f32 %v1947_v7 }
0x13e5   :  { %v2492_v32 = vpop.eup %2491 }
0x13e6   :  { %1877 = vrot.lane.b32.xlu2 %v2492_v32, %s2529_s6  ;;  %v2494_v8 = vpop.eup %2493  ;;  %v1869_v50 = vadd.f32 1.0, %v2492_v32 }
0x13e7   :  { %v1951_v22 = vadd.f32 1.0, %v2494_v8 }
0x13e8   :  { %v1871_v16 = vmul.f32 0.5, %v1869_v50 }
0x13e9   :  { %v1953_v38 = vmul.f32 0.5, %v1951_v22 }
0x13ea   :  { %v1873_v47 = vmul.f32 %v1871_v16, %v3443_v19 }
0x13eb   :  { %v1955_v2 = vmul.f32 %v1953_v38, %v3447_v63 }
0x13ee   :  { %1960 = vrot.lane.b32.xlu2 %v2494_v8, %s2529_s6 }
0x13f5   :  { %v1864_v60 = vpop.f32.mrf.mxu3 }
0x13f6   :  { %v1865_v10 = vadd.f32 %v3425_v18, %v1864_v60 }
0x13f8   :  { %2495 = vtanh.f32 %v1865_v10 }
0x13fd   :  { %v1959_v13 = vpop.permute.xlu0 %1958 }
0x13fe   :  { %v2496_v33 = vpop.eup %2495  ;;  %v1964_v3 = vmul.f32 %v1959_v13, %v1952_v14 }
0x13ff   :  { %1879 = vrot.lane.b32.xlu1 %v2496_v33, %s2529_s6  ;;  %v1870_v24 = vadd.f32 1.0, %v2496_v33 }
0x1401   :  { %v1872_v9 = vmul.f32 0.5, %v1870_v24  ;;  %v2108_v24 = vld [vmem:[%s3702_s13 + $0xe8] sm:$0xff] }
0x1403   :  { %v1874_v52 = vmul.f32 %v1872_v9, %v3453_v25 }
0x1407   :  { %1968 = vrot.lane.b32.xlu1 %v1964_v3, %s2530_s3 }
0x1440   :  { %v1878_v17 = vpop.permute.xlu2 %1877 }
0x1441   :  { %v1883_v20 = vmul.f32 %v1878_v17, %v1871_v16 }
0x1443   :  { %1887 = vrot.lane.b32.xlu0 %v1883_v20, %s2530_s3 }
0x1448   :  { %v1961_v23 = vpop.permute.xlu2 %1960 }
0x1449   :  { %v1965_v49 = vmul.f32 %v1961_v23, %v1953_v38 }
0x144b   :  { %1970 = vrot.lane.b32.xlu0 %v1965_v49, %s2530_s3 }
0x1471   :  { %v1880_v11 = vpop.permute.xlu1 %1879 }
0x1472   :  { %v1884_v26 = vmul.f32 %v1880_v11, %v1872_v9  ;;  %v2107_v11 = vld [vmem:[%s3702_s13 + $0xe0] sm:$0xff] }
0x1474   :  { %1889 = vrot.lane.b32.xlu2 %v1884_v26, %s2530_s3 }
0x1479   :  { %v1969_v55 = vpop.permute.xlu1 %1968 }
0x147a   :  { %v1974_v31 = vadd.f32 %v1969_v55, %v1954_v30  ;;  %v2091_v30 = vld [vmem:[%s3702_s13 + $0x60] sm:$0xff] }
0x147c   :  { %2497 = vtanh.f32 %v1974_v31  ;;  %v2106_v31 = vld [vmem:[%s3702_s13 + $0xd8] sm:$0xff] }
0x1482   :  { %v2498_v42 = vpop.eup %2497 }
0x1483   :  { %1980 = vrot.lane.b32.xlu2 %v2498_v42, %s2529_s6 }
0x14b5   :  { %v1888_v6 = vpop.permute.xlu0 %1887 }
0x14b6   :  { %v3488_v62 = vadd.f32 %v1888_v6, %v1873_v47  ;;  %v2090_v47 = vld [vmem:[%s3702_s13 + $0x58] sm:$0xff]  ;;  %v2105_v6 = vld [vmem:[%s3702_s13 + $0xd0] sm:$0xff] }
0x14b8   :  { %2499 = vtanh.f32 %v3488_v62 }
0x14bd   :  { %v1971_v36 = vpop.permute.xlu0 %1970 }
0x14be   :  { %v2500_v5 = vpop.eup %2499  ;;  %v1975_v34 = vadd.f32 %v1971_v36, %v1955_v2  ;;  %v2104_v2 = vld [vmem:[%s3702_s13 + $0xc8] sm:$0xff] }
0x14bf   :  { %1899 = vrot.lane.b32.xlu1 %v2500_v5, %s2529_s6  ;;  %v2088_v36 = vld [vmem:[%s3702_s13 + $0x48] sm:$0xff]  ;;  %v2103_v5 = vld [vmem:[%s3702_s13 + $0xc0] sm:$0xff] }
0x14c0   :  { %2501 = vtanh.f32 %v1975_v34 }
0x14c6   :  { %v2502_v15 = vpop.eup %2501 }
0x14c7   :  { %1982 = vrot.lane.b32.xlu1 %v2502_v15, %s2529_s6  ;;  %v2102_v15 = vld [vmem:[%s3702_s13 + $0xb8] sm:$0xff] }
0x14ce   :  { %v1890_v35 = vpop.permute.xlu2 %1889 }
0x14cf   :  { %v3495_v19 = vadd.f32 %v1890_v35, %v1874_v52  ;;  %v2101_v35 = vld [vmem:[%s3702_s13 + $0xb0] sm:$0xff] }
0x14d1   :  { %2503 = vtanh.f32 %v3495_v19 }
0x14d7   :  { %v2504_v44 = vpop.eup %2503 }
0x14d8   :  { %1901 = vrot.lane.b32.xlu0 %v2504_v44, %s2529_s6 }
0x14dd   :  { %v1981_v63 = vpop.permute.xlu2 %1980 }
0x14de   :  { %v1986_v54 = vmul.f32 %v1981_v63, %v1952_v14 }
0x14e0   :  { %1990 = vrot.lane.b32.xlu2 %v1986_v54, %s2530_s3  ;;  %v2087_v54 = vld [vmem:[%s3702_s13 + $0x40] sm:$0xff] }
0x1531   :  { %v1900_v27 = vpop.permute.xlu1 %1899 }
0x1532   :  { %v1905_v37 = vmul.f32 %v1900_v27, %v1871_v16  ;;  %v2099_v27 = vld [vmem:[%s3702_s13 + $0xa0] sm:$0xff] }
0x1534   :  { %1996 = vrot.lane.b32.xlu0 %v1905_v37, %s2529_s6 }
0x1539   :  { %v1983_v58 = vpop.permute.xlu1 %1982 }
0x153a   :  { %v1987_v40 = vmul.f32 %v1983_v58, %v1953_v38  ;;  %v1991_v4 = vpop.permute.xlu2 %1990  ;;  %v2084_v58 = vld [vmem:[%s3702_s13 + $0x28] sm:$0xff] }
0x153c   :  { %1992 = vrot.lane.b32.xlu1 %v1987_v40, %s2530_s3  ;;  %v2096_v40 = vld [vmem:[%s3702_s13 + $0x88] sm:$0xff] }
0x154a   :  { %v1902_v25 = vpop.permute.xlu0 %1901 }
0x154b   :  { %v1906_v61 = vmul.f32 %v1902_v25, %v1872_v9  ;;  %v2092_v9 = vld [vmem:[%s3702_s13 + $0x68] sm:$0xff]  ;;  %v2083_v25 = vld [vmem:[%s3702_s13 + $0x20] sm:$0xff] }
0x154d   :  { %1998 = vrot.lane.b32.xlu2 %v1906_v61, %s2529_s6 }
0x15a6   :  { %v1997_v43 = vpop.permute.xlu0 %1996 }
0x15a7   :  { %v2002_v45 = vsel %vm777_vm3, %v1991_v4, %v1997_v43  ;;  %v1999_v46 = vpop.permute.xlu2 %1998  ;;  %v2082_v4 = vld [vmem:[%s3702_s13 + $0x18] sm:$0xff]  ;;  %v2081_v43 = vld [vmem:[%s3702_s13 + $0x10] sm:$0xff] }
0x15a8   :  { %2339 = vmatmul.msk.f32.vlgmr.msrb.gmra.mxu2 %vm856_vm4, %v2002_v45  ;;  %v2080_v45 = vld [vmem:[%s3702_s13 + $0x8] sm:$0xff] }
0x15ae   :  { %v1993_v7 = vpop.permute.xlu1 %1992 }
0x15af   :  { %v2003_v32 = vsel %vm777_vm3, %v1993_v7, %v1999_v46  ;;  %v2079_v46 = vld [vmem:[%s3702_s13] sm:$0xff] }
0x15b0   :  { %2340 = vmatmul.msk.f32.gmra.mxu2 %vm856_vm4, %v2003_v32 }
0x162b   :  { %v2027_v8 = vpop.f32.mrf.mxu2 }
0x162c   :  { %v2028_v60 = vadd.f32 %v3425_v18, %v2027_v8 }
0x162e   :  { %2505 = vtanh.f32 %v2028_v60 }
0x1633   :  { %v2030_v10 = vpop.f32.mrf.mxu2 }
0x1634   :  { %v2506_v33 = vpop.eup %2505  ;;  %v2031_v12 = vadd.f32 %v3425_v18, %v2030_v10 }
0x1635   :  { %2043 = vrot.lane.b32.xlu0 %v2506_v33, %s2529_s6  ;;  %v2035_v14 = vadd.f32 1.0, %v2506_v33 }
0x1636   :  { %2507 = vtanh.f32 %v2031_v12 }
0x1637   :  { %v3515_v3 = vmul.f32 0.5, %v2035_v14 }
0x1639   :  { %v2039_v38 = vmul.f32 %v3515_v3, %v3488_v62  ;;  %v2089_v62 = vld [vmem:[%s3702_s13 + $0x50] sm:$0xff] }
0x163c   :  { %v2508_v13 = vpop.eup %2507 }
0x163d   :  { %2045 = vrot.lane.b32.xlu1 %v2508_v13, %s2529_s6  ;;  %v2036_v18 = vadd.f32 1.0, %v2508_v13 }
0x163f   :  { %v3519_v17 = vmul.f32 0.5, %v2036_v18 }
0x1641   :  { %v2040_v26 = vmul.f32 %v3519_v17, %v3495_v19  ;;  %v2100_v19 = vld [vmem:[%s3702_s13 + $0xa8] sm:$0xff] }
0x1645   :  { %1583 = vrot.lane.b32.xlu1 %v3405_v28, %s2530_s3 }
0x164d   :  { %928 = vrot.lane.b32.xlu1 %v3142_v29, %s2530_s3 }
0x16a7   :  { %v2044_v50 = vpop.permute.xlu0 %2043 }
0x16a8   :  { %v2049_v16 = vmul.f32 %v2044_v50, %v3515_v3  ;;  %v2532_v50 = vmov 16.0  }
0x16aa   :  { %2053 = vrot.lane.b32.xlu2 %v2049_v16, %s2530_s3  ;;  %v2181_v16 = vrot.slane %v3104_v1, 4 }
0x16af   :  { %v2046_v20 = vpop.permute.xlu1 %2045 }
0x16b0   :  { %v2050_v22 = vmul.f32 %v2046_v20, %v3519_v17  ;;  %v2182_v20 = vadd.f32 %v2181_v16, %v3104_v1 }
0x16b2   :  { %2055 = vrot.lane.b32.xlu0 %v2050_v22, %s2530_s3  ;;  %v2183_v22 = vrot.slane %v2182_v20, 2 }
0x16b7   :  { %v1584_v28 = vpop.permute.xlu1 %1583 }
0x16b8   :  { %1589 = vst.msk [vmem:[#allocation3 + $0x8] sm:$0xff] %vm777_vm3, %v1584_v28 }
0x16b9   :  { %1755 = vst.msk [vmem:[#allocation3 + $0x8] sm:$0xff] %vm1100_vm5, %v3462_v0 }
0x16ba   :  { %1909 = vrot.lane.b32.xlu0 %v1905_v37, %s2531_s12  ;;  %v2097_v37 = vld [vmem:[%s3702_s13 + $0x90] sm:$0xff] }
0x16bf   :  { %v929_v29 = vpop.permute.xlu1 %928 }
0x16c0   :  { %934 = vst.msk [vmem:[#allocation3] sm:$0xff] %vm777_vm3, %v929_v29  ;;  %v2184_v29 = vadd.f32 %v2183_v22, %v2182_v20 }
0x16c1   :  { %1101 = vst.msk [vmem:[#allocation3] sm:$0xff] %vm1100_vm5, %v3210_v21  ;;  %v2110_v21 = vld [vmem:[%s3702_s13 + $0xf8] sm:$0xff] }
0x16c2   :  { %1585 = vrot.lane.b32.xlu0 %v3410_v53, %s2530_s3  ;;  %2138 = vmatpush.msra.mxu3 %v2110_v21  ;;  %v2094_v53 = vld [vmem:[%s3702_s13 + $0x78] sm:$0xff]  ;;  %v2190_v21 = vld [vmem:[%s3704_s15 + $0x10] sm:$0xff] }
0x16c3   :  { %2115 = vmatpush.msra.mxu1 %v2094_v53 }
0x16ca   :  { %930 = vrot.lane.b32.xlu0 %v3146_v41, %s2530_s3  ;;  %v2109_v41 = vld [vmem:[%s3702_s13 + $0xf0] sm:$0xff] }
0x16cb   :  { %2139 = vmatpush.msra.mxu3 %v2109_v41  ;;  %v2189_v41 = vld [vmem:[%s3704_s15 + $0x8] sm:$0xff] }
0x16cd   :  { %2140 = vmatpush.msra.mxu3 %v2108_v24  ;;  %v2188_v24 = vld [vmem:[%s3704_s15] sm:$0xff] }
0x16cf   :  { %2141 = vmatpush.msra.mxu3 %v2107_v11  ;;  %v2384_v11 = vld [vmem:[%s3703_s14] ss:$0 sm:$0xff] }
0x16d1   :  { %2142 = vmatpush.msra.mxu3 %v2106_v31 }
0x16d3   :  { %2143 = vmatpush.msra.mxu3 %v2105_v6 }
0x16d5   :  { %2144 = vmatpush.msra.mxu3 %v2104_v2 }
0x16d7   :  { %2145 = vmatpush.msra.mxu3 %v2103_v5 }
0x16d9   :  { %2146 = vmatpush.msra.mxu3 %v2102_v15 }
0x16db   :  { %2147 = vmatpush.msra.mxu3 %v2101_v35 }
0x16dd   :  { %2148 = vmatpush.msra.mxu3 %v2100_v19 }
0x16df   :  { %2149 = vmatpush.msra.mxu3 %v2099_v27  ;;  %v2239_v27 = vld [vmem:[%s3706_s17] sm:$0x1] }
0x1704   :  { %v2054_v23 = vpop.permute.xlu2 %2053 }
0x1705   :  { %v2059_v0 = vadd.f32 %v2054_v23, %v2039_v38  ;;  %v2185_v23 = vrot.slane %v2184_v29, 1 }
0x1707   :  { %2509 = vtanh.f32 %v2059_v0 }
0x170d   :  { %v2510_v49 = vpop.eup %2509 }
0x170e   :  { %2065 = vrot.lane.b32.xlu2 %v2510_v49, %s2529_s6  ;;  %v2186_v49 = vadd.f32 %v2185_v23, %v2184_v29 }
0x1716   :  { %1255 = vrot.lane.b32.xlu2 %v3262_v48, %s2531_s12  ;;  %v2093_v48 = vld [vmem:[%s3702_s13 + $0x70] sm:$0xff] }
0x1717   :  { %2116 = vmatpush.msra.mxu1 %v2093_v48  ;;  %v2192_v48 = vld [vmem:[%s3705_s16] sm:$0xff] }
0x1718   :  { %2211 = vmatpush.msra.mxu0 %v2192_v48 }
0x1719   :  { %2117 = vmatpush.msra.mxu1 %v2092_v9 }
0x171b   :  { %2118 = vmatpush.msra.mxu1 %v2091_v30 }
0x171d   :  { %2119 = vmatpush.msra.mxu1 %v2090_v47 }
0x171e   :  { %1911 = vrot.lane.b32.xlu2 %v1906_v61, %s2531_s12  ;;  %v2095_v61 = vld [vmem:[%s3702_s13 + $0x80] sm:$0xff] }
0x171f   :  { %2120 = vmatpush.msra.mxu1 %v2089_v62 }
0x1721   :  { %2121 = vmatpush.msra.mxu1 %v2088_v36 }
0x1723   :  { %2122 = vmatpush.msra.mxu1 %v2087_v54 }
0x1724   :  { %v2056_v55 = vpop.permute.xlu0 %2055 }
0x1725   :  { %v2060_v42 = vadd.f32 %v2056_v55, %v2040_v26 }
0x1727   :  { %2511 = vtanh.f32 %v2060_v42 }
0x1728   :  { %2513 = vrcp.f32 %v2532_v50 }
0x172c   :  { %v1910_v34 = vpop.permute.xlu0 %1909 }
0x172d   :  { %v2512_v52 = vpop.eup %2511  ;;  %1915 = vst.msk [vmem:[#allocation3 + $0x8] sm:$0xff] %vm1261_vm6, %v1910_v34 }
0x172e   :  { %2067 = vrot.lane.b32.xlu1 %v2512_v52, %s2529_s6  ;;  %v2514_v18 = vpop.eup %2513 }
0x172f   :  { %vm2175_vm8 = vweird.f32 %v2514_v18 }
0x1734   :  { %v1586_v44 = vpop.permute.xlu0 %1585 }
0x1735   :  { %1590 = vst.msk [vmem:[#allocation3 + $0x18] sm:$0xff] %vm777_vm3, %v1586_v44 }
0x1736   :  { %1756 = vst.msk [vmem:[#allocation3 + $0x18] sm:$0xff] %vm1100_vm5, %v3468_v39  ;;  %1257 = vrot.lane.b32.xlu1 %v3266_v56, %s2531_s12  ;;  %v2086_v56 = vld [vmem:[%s3702_s13 + $0x38] sm:$0xff] }
0x1737   :  { %v2098_v39 = vld [vmem:[%s3702_s13 + $0x98] sm:$0xff]  ;;  %2123 = vmatpush.msra.mxu1 %v2086_v56 }
0x1738   :  { %2150 = vmatpush.msra.mxu3 %v2098_v39 }
0x173a   :  { %2151 = vmatpush.msra.mxu3 %v2097_v37 }
0x173c   :  { %v931_v63 = vpop.permute.xlu0 %930  ;;  %2152 = vmatpush.msra.mxu3 %v2096_v40 }
0x173d   :  { %935 = vst.msk [vmem:[#allocation3 + $0x10] sm:$0xff] %vm777_vm3, %v931_v63 }
0x173e   :  { %1102 = vst.msk [vmem:[#allocation3 + $0x10] sm:$0xff] %vm1100_vm5, %v3218_v51  ;;  %v2085_v51 = vld [vmem:[%s3702_s13 + $0x30] sm:$0xff]  ;;  %2153 = vmatpush.msra.mxu3 %v2095_v61 }
0x173f   :  { %2124 = vmatpush.msra.mxu1 %v2085_v51 }
0x1741   :  { %2125 = vmatpush.msra.mxu1 %v2084_v58 }
0x1743   :  { %2126 = vmatpush.msra.mxu1 %v2083_v25 }
0x1745   :  { %2127 = vmatpush.msra.mxu1 %v2082_v4 }
0x1747   :  { %2128 = vmatpush.msra.mxu1 %v2081_v43 }
0x1749   :  { %2129 = vmatpush.msra.mxu1 %v2080_v45 }
0x174b   :  { %2130 = vmatpush.msra.mxu1 %v2079_v46 }
0x1768   :  { %v2066_v7 = vpop.permute.xlu2 %2065 }
0x1769   :  { %v2071_v32 = vmul.f32 %v2066_v7, %v3515_v3 }
0x176b   :  { %2073 = vst.msk [vmem:[#allocation3 + $0x8] sm:$0xff] %vm1420_vm7, %v2071_v32 }
0x1770   :  { %v1256_v8 = vpop.permute.xlu2 %1255 }
0x1771   :  { %1262 = vst.msk [vmem:[#allocation3] sm:$0xff] %vm1261_vm6, %v1256_v8 }
0x1772   :  { %1421 = vst.msk [vmem:[#allocation3] sm:$0xff] %vm1420_vm7, %v3333_v57  ;;  %v2076_v60 = vld [vmem:[#allocation3 + $0x8] sm:$0xff] }
0x1773   :  { %2154 = vmatmul.f32.vlgmr.msra.gmra.mxu3 %v2076_v60 }
0x1778   :  { %v1912_v10 = vpop.permute.xlu2 %1911 }
0x1779   :  { %1916 = vst.msk [vmem:[#allocation3 + $0x18] sm:$0xff] %vm1261_vm6, %v1912_v10  ;;  %v2075_v33 = vld [vmem:[#allocation3] sm:$0xff] }
0x177a   :  { %2131 = vmatmul.f32.vlgmr.msra.gmra.mxu1 %v2075_v33 }
0x17a0   :  { %v2068_v12 = vpop.permute.xlu1 %2067 }
0x17a1   :  { %v2072_v13 = vmul.f32 %v2068_v12, %v3519_v17  ;;  %v2171_v17 = vmul.f32 16.0, %v2514_v18 }
0x17a3   :  { %2074 = vst.msk [vmem:[#allocation3 + $0x18] sm:$0xff] %vm1420_vm7, %v2072_v13  ;;  %v2172_v28 = vsub.f32 1.0, %v2171_v17 }
0x17a5   :  { %v2173_v38 = vmul.f32 %v2514_v18, %v2172_v28 }
0x17a7   :  { %v2174_v0 = vadd.f32 %v2514_v18, %v2173_v38 }
0x17a8   :  { %v1258_v14 = vpop.permute.xlu1 %1257 }
0x17a9   :  { %1263 = vst.msk [vmem:[#allocation3 + $0x10] sm:$0xff] %vm1261_vm6, %v1258_v14  ;;  %v2176_v1 = vsel %vm2175_vm8, %v2514_v18, %v2174_v0 }
0x17aa   :  { %1422 = vst.msk [vmem:[#allocation3 + $0x10] sm:$0xff] %vm1420_vm7, %v3338_v59  ;;  %v2078_v3 = vld [vmem:[#allocation3 + $0x18] sm:$0xff]  ;;  %v2187_v53 = vmul.f32 %v2186_v49, %v2176_v1 }
0x17ab   :  { %2157 = vmatmul.f32.gmra.mxu3 %v2078_v3  ;;  %v2191_v59 = vld [vmem:[%s3704_s15 + $0x18] sm:$0xff] }
0x17ac   :  { %2231 = vmatpush.msra.mxu2 %v2191_v59  ;;  %2341 = vmatmul.msk.f32.vlgmr.msra.gmra.mxu0 %vm120_vm0, %v2187_v53 }
0x17ae   :  { %2232 = vmatpush.msra.mxu2 %v2190_v21 }
0x17b0   :  { %2233 = vmatpush.msra.mxu2 %v2189_v41 }
0x17b1   :  { %v2077_v57 = vld [vmem:[#allocation3 + $0x10] sm:$0xff] }
0x17b2   :  { %2134 = vmatmul.f32.gmra.mxu1 %v2077_v57  ;;  %2234 = vmatpush.msra.mxu2 %v2188_v24 }
0x17f6   :  { %v2155_v26 = vpop.f32.mrf.mxu3 }
0x17f7   :  { %v2132_v9 = vpop.f32.mrf.mxu1 }
0x17f8   :  { %v2133_v30 = vadd.f32 %v2384_v11, %v2132_v9 }
0x17fa   :  { %v2156_v31 = vadd.f32 %v2155_v26, %v2133_v30 }
0x17fc   :  { %v2161_v62 = vsel %vm777_vm3, %v2156_v31, 0.0 }
0x1829   :  { %v2213_v63 = vpop.f32.mrf.mxu0 }
0x182e   :  { %v2158_v47 = vpop.f32.mrf.mxu3 }
0x182f   :  { %v2135_v55 = vpop.f32.mrf.mxu1 }
0x1830   :  { %v2136_v42 = vadd.f32 %v2384_v11, %v2135_v55 }
0x1832   :  { %v2159_v6 = vadd.f32 %v2158_v47, %v2136_v42 }
0x1834   :  { %v2162_v2 = vsel %vm777_vm3, %v2159_v6, 0.0 }
0x1835   :  { %v2163_v36 = vadd.f32 %v2162_v2, %v2161_v62 }
0x1837   :  { %v2164_v5 = vrot.slane %v2163_v36, 4 }
0x1839   :  { %v2165_v34 = vadd.f32 %v2164_v5, %v2163_v36 }
0x183b   :  { %v2166_v15 = vrot.slane %v2165_v34, 2 }
0x183d   :  { %v2167_v52 = vadd.f32 %v2166_v15, %v2165_v34 }
0x183f   :  { %v2168_v35 = vrot.slane %v2167_v52, 1 }
0x1841   :  { %v2169_v19 = vadd.f32 %v2168_v35, %v2167_v52 }
0x1843   :  { %v2177_v44 = vmul.f32 %v2176_v1, %v2169_v19 }
0x1845   :  { %2342 = vmatmul.msk.f32.vlgmr.msra.gmra.mxu2 %vm777_vm3, %v2177_v44 }
0x18c8   :  { %v2236_v54 = vpop.f32.mrf.mxu2 }
0x18c9   :  { %v2237_v56 = vadd.f32 %v2236_v54, %v2213_v63 }
0x18cb   :  { %v2240_v39 = vadd.f32 %v2239_v27, %v2237_v56 }
0x18cd   :  { %2242 = vst.msk [vmem:[%s3707_s18] sm:$0x1] %vm2241_vm9, %v2240_v39 }

</bundles_post_ra>
